<compile_context>
chip_gen: v7x
topology: tpu7x:2x2x1
jax: 0.10.0
libtpu: 0.0.40
codegen_flags: <defaults>
</compile_context>

<pallas_src>
import functools

import jax
import jax.numpy as jnp
from jax.experimental import pallas as pl
from jax.experimental.pallas import tpu as pltpu


def _disc_kernel(x_ref, w1_ref, w2_ref, gamma_ref, beta_ref, out_ref,
                 p_scr, sum_scr, ssq_scr, *, inv_rows):
    """One grid step processes one batch tile of the input.

    x_ref:      (tn, H, W)     f32  current batch tile (raw activations, no pad, no cast)
    w1_ref:     (W, kh1*C)     f32  conv1 weights, column r*C + c  <->  torch w1[c, 0, r, w]
    w2_ref:     (h1, C)        f32  conv2 weights
    gamma/beta: (1, C)         f32  BatchNorm affine parameters
    out_ref:    (1, N)         f32  sigmoid(logits), lane-dense, written at the last grid step
    p_scr:      (N, C)         f32  per-sample conv2 partials (persistent scratch)
    sum_scr:    (1, C)         f32  running per-channel sum of LeakyReLU(conv1)
    ssq_scr:    (1, C)         f32  running per-channel sum of squares
    """
    i = pl.program_id(0)
    tn, H, W = x_ref.shape
    h1, C = w2_ref.shape
    kh1 = w1_ref.shape[1] // C

    @pl.when(i == 0)
    def _init():
        sum_scr[...] = jnp.zeros_like(sum_scr)
        ssq_scr[...] = jnp.zeros_like(ssq_scr)

    # --- conv1: all kh1 taps fused into a single MXU matmul -------------------------------
    # z[n*H + s, r*C + c] = sum_w x[n, s, w] * w1[c, 0, r, w]
    x2 = x_ref[...].reshape(tn * H, W)           # free collapse (H is a multiple of 8 here)
    z = jnp.dot(x2, w1_ref[...], preferred_element_type=jnp.float32)   # (tn*H, kh1*C)
    z3 = z.reshape(tn, H, kh1 * C)

    # conv1[n, t, c] = sum_r z3[n, t + r, r*C + c]  — shift-add the kh1 column groups.
    acc = z3[:, 0:h1, 0:C]
    for r in range(1, kh1):                                            # static unroll
        acc = acc + z3[:, r:r + h1, r * C:(r + 1) * C]                 # (tn, h1, C)

    # --- LeakyReLU(0.2) --------------------------------------------------------------------
    y = jnp.where(acc >= 0.0, acc, 0.2 * acc)                          # (tn, h1, C)

    # --- BatchNorm batch statistics (training mode): running sum / sum-of-squares ----------
    y2 = y.reshape(tn * h1, C)
    sum_scr[...] += jnp.sum(y2, axis=0, keepdims=True)
    ssq_scr[...] += jnp.sum(y2 * y2, axis=0, keepdims=True)

    # --- conv2 partial per sample: p[n, c] = sum_i w2[i, c] * y[n, i, c] --------------------
    p = jnp.sum(y * w2_ref[...][None, :, :], axis=1)                   # (tn, C)
    row0 = pl.multiple_of(i * tn, tn)
    p_scr[pl.ds(row0, tn), :] = p

    @pl.when(i == pl.num_programs(0) - 1)
    def _finalize():
        mean = sum_scr[...] * inv_rows                                 # (1, C)
        var = ssq_scr[...] * inv_rows - mean * mean                    # biased variance
        inv_std = jax.lax.rsqrt(var + 1e-5)                            # eps = 1e-5
        scale = gamma_ref[...] * inv_std                               # (1, C)
        shift = beta_ref[...] - scale * mean                           # (1, C)
        w2sum = jnp.sum(w2_ref[...], axis=0, keepdims=True)            # (1, C)
        const = jnp.sum(shift * w2sum, keepdims=True)                  # (1, 1)
        # lane-dense (1, N) logits: contract the C axis of p_scr against the folded BN scale.
        logits = jax.lax.dot_general(
            scale, p_scr[...],
            dimension_numbers=(((1,), (1,)), ((), ())),
            preferred_element_type=jnp.float32) + const                # (1, N)
        out_ref[...] = jax.nn.sigmoid(logits)


@functools.partial(jax.jit,
                   static_argnames=("max_length", "channel_num", "batch_tile_target"))
def discriminator_forward(x, w1, w2, gamma, beta, *, max_length, channel_num,
                          batch_tile_target=32):
    """x: (N, 1, H, 300) f32; returns (N, 1, 1, 1) f32 (matches PyTorch NCHW output)."""
    N, _, H, W = x.shape
    C = channel_num
    kh1 = max_length // 2 + 1
    kh2 = max_length // 2
    h1 = H - kh1 + 1                       # conv1 output height (conv1 output width is 1)
    assert h1 == kh2, "second conv must reduce the spatial dim to 1 (use even max_length == H)"

    # Batch tile: largest divisor of N not exceeding the target (32 fills the 256-row MXU on
    # v6e/v7x since tn*h1 = 256; 16 fills the 128-row MXU on v5e).
    bt = max(1, min(batch_tile_target, N))
    while N % bt:
        bt -= 1
    num_tiles = N // bt

    # Activations: (N, 1, H, W) -> (N, H, W), no pad, no cast (contiguous squeeze, zero-copy).
    xs = x[:, 0, :, :]

    # conv1 weights (C, 1, kh1, W) -> (W, kh1*C) with column r*C + c == w1[c, 0, r, w].
    w1m = jnp.transpose(w1[:, 0, :, :], (2, 1, 0)).reshape(W, kh1 * C).astype(jnp.float32)

    # conv2 weights (1, C, kh2, 1) -> (h1, C).
    w2m = jnp.transpose(w2[0, :, :, 0], (1, 0)).astype(jnp.float32)

    gamma2 = gamma.reshape(1, C).astype(jnp.float32)
    beta2 = beta.reshape(1, C).astype(jnp.float32)

    kernel = functools.partial(_disc_kernel, inv_rows=1.0 / float(N * h1))

    out = pl.pallas_call(
        kernel,
        out_shape=jax.ShapeDtypeStruct((1, N), jnp.float32),
        grid_spec=pltpu.PrefetchScalarGridSpec(
            num_scalar_prefetch=0,
            grid=(num_tiles,),
            in_specs=[
                pl.BlockSpec((bt, H, W), lambda i: (i, 0, 0)),       # streamed x tile
                pl.BlockSpec((W, kh1 * C), lambda i: (0, 0)),        # resident conv1 weights
                pl.BlockSpec((h1, C), lambda i: (0, 0)),             # resident conv2 weights
                pl.BlockSpec((1, C), lambda i: (0, 0)),
                pl.BlockSpec((1, C), lambda i: (0, 0)),
            ],
            out_specs=pl.BlockSpec((1, N), lambda i: (0, 0)),
            scratch_shapes=[
                pltpu.VMEM((N, C), jnp.float32),      # p: per-sample conv2 partials
                pltpu.VMEM((1, C), jnp.float32),      # per-channel running sum
                pltpu.VMEM((1, C), jnp.float32),      # per-channel running sum of squares
            ],
        ),
        compiler_params=pltpu.CompilerParams(
            # The batch-tile axis carries the BatchNorm reduction + persistent scratch state,
            # so it must run sequentially.
            dimension_semantics=("arbitrary",),
        ),
    )(xs, w1m, w2m, gamma2, beta2)

    return out.reshape(N, 1, 1, 1)


def _reference_forward(x, w1, w2, gamma, beta):
    """Plain-JAX reference matching PyTorch training-mode forward semantics (f32)."""
    dn1 = jax.lax.conv_dimension_numbers(x.shape, w1.shape, ("NCHW", "OIHW", "NCHW"))
    y = jax.lax.conv_general_dilated(x, w1, (1, 1), "VALID", dimension_numbers=dn1,
                                     precision=jax.lax.Precision.HIGHEST)
    y = jnp.where(y >= 0.0, y, 0.2 * y)
    m = jnp.mean(y, axis=(0, 2, 3), keepdims=True)
    v = jnp.mean((y - m) ** 2, axis=(0, 2, 3), keepdims=True)
    y = (y - m) * jax.lax.rsqrt(v + 1e-5) * gamma.reshape(1, -1, 1, 1) + beta.reshape(1, -1, 1, 1)
    dn2 = jax.lax.conv_dimension_numbers(y.shape, w2.shape, ("NCHW", "OIHW", "NCHW"))
    y = jax.lax.conv_general_dilated(y, w2, (1, 1), "VALID", dimension_numbers=dn2,
                                     precision=jax.lax.Precision.HIGHEST)
    return jax.nn.sigmoid(y)


if __name__ == "__main__":
    # conv1 kernel width is hard-coded to 300 in the module, so input width must be 300.
    max_length = 16
    channel_num = 4
    N, W = 64, 300          # 64 samples -> 2 grid steps of batch_tile 32 (tn*h1 = 256 MXU rows)

    key = jax.random.PRNGKey(0)
    kx, kw1, kw2 = jax.random.split(key, 3)

    x = jax.random.normal(kx, (N, 1, max_length, W), dtype=jnp.float32)

    kh1 = max_length // 2 + 1
    kh2 = max_length // 2
    # deterministic synthetic parameters (shapes from nn.Conv2d / nn.BatchNorm2d in __init__)
    w1 = 0.05 * jax.random.normal(kw1, (channel_num, 1, kh1, W), dtype=jnp.float32)
    w2 = 0.05 * jax.random.normal(kw2, (1, channel_num, kh2, 1), dtype=jnp.float32)
    gamma = jnp.ones((channel_num,), dtype=jnp.float32)   # BatchNorm2d default init
    beta = jnp.zeros((channel_num,), dtype=jnp.float32)

    out = discriminator_forward(
        x, w1, w2, gamma, beta, max_length=max_length, channel_num=channel_num
    )
    out = jax.block_until_ready(out)
    assert out.shape == (N, 1, 1, 1), out.shape

    # All-f32 kernel vs all-f32 reference (training-mode BatchNorm, batch statistics).
    ref = jax.block_until_ready(_reference_forward(x, w1, w2, gamma, beta))
    assert jnp.allclose(out, ref, atol=2e-3, rtol=0.0), float(jnp.max(jnp.abs(out - ref)))

    print("KERNEL_OK")
</pallas_src>

<mosaic_0001>
module attributes {stable_mosaic.version = 11 : i64} {
  func.func @_disc_kernel(%arg0: i32, %arg1: memref<32x16x300xf32, #tpu.memory_space<vmem>>, %arg2: memref<300x36xf32, #tpu.memory_space<vmem>>, %arg3: memref<8x4xf32, #tpu.memory_space<vmem>>, %arg4: memref<1x4xf32, #tpu.memory_space<vmem>>, %arg5: memref<1x4xf32, #tpu.memory_space<vmem>>, %arg6: memref<1x64xf32, #tpu.memory_space<vmem>>, %arg7: memref<64x4xf32, #tpu.memory_space<vmem>>, %arg8: memref<1x4xf32, #tpu.memory_space<vmem>>, %arg9: memref<1x4xf32, #tpu.memory_space<vmem>>) attributes {dimension_semantics = [#tpu.dimension_semantics<arbitrary>], iteration_bounds = array<i64: 2>, scalar_prefetch = 0 : i64, scratch_operands = 3 : i64, tpu.core_type = #tpu.core_type<tc>, window_params = [{transform_indices = @transform_0, window_bounds = array<i64: 32, 16, 300>}, {pipeline_mode = #tpu.pipeline_mode<synchronous>, transform_indices = @transform_1, window_bounds = array<i64: 300, 36>}, {pipeline_mode = #tpu.pipeline_mode<synchronous>, transform_indices = @transform_2, window_bounds = array<i64: 8, 4>}, {pipeline_mode = #tpu.pipeline_mode<synchronous>, transform_indices = @transform_3, window_bounds = array<i64: 1, 4>}, {pipeline_mode = #tpu.pipeline_mode<synchronous>, transform_indices = @transform_4, window_bounds = array<i64: 1, 4>}, {pipeline_mode = #tpu.pipeline_mode<synchronous>, transform_indices = @transform_5, window_bounds = array<i64: 1, 64>}]} {
    %c0_i32 = arith.constant 0 : i32
    %0 = arith.cmpi eq, %arg0, %c0_i32 : i32
    %1 = arith.extui %0 : i1 to i32
    %c0_i32_0 = arith.constant 0 : i32
    %2 = arith.cmpi ne, %1, %c0_i32_0 : i32
    scf.if %2 {
      %cst_22 = arith.constant 0.000000e+00 : f32
      %54 = vector.broadcast %cst_22 : f32 to vector<1x4xf32>
      %c0_23 = arith.constant 0 : index
      %c0_24 = arith.constant 0 : index
      %55 = vector.load %arg8[%c0_23, %c0_24] : memref<1x4xf32, #tpu.memory_space<vmem>>, vector<1x4xf32>
      tpu.vector_store %arg8[%c0_23, %c0_24], %54 {strides = array<i32>} : memref<1x4xf32, #tpu.memory_space<vmem>>, vector<1x4xf32>,
      %cst_25 = arith.constant 0.000000e+00 : f32
      %56 = vector.broadcast %cst_25 : f32 to vector<1x4xf32>
      %c0_26 = arith.constant 0 : index
      %c0_27 = arith.constant 0 : index
      %57 = vector.load %arg9[%c0_26, %c0_27] : memref<1x4xf32, #tpu.memory_space<vmem>>, vector<1x4xf32>
      tpu.vector_store %arg9[%c0_26, %c0_27], %56 {strides = array<i32>} : memref<1x4xf32, #tpu.memory_space<vmem>>, vector<1x4xf32>,
    } else {
    }
    %c0 = arith.constant 0 : index
    %c0_1 = arith.constant 0 : index
    %c0_2 = arith.constant 0 : index
    %3 = vector.load %arg1[%c0, %c0_1, %c0_2] : memref<32x16x300xf32, #tpu.memory_space<vmem>>, vector<32x16x300xf32>
    %4 = vector.shape_cast %3 : vector<32x16x300xf32> to vector<512x300xf32>
    %c0_3 = arith.constant 0 : index
    %c0_4 = arith.constant 0 : index
    %5 = vector.load %arg2[%c0_3, %c0_4] : memref<300x36xf32, #tpu.memory_space<vmem>>, vector<300x36xf32>
    %cst = arith.constant dense<0.000000e+00> : vector<512x36xf32>
    %6 = tpu.matmul %4, %5, %cst {dimension_numbers = #tpu.dot_dimension_numbers<[1], [0], [0], [1], [0, 0, 1, 1], [], []>} : vector<512x300xf32>, vector<300x36xf32>, vector<512x36xf32> -> vector<512x36xf32>
    %7 = vector.shape_cast %6 : vector<512x36xf32> to vector<32x16x36xf32>
    %8 = vector.extract_strided_slice %7 {offsets = [0, 0, 0], sizes = [32, 8, 4], strides = [1, 1, 1]} : vector<32x16x36xf32> to vector<32x8x4xf32>
    %9 = vector.extract_strided_slice %7 {offsets = [0, 1, 4], sizes = [32, 8, 4], strides = [1, 1, 1]} : vector<32x16x36xf32> to vector<32x8x4xf32>
    %10 = arith.addf %8, %9 : vector<32x8x4xf32>
    %11 = vector.extract_strided_slice %7 {offsets = [0, 2, 8], sizes = [32, 8, 4], strides = [1, 1, 1]} : vector<32x16x36xf32> to vector<32x8x4xf32>
    %12 = arith.addf %10, %11 : vector<32x8x4xf32>
    %13 = vector.extract_strided_slice %7 {offsets = [0, 3, 12], sizes = [32, 8, 4], strides = [1, 1, 1]} : vector<32x16x36xf32> to vector<32x8x4xf32>
    %14 = arith.addf %12, %13 : vector<32x8x4xf32>
    %15 = vector.extract_strided_slice %7 {offsets = [0, 4, 16], sizes = [32, 8, 4], strides = [1, 1, 1]} : vector<32x16x36xf32> to vector<32x8x4xf32>
    %16 = arith.addf %14, %15 : vector<32x8x4xf32>
    %17 = vector.extract_strided_slice %7 {offsets = [0, 5, 20], sizes = [32, 8, 4], strides = [1, 1, 1]} : vector<32x16x36xf32> to vector<32x8x4xf32>
    %18 = arith.addf %16, %17 : vector<32x8x4xf32>
    %19 = vector.extract_strided_slice %7 {offsets = [0, 6, 24], sizes = [32, 8, 4], strides = [1, 1, 1]} : vector<32x16x36xf32> to vector<32x8x4xf32>
    %20 = arith.addf %18, %19 : vector<32x8x4xf32>
    %21 = vector.extract_strided_slice %7 {offsets = [0, 7, 28], sizes = [32, 8, 4], strides = [1, 1, 1]} : vector<32x16x36xf32> to vector<32x8x4xf32>
    %22 = arith.addf %20, %21 : vector<32x8x4xf32>
    %23 = vector.extract_strided_slice %7 {offsets = [0, 8, 32], sizes = [32, 8, 4], strides = [1, 1, 1]} : vector<32x16x36xf32> to vector<32x8x4xf32>
    %24 = arith.addf %22, %23 : vector<32x8x4xf32>
    %cst_5 = arith.constant 0.000000e+00 : f32
    %25 = vector.broadcast %cst_5 : f32 to vector<32x8x4xf32>
    %26 = arith.cmpf oge, %24, %25 : vector<32x8x4xf32>
    %cst_6 = arith.constant 2.000000e-01 : f32
    %27 = vector.broadcast %cst_6 : f32 to vector<32x8x4xf32>
    %28 = arith.mulf %27, %24 : vector<32x8x4xf32>
    %29 = arith.select %26, %24, %28 : vector<32x8x4xi1>, vector<32x8x4xf32>
    %30 = vector.shape_cast %29 : vector<32x8x4xf32> to vector<256x4xf32>
    %c0_7 = arith.constant 0 : index
    %c0_8 = arith.constant 0 : index
    %31 = vector.load %arg8[%c0_7, %c0_8] : memref<1x4xf32, #tpu.memory_space<vmem>>, vector<1x4xf32>
    %cst_9 = arith.constant dense<0.000000e+00> : vector<4xf32>
    %32 = vector.multi_reduction <add>, %30, %cst_9 [0] : vector<256x4xf32> to vector<4xf32>
    %33 = vector.shape_cast %32 : vector<4xf32> to vector<1x4xf32>
    %34 = arith.addf %31, %33 : vector<1x4xf32>
    %c0_10 = arith.constant 0 : index
    %c0_11 = arith.constant 0 : index
    %35 = vector.load %arg8[%c0_10, %c0_11] : memref<1x4xf32, #tpu.memory_space<vmem>>, vector<1x4xf32>
    tpu.vector_store %arg8[%c0_10, %c0_11], %34 {strides = array<i32>} : memref<1x4xf32, #tpu.memory_space<vmem>>, vector<1x4xf32>,
    %c0_12 = arith.constant 0 : index
    %c0_13 = arith.constant 0 : index
    %36 = vector.load %arg9[%c0_12, %c0_13] : memref<1x4xf32, #tpu.memory_space<vmem>>, vector<1x4xf32>
    %37 = arith.mulf %30, %30 : vector<256x4xf32>
    %cst_14 = arith.constant dense<0.000000e+00> : vector<4xf32>
    %38 = vector.multi_reduction <add>, %37, %cst_14 [0] : vector<256x4xf32> to vector<4xf32>
    %39 = vector.shape_cast %38 : vector<4xf32> to vector<1x4xf32>
    %40 = arith.addf %36, %39 : vector<1x4xf32>
    %c0_15 = arith.constant 0 : index
    %c0_16 = arith.constant 0 : index
    %41 = vector.load %arg9[%c0_15, %c0_16] : memref<1x4xf32, #tpu.memory_space<vmem>>, vector<1x4xf32>
    tpu.vector_store %arg9[%c0_15, %c0_16], %40 {strides = array<i32>} : memref<1x4xf32, #tpu.memory_space<vmem>>, vector<1x4xf32>,
    %c0_17 = arith.constant 0 : index
    %c0_18 = arith.constant 0 : index
    %42 = vector.load %arg3[%c0_17, %c0_18] : memref<8x4xf32, #tpu.memory_space<vmem>>, vector<8x4xf32>
    %43 = vector.shape_cast %42 : vector<8x4xf32> to vector<1x8x4xf32>
    %44 = vector.broadcast %43 : vector<1x8x4xf32> to vector<32x8x4xf32>
    %45 = arith.mulf %29, %44 : vector<32x8x4xf32>
    %cst_19 = arith.constant dense<0.000000e+00> : vector<32x4xf32>
    %46 = vector.multi_reduction <add>, %45, %cst_19 [1] : vector<32x8x4xf32> to vector<32x4xf32>
    %c32_i32 = arith.constant 32 : i32
    %47 = arith.muli %arg0, %c32_i32 : i32
    %48 = tpu.assume_multiple %47, 32 : i32
    %49 = arith.index_cast %48 : i32 to index
    %c0_20 = arith.constant 0 : index
    %50 = vector.load %arg7[%49, %c0_20] : memref<64x4xf32, #tpu.memory_space<vmem>>, vector<32x4xf32>
    tpu.vector_store %arg7[%49, %c0_20], %46 {strides = array<i32>} : memref<64x4xf32, #tpu.memory_space<vmem>>, vector<32x4xf32>,
    %c1_i32 = arith.constant 1 : i32
    %51 = arith.cmpi eq, %arg0, %c1_i32 : i32
    %52 = arith.extui %51 : i1 to i32
    %c0_i32_21 = arith.constant 0 : i32
    %53 = arith.cmpi ne, %52, %c0_i32_21 : i32
    scf.if %53 {
      %c0_22 = arith.constant 0 : index
      %c0_23 = arith.constant 0 : index
      %54 = vector.load %arg8[%c0_22, %c0_23] : memref<1x4xf32, #tpu.memory_space<vmem>>, vector<1x4xf32>
      %cst_24 = arith.constant 0.001953125 : f32
      %55 = vector.broadcast %cst_24 : f32 to vector<1x4xf32>
      %56 = arith.mulf %54, %55 : vector<1x4xf32>
      %c0_25 = arith.constant 0 : index
      %c0_26 = arith.constant 0 : index
      %57 = vector.load %arg9[%c0_25, %c0_26] : memref<1x4xf32, #tpu.memory_space<vmem>>, vector<1x4xf32>
      %cst_27 = arith.constant 0.001953125 : f32
      %58 = vector.broadcast %cst_27 : f32 to vector<1x4xf32>
      %59 = arith.mulf %57, %58 : vector<1x4xf32>
      %60 = arith.mulf %56, %56 : vector<1x4xf32>
      %61 = arith.subf %59, %60 : vector<1x4xf32>
      %cst_28 = arith.constant 9.99999974E-6 : f32
      %62 = vector.broadcast %cst_28 : f32 to vector<1x4xf32>
      %63 = arith.addf %61, %62 : vector<1x4xf32>
      %64 = math.rsqrt %63 : vector<1x4xf32>
      %c0_29 = arith.constant 0 : index
      %c0_30 = arith.constant 0 : index
      %65 = vector.load %arg4[%c0_29, %c0_30] : memref<1x4xf32, #tpu.memory_space<vmem>>, vector<1x4xf32>
      %66 = arith.mulf %65, %64 : vector<1x4xf32>
      %c0_31 = arith.constant 0 : index
      %c0_32 = arith.constant 0 : index
      %67 = vector.load %arg5[%c0_31, %c0_32] : memref<1x4xf32, #tpu.memory_space<vmem>>, vector<1x4xf32>
      %68 = arith.mulf %66, %56 : vector<1x4xf32>
      %69 = arith.subf %67, %68 : vector<1x4xf32>
      %c0_33 = arith.constant 0 : index
      %c0_34 = arith.constant 0 : index
      %70 = vector.load %arg3[%c0_33, %c0_34] : memref<8x4xf32, #tpu.memory_space<vmem>>, vector<8x4xf32>
      %cst_35 = arith.constant dense<0.000000e+00> : vector<4xf32>
      %71 = vector.multi_reduction <add>, %70, %cst_35 [0] : vector<8x4xf32> to vector<4xf32>
      %72 = vector.shape_cast %71 : vector<4xf32> to vector<1x4xf32>
      %73 = arith.mulf %69, %72 : vector<1x4xf32>
      %74 = vector.shape_cast %73 : vector<1x4xf32> to vector<1x1x4xf32>
      %cst_36 = arith.constant dense<0.000000e+00> : vector<1xf32>
      %75 = vector.multi_reduction <add>, %74, %cst_36 [1, 2] : vector<1x1x4xf32> to vector<1xf32>
      %76 = vector.shape_cast %75 : vector<1xf32> to vector<1x1x1xf32>
      %77 = vector.extract %76[0, 0, 0] : f32 from vector<1x1x1xf32>
      %78 = vector.broadcast %77 : f32 to vector<1x1xf32>
      %c0_37 = arith.constant 0 : index
      %c0_38 = arith.constant 0 : index
      %79 = vector.load %arg7[%c0_37, %c0_38] : memref<64x4xf32, #tpu.memory_space<vmem>>, vector<64x4xf32>
      %cst_39 = arith.constant dense<0.000000e+00> : vector<1x64xf32>
      %80 = tpu.matmul %66, %79, %cst_39 {dimension_numbers = #tpu.dot_dimension_numbers<[1], [1], [0], [0], [0, 0, 1, 0], [], []>} : vector<1x4xf32>, vector<64x4xf32>, vector<1x64xf32> -> vector<1x64xf32>
      %81 = vector.broadcast %78 : vector<1x1xf32> to vector<1x64xf32>
      %82 = arith.addf %80, %81 : vector<1x64xf32>
      %83 = arith.negf %82 : vector<1x64xf32>
      %84 = math.exp %83 : vector<1x64xf32>
      %cst_40 = arith.constant 1.000000e+00 : f32
      %85 = vector.broadcast %cst_40 : f32 to vector<1x64xf32>
      %86 = arith.addf %85, %84 : vector<1x64xf32>
      %87 = arith.divf %85, %86 : vector<1x64xf32>
      %c0_41 = arith.constant 0 : index
      %c0_42 = arith.constant 0 : index
      %88 = vector.load %arg6[%c0_41, %c0_42] : memref<1x64xf32, #tpu.memory_space<vmem>>, vector<1x64xf32>
      tpu.vector_store %arg6[%c0_41, %c0_42], %87 {strides = array<i32>} : memref<1x64xf32, #tpu.memory_space<vmem>>, vector<1x64xf32>,
    } else {
    }
    return
  }
  func.func @transform_0(%arg0: i32) -> (i32, i32, i32) {
    %c0_i32 = arith.constant 0 : i32
    %c0_i32_0 = arith.constant 0 : i32
    %c0_i32_1 = arith.constant 0 : i32
    return %arg0, %c0_i32, %c0_i32_0 : i32, i32, i32
  }
  func.func @transform_1(%arg0: i32) -> (i32, i32) {
    %c0_i32 = arith.constant 0 : i32
    %c0_i32_0 = arith.constant 0 : i32
    %c0_i32_1 = arith.constant 0 : i32
    return %c0_i32, %c0_i32_0 : i32, i32
  }
  func.func @transform_2(%arg0: i32) -> (i32, i32) {
    %c0_i32 = arith.constant 0 : i32
    %c0_i32_0 = arith.constant 0 : i32
    %c0_i32_1 = arith.constant 0 : i32
    return %c0_i32, %c0_i32_0 : i32, i32
  }
  func.func @transform_3(%arg0: i32) -> (i32, i32) {
    %c0_i32 = arith.constant 0 : i32
    %c0_i32_0 = arith.constant 0 : i32
    %c0_i32_1 = arith.constant 0 : i32
    return %c0_i32, %c0_i32_0 : i32, i32
  }
  func.func @transform_4(%arg0: i32) -> (i32, i32) {
    %c0_i32 = arith.constant 0 : i32
    %c0_i32_0 = arith.constant 0 : i32
    %c0_i32_1 = arith.constant 0 : i32
    return %c0_i32, %c0_i32_0 : i32, i32
  }
  func.func @transform_5(%arg0: i32) -> (i32, i32) {
    %c0_i32 = arith.constant 0 : i32
    %c0_i32_0 = arith.constant 0 : i32
    %c0_i32_1 = arith.constant 0 : i32
    return %c0_i32, %c0_i32_0 : i32, i32
  }
}

</mosaic_0001>

<bundles_post_ra>
// kernel: discriminator_forward.1
= control target key start
LH: loop header
LB: loop body
LE: loop exit
PB: predicated region body
PF: predicated region fallthrough
CT: control target
= control target key end

     0   :  { %10 = vsyncpa [#allocation6], 0  ;;  %s7254_s0 = inlined_call_operand.hbm [shape: f32[64,16,300], index: 0, kind: input, shape index: {}]   ;;  %s7255_s1 = inlined_call_operand.vmem [shape: f32[300,36], index: 1, kind: input, shape index: {}]   ;;  %s7256_s2 = inlined_call_operand.vmem [shape: f32[8,4], index: 2, kind: input, shape index: {}]   ;;  %s7257_s3 = inlined_call_operand.hbm [shape: f32[1,4], index: 3, kind: input, shape index: {}]   ;;  %s7258_s4 = inlined_call_operand.hbm [shape: f32[1,4], index: 4, kind: input, shape index: {}]   ;;  %s7259_s5 = inlined_call_operand.hbm [shape: f32[1,64], index: 5, kind: output, shape index: {}]  }
   0x1   :  { %12 = vsyncpa [#allocation6 + $0x1], 0 }
   0x2   :  { %13 = vsyncpa [#allocation9], 0 }
   0x3   :  { %14 = vsyncpa [#allocation7], 0  ;;  %s4775_s18 = smov 0   ;;  %s4777_s19 = smov 0  }
   0x4   :  { %s4779_s20 = smov 0   ;;  %s4781_s21 = smov 0  }
   0x5 LB: > { %s4794_s22 = sadd.s32 4294967295, %s4723_s21   ;;  %s4797_s23 = sadd.s32 1, %s4723_s21   ;;  %s4723_s21 = sphi %s4781_s21, %s7378_s21   ;;  %s4719_s20 = sphi %s4779_s20, %s7377_s20   ;;  %s4715_s19 = sphi %s4777_s19, %s7376_s19   ;;  %s4711_s18 = sphi %s4775_s18, %s7375_s18  }
   0x6   : > { %s24_s24 = ssub.s32 %s4723_s21, %s4797_s23  ;;  %s27_s25 = sadd.s32 1, %s4719_s20 }
   0x7   : > { %p25_p0 = scmp.eq.s32.totalorder %s24_s24, 0  ;;  %p34_p1 = scmp.ne.s32.totalorder %s4719_s20, %s4715_s19 }
   0x8   : > { %p35_p2 = scmp.eq.s32.totalorder %s4723_s21, 0  ;;  %p40_p3 = scmp.ne.s32.totalorder %s4715_s19, %s4711_s18 }
   0x9   : > { %s4807_s26 = scalar_select %p25_p0, %s4719_s20, %s27_s25  }
   0xa   : > { %p4809_p4 = por %p35_p2, %p34_p1  ;;  %p7260_p5 = scmp.eq.s32.totalorder %s4794_s22, 0 }
   0xb   : > { %p4065_p6 = scmp.ge.s32.totalorder %s4723_s21, 1  ;;  %p156_p7 = scmp.lt.s32.totalorder %s4723_s21, 3 }
   0xc   : > { %p4818_p8 = por %p7260_p5, %p40_p3  ;;  %s4725_s30 = smov [#allocation8]  }
   0xd   : > { %p4823_p10 = pnand %p4065_p6, %p156_p7  ;;  %s175_s6 = sshll.u32 %s4725_s30, 4  ;;  %s176_s6 = int_to_ptr.vmem [resolvable:$true] %s175_s6 }
   0xe   : > { %s7293_s28 = scalar_select %p4818_p8, 1, 0 }
   0xf   : > { %s7294_s29 = scalar_select %p4823_p10, 1, 0 }
  0x10   : > { %p4492_p11 = pneg %p4823_p10  ;;  %p4505_p12 = scmp.lt.s32.totalorder %s4723_s21, 2 }
  0x11   : > { %s4726_s8 = smov [#allocation10]   ;;  %s197_s11 = sand.u32 1, %s4719_s20  }
  0x12   : > { %p4832_p13 = pnand %p4492_p11, %p7260_p5  ;;  %s186_s9 = sshll.u32 %s4726_s8, 4  ;;  %s4842_s9 = int_to_ptr.vmem [resolvable:$true] %s186_s9 }
  0x13   : > { %p4838_p0 = pnand %p4505_p12, %p4809_p4  ;;  %s4569_s14 = scalar_lea.hbm %s7257_s3, 16 }
  0x14   : > { %p4570_p1 = scmp.ne.s32.totalorder %s7257_s3, %s4569_s14  ;;  %p4571_p2 = pneg %p4832_p13 }
  0x15   : > { %s7296_s10 = scalar_select %p4838_p0, 1, 0 }
  0x16   : > { %p4572_p3 = pnand %p4571_p2, %p4570_p1  ;;  %p4576_p6 = scmp.lt.u32.totalorder %s4569_s14, %s7257_s3 }
  0x18   : > { %p4573_p4 = pneg %p4572_p3 }
  0x1a   : > { %p4578_p7 = pnand %p4576_p6, %p4573_p4 }
  0x1c   : > { %4581 = shalt.err (!%p4578_p7)
}
  0x1d   : > { %s4582_s24 = scalar_lea.vmem %s176_s6, 16  ;;  %s4589_s25 = scalar_lea.vmem %s176_s6, 32 }
  0x1e   : > { %p4583_p11 = scmp.ne.s32.totalorder %s176_s6, %s4582_s24  ;;  %p4590_p5 = scmp.lt.s32.totalorder %s176_s6, %s176_s6 }
  0x1f   : > { %p4591_p8 = scmp.lt.s32.totalorder %s4589_s25, %s4582_s24 }
  0x20   : > { %p4585_p12 = pnand %p4583_p11, %p4571_p2 }
  0x21   : > { %p4592_p10 = por %p4591_p8, %p4590_p5 }
  0x22   : > { %p4586_p9 = pneg %p4585_p12 }
  0x24   : > { %p4593_p0 = pnand %p4592_p10, %p4586_p9 }
  0x26   : > { %4596 = shalt.err (!%p4593_p0)
}
  0x27   : > { %4495 = dma.hbm_to_vmem [thread:$0]  (!%p4832_p13), %s7257_s3, 16, %s176_s6, [#allocation9]  }
  0x28   : > { %s4597_s13 = scalar_lea.hbm %s7258_s4, 16 }
  0x29   : > { %p4598_p1 = scmp.ne.s32.totalorder %s7258_s4, %s4597_s13  ;;  %p4604_p9 = scmp.lt.u32.totalorder %s4597_s13, %s7258_s4 }
  0x2b   : > { %p4600_p5 = pnand %p4598_p1, %p4571_p2 }
  0x2d   : > { %p4601_p8 = pneg %p4600_p5 }
  0x2f   : > { %p4606_p10 = pnand %p4604_p9, %p4601_p8 }
  0x31   : > { %4609 = shalt.err (!%p4606_p10)
}
  0x32   : > { %s4610_s6 = scalar_lea.vmem %s4842_s9, 16  ;;  %s4617_s18 = scalar_lea.vmem %s4842_s9, 32 }
  0x33   : > { %p4611_p0 = scmp.ne.s32.totalorder %s4842_s9, %s4610_s6  ;;  %p4618_p6 = scmp.lt.s32.totalorder %s4842_s9, %s4842_s9 }
  0x34   : > { %p4619_p7 = scmp.lt.s32.totalorder %s4617_s18, %s4610_s6 }
  0x35   : > { %p4613_p3 = pnand %p4611_p0, %p4571_p2 }
  0x36   : > { %p4620_p11 = por %p4619_p7, %p4618_p6 }
  0x37   : > { %p4614_p4 = pneg %p4613_p3 }
  0x39   : > { %p4621_p12 = pnand %p4620_p11, %p4614_p4 }
  0x3b   : > { %4624 = shalt.err (!%p4621_p12)
}
  0x3c   : > { %4498 = dma.hbm_to_vmem [thread:$0]  (!%p4832_p13), %s7258_s4, 16, %s4842_s9, [#allocation9]  }
  0x3d   : > { %s4473_s27 = smul.u32 1536, %s197_s11  ;;  %s4905_s15 = scalar_lea.sflag [#allocation6], %s197_s11 }
  0x3e   : > { %s4474_s30 = smul.u32 24576, %s4723_s21  ;;  %p7297_p2 = scmp.ne.s32.totalorder %s7296_s10, 0 }
  0x3f   : > { %s201_s7 = scalar_lea.vmem [#allocation5], %s4473_s27  ;;  %s4630_s17 = scalar_lea.hbm %s7254_s0, 49152 }
  0x40   : > { %s4899_s13 = scalar_lea.hbm %s7254_s0, %s4474_s30  ;;  %s209_s14 = sshll.u32 %s201_s7, 4  ;;  %s4901_s14 = int_to_ptr.vmem [resolvable:$true] %s209_s14 }
  0x41   : > { %s4625_s9 = scalar_lea.hbm %s4899_s13, 24576  ;;  %p4627_p1 = pneg %p7297_p2 }
  0x42   : > { %p4626_p13 = scmp.ne.s32.totalorder %s4899_s13, %s4625_s9  ;;  %p4631_p9 = scmp.lt.u32.totalorder %s4899_s13, %s7254_s0 }
  0x43   : > { %p4632_p10 = scmp.lt.u32.totalorder %s4630_s17, %s4625_s9  ;;  %p4634_p3 = scmp.lt.u32.totalorder %s4625_s9, %s4899_s13 }
  0x44   : > { %p4628_p5 = pnand %p4627_p1, %p4626_p13 }
  0x45   : > { %p4633_p0 = por %p4632_p10, %p4631_p9 }
  0x46   : > { %p4629_p8 = pneg %p4628_p5 }
  0x47   : > { %p4635_p4 = por %p4634_p3, %p4633_p0 }
  0x49   : > { %p4636_p6 = pnand %p4635_p4, %p4629_p8 }
  0x4b   : > { %4639 = shalt.err (!%p4636_p6)
}
  0x4c   : > { %s4640_s11 = scalar_lea.vmem %s4901_s14, 24576  ;;  %s4727_s24 = smov [#allocation5]  }
  0x4d   : > { %p4641_p7 = scmp.ne.s32.totalorder %s4901_s14, %s4640_s11  ;;  %s4645_s25 = sshll.u32 %s4727_s24, 4  ;;  %s4646_s25 = int_to_ptr.vmem [resolvable:$false] %s4645_s25 }
  0x4e   : > { %s4647_s27 = scalar_lea.vmem %s4646_s25, 49152  ;;  %p4648_p13 = scmp.lt.s32.totalorder %s4901_s14, %s4646_s25 }
  0x4f   : > { %p4643_p11 = pnand %p4641_p7, %p4627_p1  ;;  %p4649_p5 = scmp.lt.s32.totalorder %s4647_s27, %s4640_s11 }
  0x51   : > { %p4644_p12 = pneg %p4643_p11  ;;  %p4650_p9 = por %p4649_p5, %p4648_p13 }
  0x53   : > { %p4651_p10 = pnand %p4650_p9, %p4644_p12 }
  0x55   : > { %4654 = shalt.err (!%p4651_p10)
}
  0x56   : > { %s4728_s30 = smov 384   ;;  %s4729_s8 = smov 24  }
  0x57   : > { %4502 = dma.hbm_to_vmem [thread:$0]  (!%p7297_p2), %s4899_s13, 24576, %s4901_s14, %s4905_s15, %s4728_s30, %s4728_s30, %s4729_s8  }
  0x58   : > { %p7298_p1 = scmp.ne.s32.totalorder %s7294_s29, 0 }
  0x5a   : > { %221 = sbr.rel (%p7298_p1) target bundleno = 1418 (0x58a), region = 40 }
  0x61   : > { %s223_s12 = sand.u32 1, %s4715_s19   ;;  %p7299_p8 = scmp.ne.s32.totalorder %s7293_s28, 0 }
  0x62   : > { %s4475_s7 = smul.u32 1536, %s223_s12  ;;  %s224_s9 = scalar_lea.sflag [#allocation6], %s223_s12 }
  0x64   : > { %s4936_s21 = scalar_lea.vmem [#allocation5], %s4475_s7 }
  0x65   : > { %4698 = dma.done.wait (%p7299_p8), %s224_s9, 24576  }
  0x66   : > { %4700 = vsyncadd (%p7299_p8), %s224_s9, 4294942720  ;;  %p7300_p0 = scmp.eq.s32.totalorder %s4794_s22, 0 }
  0x68   : > { %4702 = dma.done.wait (%p7300_p0), [#allocation9], 32   ;;  %p7301_p2 = pmov %p7300_p0 }
  0x69   : > { %p7302_p3 = scmp.ne.s32.totalorder %s4794_s22, 0 }
  0x6a   : > { %4704 = vsyncadd (%p7301_p2), [#allocation9], 4294967264  ;;  %vm262_vm0 = vcmask (!%p7302_p3), 24576   ;;  %v4730_v0 = vmov (!%p7302_p3), 0.0  }
  0x6b   : > { %261 = sbr.rel (%p7302_p3) target bundleno = 114 (0x72), region = 56  ;;  %263 = vst.msk [vmem:[#allocation3] sm:$0x1] (!%p7302_p3), %vm262_vm0, %v4730_v0  ;;  %264 = vst.msk [vmem:[#allocation4] sm:$0x1] (!%p7302_p3), %vm262_vm0, %v4730_v0 }
  0x72 PF: > { %v457_v1 = vld [vmem:[%s7255_s1] sm:$0xff]  ;;  %v458_v2 = vld [vmem:[%s7255_s1 + $0x8] sm:$0xff]  ;;  %v459_v3 = vld [vmem:[%s7255_s1 + $0x10] sm:$0xff]  ;;  %v4731_v4 = vmov 0.0|0.0   ;;  %vm688_vm1 = vcmask 1043456   ;;  %vm4732_vm2 = vmmov 1  }
  0x73   : > { %4441 = vmatprep.subr.bf16.mxu1 %v4731_v4  ;;  %v4364_v5 = vpack.c.bf16 %v458_v2, %v457_v1  ;;  %v460_v6 = vld [vmem:[%s7255_s1 + $0x18] sm:$0xff]  ;;  %4363 = vmatprep.subr.bf16.mxu0 %v4731_v4  ;;  %v461_v8 = vld [vmem:[%s7255_s1 + $0x20] sm:$0xff]  ;;  %v462_v9 = vld [vmem:[%s7255_s1 + $0x28] sm:$0xff]  ;;  %vm495_vm4 = vcmask 359424   ;;  %vm1526_vm5 = vcmask 1046528   ;;  %vm1751_vm6 = vcmask 1045504  }
  0x74   : > { %v4367_v7 = vpack.c.bf16 %v460_v6, %v459_v3  ;;  %v4370_v10 = vpack.c.bf16 %v462_v9, %v461_v8  ;;  %v463_v11 = vld [vmem:[%s7255_s1 + $0x30] sm:$0xff]  ;;  %v464_v12 = vld [vmem:[%s7255_s1 + $0x38] sm:$0xff]  ;;  %v465_v15 = vld [vmem:[%s7255_s1 + $0x40] sm:$0xff]  ;;  %s4734_s29 = smov 124   ;;  %vm1976_vm7 = vcmask 1044480   ;;  %s4735_s10 = smov 120  }
  0x75   : > { %4457 = vmatpush1.bf16.msra.mxu1 %v4364_v5  ;;  %4365 = vmatpush1.bf16.msra.mxu0 %v4364_v5  ;;  %v410_v13 = vld [vmem:[%s4936_s21 + $0x488] sm:$0xff]  ;;  %v4373_v14 = vpack.c.bf16 %v464_v12, %v463_v11  ;;  %v468_v19 = vld [vmem:[%s7255_s1 + $0x58] sm:$0xff]  ;;  %v469_v21 = vld [vmem:[%s7255_s1 + $0x60] sm:$0xff]  ;;  %s4736_s28 = smov 116   ;;  %s4737_s13 = smov 112   ;;  %vm2425_vm8 = vcmask 1042432  }
  0x76   : > { %4442 = vmatprep.subr.bf16.mxu1 %v4731_v4  ;;  %4366 = vmatprep.subr.bf16.mxu0 %v4731_v4  ;;  %v466_v16 = vld [vmem:[%s7255_s1 + $0x48] sm:$0xff]  ;;  %v467_v18 = vld [vmem:[%s7255_s1 + $0x50] sm:$0xff]  ;;  %v472_v26 = vld [vmem:[%s7255_s1 + $0x78] sm:$0xff]  ;;  %vm2650_vm9 = vcmask 1041408   ;;  %s4738_s14 = smov 108   ;;  %s4739_s15 = smov 104  }
  0x77   : > { %996 = vmatprep.mubr.f32.mxu1 %v410_v13  ;;  %v4376_v17 = vpack.c.bf16 %v466_v16, %v465_v15  ;;  %v4379_v20 = vpack.c.bf16 %v468_v19, %v467_v18  ;;  %v470_v22 = vld [vmem:[%s7255_s1 + $0x68] sm:$0xff]  ;;  %v471_v25 = vld [vmem:[%s7255_s1 + $0x70] sm:$0xff]  ;;  %v473_v28 = vld [vmem:[%s7255_s1 + $0x80] sm:$0xff]  ;;  %vm2875_vm10 = vcmask 1040384   ;;  %s4740_s16 = smov 100   ;;  %vm3325_vm12 = vcmask 31744  }
  0x78   : > { %v266_v23 = vld [vmem:[%s4936_s21 + $0x8] sm:$0xff]  ;;  %v4382_v24 = vpack.c.bf16 %v470_v22, %v469_v21  ;;  %v4385_v27 = vpack.c.bf16 %v472_v26, %v471_v25  ;;  %v476_v32 = vld [vmem:[%s7255_s1 + $0x98] sm:$0xff]  ;;  %v477_v34 = vld [vmem:[%s7255_s1 + $0xa0] sm:$0xff]  ;;  %s4141_s18 = sshll.u32 %s4794_s22, 5  ;;  %p4142_p4 = scmp.ne.s32.totalorder %s4794_s22, 1 }
  0x79   : > { %4458 = vmatpush1.bf16.msra.mxu1 %v4367_v7  ;;  %4368 = vmatpush1.bf16.msra.mxu0 %v4367_v7  ;;  %v474_v29 = vld [vmem:[%s7255_s1 + $0x88] sm:$0xff]  ;;  %v475_v31 = vld [vmem:[%s7255_s1 + $0x90] sm:$0xff]  ;;  %v480_v38 = vld [vmem:[%s7255_s1 + $0xb8] sm:$0xff]  ;;  %s6354_s11 = scalar_lea.vmem [#allocation2], %s4141_s18 }
  0x7a   : > { %4443 = vmatprep.subr.bf16.mxu1 %v4731_v4  ;;  %4369 = vmatprep.subr.bf16.mxu0 %v4731_v4  ;;  %v4388_v30 = vpack.c.bf16 %v474_v29, %v473_v28  ;;  %v4391_v33 = vpack.c.bf16 %v476_v32, %v475_v31  ;;  %v478_v35 = vld [vmem:[%s7255_s1 + $0xa8] sm:$0xff]  ;;  %v479_v37 = vld [vmem:[%s7255_s1 + $0xb0] sm:$0xff]  ;;  %v481_v40 = vld [vmem:[%s7255_s1 + $0xc0] sm:$0xff] }
  0x7b   : > { %756 = vmatprep.mubr.f32.mxu0 %v266_v23  ;;  %v4394_v36 = vpack.c.bf16 %v478_v35, %v477_v34  ;;  %v4397_v39 = vpack.c.bf16 %v480_v38, %v479_v37  ;;  %v482_v41 = vld [vmem:[%s7255_s1 + $0xc8] sm:$0xff]  ;;  %v483_v43 = vld [vmem:[%s7255_s1 + $0xd0] sm:$0xff]  ;;  %v484_v44 = vld [vmem:[%s7255_s1 + $0xd8] sm:$0xff] }
  0x7c   : > { %v4400_v42 = vpack.c.bf16 %v482_v41, %v481_v40  ;;  %v4403_v45 = vpack.c.bf16 %v484_v44, %v483_v43  ;;  %v485_v46 = vld [vmem:[%s7255_s1 + $0xe0] sm:$0xff]  ;;  %v486_v47 = vld [vmem:[%s7255_s1 + $0xe8] sm:$0xff]  ;;  %v487_v49 = vld [vmem:[%s7255_s1 + $0xf0] sm:$0xff] }
  0x7d   : > { %4459 = vmatpush1.bf16.msra.mxu1 %v4370_v10  ;;  %4371 = vmatpush1.bf16.msra.mxu0 %v4370_v10  ;;  %v4406_v48 = vpack.c.bf16 %v486_v47, %v485_v46  ;;  %v488_v50 = vld [vmem:[%s7255_s1 + $0xf8] sm:$0xff]  ;;  %v489_v51 = vld [vmem:[%s7255_s1 + $0x100] sm:$0xff]  ;;  %v490_v52 = vld [vmem:[%s7255_s1 + $0x108] sm:$0xff] }
  0x7e   : > { %4444 = vmatprep.subr.bf16.mxu1 %v4731_v4  ;;  %4372 = vmatprep.subr.bf16.mxu0 %v4731_v4  ;;  %v4409_v53 = vpack.c.bf16 %v488_v50, %v487_v49  ;;  %v4411_v54 = vpack.c.bf16 %v490_v52, %v489_v51  ;;  %v491_v55 = vld [vmem:[%s7255_s1 + $0x110] sm:$0xff]  ;;  %v492_v56 = vld [vmem:[%s7255_s1 + $0x118] sm:$0xff]  ;;  %v409_v57 = vld [vmem:[%s4936_s21 + $0x480] sm:$0xff] }
  0x7f   : > { %v413_v58 = vld [vmem:[%s4936_s21 + $0x4a0] sm:$0xff]  ;;  %v4415_v59 = vpack.c.bf16 %v492_v56, %v491_v55  ;;  %v412_v0 = vld [vmem:[%s4936_s21 + $0x498] sm:$0xff]  ;;  %vm5103_vm3 = vmpackc.low %vm688_vm1, %vm4732_vm2 }
  0x80   : > { %v493_v60 = vld [vmem:[%s7255_s1 + $0x120] sm:$0xff]  ;;  %v494_v61 = vld [vmem:[%s7255_s1 + $0x128] sm:$0xf]  ;;  %v415_v6 = vld [vmem:[%s4936_s21 + $0x4b0] sm:$0xff] }
  0x81   : > { %4460 = vmatpush1.bf16.msra.mxu1 %v4373_v14  ;;  %4374 = vmatpush1.bf16.msra.mxu0 %v4373_v14  ;;  %v265_v62 = vld [vmem:[%s4936_s21] sm:$0xff]  ;;  %v416_v1 = vld [vmem:[%s4936_s21 + $0x4b8] sm:$0xff]  ;;  %v4419_v2 = vpack.c.bf16 %v494_v61, %v493_v60  ;;  %v419_v7 = vld [vmem:[%s4936_s21 + $0x4d0] sm:$0xff] }
  0x82   : > { %4445 = vmatprep.subr.bf16.mxu1 %v4731_v4  ;;  %4375 = vmatprep.subr.bf16.mxu0 %v4731_v4  ;;  %v269_v63 = vld [vmem:[%s4936_s21 + $0x20] sm:$0xff]  ;;  %v272_v5 = vld [vmem:[%s4936_s21 + $0x38] sm:$0xff]  ;;  %v271_v8 = vld [vmem:[%s4936_s21 + $0x30] sm:$0xff] }
  0x83   : > { %v275_v9 = vld [vmem:[%s4936_s21 + $0x50] sm:$0xff]  ;;  %v418_v10 = vld [vmem:[%s4936_s21 + $0x4c8] sm:$0xff]  ;;  %v421_v14 = vld [vmem:[%s4936_s21 + $0x4e0] sm:$0xff] }
  0x84   : > { %v422_v11 = vld [vmem:[%s4936_s21 + $0x4e8] sm:$0xff]  ;;  %v425_v15 = vld [vmem:[%s4936_s21 + $0x500] sm:$0xff]  ;;  %v424_v18 = vld [vmem:[%s4936_s21 + $0x4f8] sm:$0xff] }
  0x85   : > { %4461 = vmatpush1.bf16.msra.mxu1 %v4376_v17  ;;  %4377 = vmatpush1.bf16.msra.mxu0 %v4376_v17  ;;  %v274_v12 = vld [vmem:[%s4936_s21 + $0x48] sm:$0xff]  ;;  %v277_v16 = vld [vmem:[%s4936_s21 + $0x60] sm:$0xff]  ;;  %v428_v19 = vld [vmem:[%s4936_s21 + $0x518] sm:$0xff] }
  0x86   : > { %4446 = vmatprep.subr.bf16.mxu1 %v4731_v4  ;;  %4378 = vmatprep.subr.bf16.mxu0 %v4731_v4  ;;  %v278_v13 = vld [vmem:[%s4936_s21 + $0x68] sm:$0xff]  ;;  %v281_v17 = vld [vmem:[%s4936_s21 + $0x80] sm:$0xff]  ;;  %v284_v21 = vld [vmem:[%s4936_s21 + $0x98] sm:$0xff] }
  0x87   : > { %v427_v22 = vld [vmem:[%s4936_s21 + $0x510] sm:$0xff]  ;;  %v430_v26 = vld [vmem:[%s4936_s21 + $0x528] sm:$0xff]  ;;  %v437_v31 = vld [vmem:[%s4936_s21 + $0x560] sm:$0xff] }
  0x88   : > { %v431_v23 = vld [vmem:[%s4936_s21 + $0x530] sm:$0xff]  ;;  %v286_v28 = vld [vmem:[%s4936_s21 + $0xa8] sm:$0xff]  ;;  %v289_v32 = vld [vmem:[%s4936_s21 + $0xc0] sm:$0xff] }
  0x89   : > { %4462 = vmatpush1.bf16.msra.mxu1 %v4379_v20  ;;  %4380 = vmatpush1.bf16.msra.mxu0 %v4379_v20  ;;  %v280_v20 = vld [vmem:[%s4936_s21 + $0x78] sm:$0xff]  ;;  %v287_v25 = vld [vmem:[%s4936_s21 + $0xb0] sm:$0xff]  ;;  %v290_v29 = vld [vmem:[%s4936_s21 + $0xc8] sm:$0xff] }
  0x8a   : > { %4447 = vmatprep.subr.bf16.mxu1 %v4731_v4  ;;  %4381 = vmatprep.subr.bf16.mxu0 %v4731_v4  ;;  %v436_v34 = vld [vmem:[%s4936_s21 + $0x558] sm:$0xff]  ;;  %v439_v38 = vld [vmem:[%s4936_s21 + $0x570] sm:$0xff]  ;;  %v446_v43 = vld [vmem:[%s4936_s21 + $0x5a8] sm:$0xff] }
  0x8b   : > { %v440_v35 = vld [vmem:[%s4936_s21 + $0x578] sm:$0xff]  ;;  %v295_v40 = vld [vmem:[%s4936_s21 + $0xf0] sm:$0xff]  ;;  %v298_v44 = vld [vmem:[%s4936_s21 + $0x108] sm:$0xff] }
  0x8c   : > { %v296_v37 = vld [vmem:[%s4936_s21 + $0xf8] sm:$0xff]  ;;  %v299_v41 = vld [vmem:[%s4936_s21 + $0x110] sm:$0xff]  ;;  %v445_v46 = vld [vmem:[%s4936_s21 + $0x5a0] sm:$0xff] }
  0x8d   : > { %4463 = vmatpush1.bf16.msra.mxu1 %v4382_v24  ;;  %4383 = vmatpush1.bf16.msra.mxu0 %v4382_v24  ;;  %v283_v24 = vld [vmem:[%s4936_s21 + $0x90] sm:$0xff]  ;;  %v449_v47 = vld [vmem:[%s4936_s21 + $0x5c0] sm:$0xff]  ;;  %v448_v50 = vld [vmem:[%s4936_s21 + $0x5b8] sm:$0xff] }
  0x8e   : > { %4448 = vmatprep.subr.bf16.mxu1 %v4731_v4  ;;  %4384 = vmatprep.subr.bf16.mxu0 %v4731_v4  ;;  %v305_v49 = vld [vmem:[%s4936_s21 + $0x140] sm:$0xff]  ;;  %v452_v51 = vld [vmem:[%s4936_s21 + $0x5d8] sm:$0xff]  ;;  %v455_v55 = vld [vmem:[%s4936_s21 + $0x5f0] sm:$0xff] }
  0x8f   : > { %v304_v52 = vld [vmem:[%s4936_s21 + $0x138] sm:$0xff]  ;;  %v307_v56 = vld [vmem:[%s4936_s21 + $0x150] sm:$0xff]  ;;  %v310_v60 = vld [vmem:[%s4936_s21 + $0x168] sm:$0xff] }
  0x90   : > { %v314_v61 = vld [vmem:[%s4936_s21 + $0x188] sm:$0xff]  ;;  %v279_v3 = vld [vmem:[%s4936_s21 + $0x70] sm:$0xff] }
  0x91   : > { %4464 = vmatpush1.bf16.msra.mxu1 %v4385_v27  ;;  %4386 = vmatpush1.bf16.msra.mxu0 %v4385_v27  ;;  %v434_v27 = vld [vmem:[%s4936_s21 + $0x548] sm:$0xff] }
  0x92   : > { %4449 = vmatprep.subr.bf16.mxu1 %v4731_v4  ;;  %4387 = vmatprep.subr.bf16.mxu0 %v4731_v4 }
  0x95   : > { %4465 = vmatpush1.bf16.msra.mxu1 %v4388_v30  ;;  %4389 = vmatpush1.bf16.msra.mxu0 %v4388_v30  ;;  %v433_v30 = vld [vmem:[%s4936_s21 + $0x540] sm:$0xff] }
  0x96   : > { %4450 = vmatprep.subr.bf16.mxu1 %v4731_v4  ;;  %4390 = vmatprep.subr.bf16.mxu0 %v4731_v4 }
  0x99   : > { %4466 = vmatpush1.bf16.msra.mxu1 %v4391_v33  ;;  %4392 = vmatpush1.bf16.msra.mxu0 %v4391_v33  ;;  %v293_v33 = vld [vmem:[%s4936_s21 + $0xe0] sm:$0xff] }
  0x9a   : > { %4451 = vmatprep.subr.bf16.mxu1 %v4731_v4  ;;  %4393 = vmatprep.subr.bf16.mxu0 %v4731_v4 }
  0x9d   : > { %4467 = vmatpush1.bf16.msra.mxu1 %v4394_v36  ;;  %4395 = vmatpush1.bf16.msra.mxu0 %v4394_v36  ;;  %v292_v36 = vld [vmem:[%s4936_s21 + $0xd8] sm:$0xff] }
  0x9e   : > { %4452 = vmatprep.subr.bf16.mxu1 %v4731_v4  ;;  %4396 = vmatprep.subr.bf16.mxu0 %v4731_v4 }
  0xa1   : > { %4468 = vmatpush1.bf16.msra.mxu1 %v4397_v39  ;;  %4398 = vmatpush1.bf16.msra.mxu0 %v4397_v39  ;;  %v443_v39 = vld [vmem:[%s4936_s21 + $0x590] sm:$0xff] }
  0xa2   : > { %4453 = vmatprep.subr.bf16.mxu1 %v4731_v4  ;;  %4399 = vmatprep.subr.bf16.mxu0 %v4731_v4 }
  0xa5   : > { %4469 = vmatpush1.bf16.msra.mxu1 %v4400_v42  ;;  %4401 = vmatpush1.bf16.msra.mxu0 %v4400_v42  ;;  %v442_v42 = vld [vmem:[%s4936_s21 + $0x588] sm:$0xff] }
  0xa6   : > { %4454 = vmatprep.subr.bf16.mxu1 %v4731_v4  ;;  %4402 = vmatprep.subr.bf16.mxu0 %v4731_v4 }
  0xa9   : > { %4470 = vmatpush1.bf16.msra.mxu1 %v4403_v45  ;;  %4404 = vmatpush1.bf16.msra.mxu0 %v4403_v45  ;;  %v302_v45 = vld [vmem:[%s4936_s21 + $0x128] sm:$0xff] }
  0xaa   : > { %4455 = vmatprep.subr.bf16.mxu1 %v4731_v4  ;;  %4405 = vmatprep.subr.bf16.mxu0 %v4731_v4 }
  0xad   : > { %4471 = vmatpush1.bf16.msra.mxu1 %v4406_v48  ;;  %4407 = vmatpush1.bf16.msra.mxu0 %v4406_v48  ;;  %v301_v48 = vld [vmem:[%s4936_s21 + $0x120] sm:$0xff] }
  0xae   : > { %4456 = vmatprep.subr.bf16.mxu1 %v4731_v4  ;;  %4408 = vmatprep.subr.bf16.mxu0 %v4731_v4  ;;  %v268_v4 = vld [vmem:[%s4936_s21 + $0x18] sm:$0xff] }
  0xb1   : > { %4472 = vmatpush1.bf16.msra.mxu1 %v4409_v53  ;;  %4410 = vmatpush1.bf16.msra.mxu0 %v4409_v53  ;;  %v308_v53 = vld [vmem:[%s4936_s21 + $0x158] sm:$0xff] }
  0xb2   : > { %4412 = vmatprep.subr.bf16.mxu1 %v4411_v54 }
  0xb4   : > { %997 = vmatmul.mubr.f32.vlgmr.msra.gmra.mrb[0].mxu1 %v409_v57  ;;  %757 = vmatmul.mubr.f32.vlgmr.msra.gmra.mrb[0].mxu0 %v265_v62  ;;  %v311_v57 = vld [vmem:[%s4936_s21 + $0x170] sm:$0xff]  ;;  %v270_v62 = vld [vmem:[%s4936_s21 + $0x28] sm:$0xff] }
  0xb5   : > { %4414 = vmatpush3.bf16.msra.mxu1 %v4411_v54  ;;  %1001 = vmatprep.mubr.f32.mxu1 %v413_v58  ;;  %v451_v54 = vld [vmem:[%s4936_s21 + $0x5d0] sm:$0xff]  ;;  %v454_v58 = vld [vmem:[%s4936_s21 + $0x5e8] sm:$0xff] }
  0xb6   : > { %4416 = vmatprep.subr.bf16.mxu1 %v4415_v59  ;;  %761 = vmatprep.mubr.f32.mxu0 %v269_v63  ;;  %v273_v63 = vld [vmem:[%s4936_s21 + $0x40] sm:$0xff] }
  0xb8   : > { %1002 = vmatmul.mubr.f32.gmra.mrb[2].mxu1 %v412_v0  ;;  %762 = vmatmul.mubr.f32.gmra.mrb[2].mxu0 %v268_v4  ;;  %v313_v0 = vld [vmem:[%s4936_s21 + $0x180] sm:$0xff]  ;;  %v316_v4 = vld [vmem:[%s4936_s21 + $0x198] sm:$0xff] }
  0xb9   : > { %1006 = vmatprep.mubr.f32.mxu1 %v416_v1  ;;  %4418 = vmatpush3.bf16.msra.mxu1 %v4415_v59  ;;  %v267_v59 = vld [vmem:[%s4936_s21 + $0x10] sm:$0xff]  ;;  %v317_v1 = vld [vmem:[%s4936_s21 + $0x1a0] sm:$0xff] }
  0xba   : > { %4421 = vmatprep.subr.msk.bf16.mxu1 %vm5103_vm3, %v4419_v2  ;;  %766 = vmatprep.mubr.f32.mxu0 %v272_v5  ;;  %v320_v5 = vld [vmem:[%s4936_s21 + $0x1b8] sm:$0xff] }
  0xbc   : > { %1007 = vmatmul.mubr.f32.gmra.mrb[4].mxu1 %v415_v6  ;;  %767 = vmatmul.mubr.f32.gmra.mrb[4].mxu0 %v271_v8  ;;  %v282_v6 = vld [vmem:[%s4936_s21 + $0x88] sm:$0xff]  ;;  %v319_v8 = vld [vmem:[%s4936_s21 + $0x1b0] sm:$0xff] }
  0xbd   : > { %1011 = vmatprep.mubr.f32.mxu1 %v419_v7  ;;  %4424 = vmatpush3.bf16.msk.msra.mxu1 %vm5103_vm3, %v4419_v2  ;;  %v276_v2 = vld [vmem:[%s4936_s21 + $0x58] sm:$0xff]  ;;  %v285_v7 = vld [vmem:[%s4936_s21 + $0xa0] sm:$0xff]  ;;  %vm3792_vm3 = vcmask 1041409  }
  0xbe   : > { %771 = vmatprep.mubr.f32.mxu0 %v275_v9  ;;  %v323_v9 = vld [vmem:[%s4936_s21 + $0x1d0] sm:$0xff] }
  0xc0   : > { %1012 = vmatmul.mubr.f32.gmra.mrb[6].mxu1 %v418_v10  ;;  %772 = vmatmul.mubr.f32.gmra.mrb[6].mxu0 %v274_v12  ;;  %v288_v10 = vld [vmem:[%s4936_s21 + $0xb8] sm:$0xff]  ;;  %v322_v12 = vld [vmem:[%s4936_s21 + $0x1c8] sm:$0xff] }
  0xc1   : > { %1016 = vmatprep.mubr.f32.mxu1 %v422_v11  ;;  %776 = vmatprep.mubr.f32.mxu0 %v278_v13  ;;  %v291_v11 = vld [vmem:[%s4936_s21 + $0xd0] sm:$0xff]  ;;  %v326_v13 = vld [vmem:[%s4936_s21 + $0x1e8] sm:$0xff] }
  0xc4   : > { %1017 = vmatmul.mubr.f32.gmra.mrb[8].mxu1 %v421_v14  ;;  %777 = vmatmul.mubr.f32.gmra.mrb[8].mxu0 %v277_v16  ;;  %v294_v14 = vld [vmem:[%s4936_s21 + $0xe8] sm:$0xff]  ;;  %v300_v16 = vld [vmem:[%s4936_s21 + $0x118] sm:$0xff] }
  0xc5   : > { %1021 = vmatprep.mubr.f32.mxu1 %v425_v15  ;;  %781 = vmatprep.mubr.f32.mxu0 %v281_v17  ;;  %v297_v15 = vld [vmem:[%s4936_s21 + $0x100] sm:$0xff]  ;;  %v303_v17 = vld [vmem:[%s4936_s21 + $0x130] sm:$0xff] }
  0xc8   : > { %1022 = vmatmul.mubr.f32.gmra.mrb[10].mxu1 %v424_v18  ;;  %782 = vmatmul.mubr.f32.gmra.mrb[10].mxu0 %v280_v20  ;;  %v325_v18 = vld [vmem:[%s4936_s21 + $0x1e0] sm:$0xff]  ;;  %v306_v20 = vld [vmem:[%s4936_s21 + $0x148] sm:$0xff] }
  0xc9   : > { %1026 = vmatprep.mubr.f32.mxu1 %v428_v19  ;;  %786 = vmatprep.mubr.f32.mxu0 %v284_v21  ;;  %v329_v19 = vld [vmem:[%s4936_s21 + $0x200] sm:$0xff] }
  0xca   : > { %v309_v21 = vld [vmem:[%s4936_s21 + $0x160] sm:$0xff] }
  0xcc   : > { %1027 = vmatmul.mubr.f32.gmra.mrb[12].mxu1 %v427_v22  ;;  %787 = vmatmul.mubr.f32.gmra.mrb[12].mxu0 %v283_v24  ;;  %v328_v22 = vld [vmem:[%s4936_s21 + $0x1f8] sm:$0xff] }
  0xcd   : > { %1031 = vmatprep.mubr.f32.mxu1 %v431_v23  ;;  %791 = vmatprep.mubr.f32.mxu0 %v287_v25  ;;  %v332_v23 = vld [vmem:[%s4936_s21 + $0x218] sm:$0xff]  ;;  %v315_v25 = vld [vmem:[%s4936_s21 + $0x190] sm:$0xff] }
  0xce   : > { %v312_v24 = vld [vmem:[%s4936_s21 + $0x178] sm:$0xff] }
  0xd0   : > { %1032 = vmatmul.mubr.f32.gmra.mrb[14].mxu1 %v430_v26  ;;  %792 = vmatmul.mubr.f32.gmra.mrb[14].mxu0 %v286_v28  ;;  %v331_v26 = vld [vmem:[%s4936_s21 + $0x210] sm:$0xff]  ;;  %v318_v28 = vld [vmem:[%s4936_s21 + $0x1a8] sm:$0xff] }
  0xd1   : > { %1036 = vmatprep.mubr.f32.mxu1 %v434_v27  ;;  %796 = vmatprep.mubr.f32.mxu0 %v290_v29  ;;  %v335_v27 = vld [vmem:[%s4936_s21 + $0x230] sm:$0xff]  ;;  %v321_v29 = vld [vmem:[%s4936_s21 + $0x1c0] sm:$0xff] }
  0xd4   : > { %1037 = vmatmul.mubr.f32.gmra.mrb[16].mxu1 %v433_v30  ;;  %797 = vmatmul.mubr.f32.gmra.mrb[16].mxu0 %v289_v32  ;;  %v334_v30 = vld [vmem:[%s4936_s21 + $0x228] sm:$0xff]  ;;  %v327_v32 = vld [vmem:[%s4936_s21 + $0x1f0] sm:$0xff] }
  0xd5   : > { %1041 = vmatprep.mubr.f32.mxu1 %v437_v31  ;;  %801 = vmatprep.mubr.f32.mxu0 %v293_v33  ;;  %v324_v31 = vld [vmem:[%s4936_s21 + $0x1d8] sm:$0xff]  ;;  %v330_v33 = vld [vmem:[%s4936_s21 + $0x208] sm:$0xff] }
  0xd8   : > { %1042 = vmatmul.mubr.f32.gmra.mrb[18].mxu1 %v436_v34  ;;  %802 = vmatmul.mubr.f32.gmra.mrb[18].mxu0 %v292_v36  ;;  %v333_v34 = vld [vmem:[%s4936_s21 + $0x220] sm:$0xff]  ;;  %v339_v36 = vld [vmem:[%s4936_s21 + $0x250] sm:$0xff] }
  0xd9   : > { %1046 = vmatprep.mubr.f32.mxu1 %v440_v35  ;;  %806 = vmatprep.mubr.f32.mxu0 %v296_v37  ;;  %v336_v35 = vld [vmem:[%s4936_s21 + $0x238] sm:$0xff]  ;;  %v342_v37 = vld [vmem:[%s4936_s21 + $0x268] sm:$0xff] }
  0xdc   : > { %1047 = vmatmul.mubr.f32.gmra.mrb[20].mxu1 %v439_v38  ;;  %807 = vmatmul.mubr.f32.gmra.mrb[20].mxu0 %v295_v40  ;;  %v345_v38 = vld [vmem:[%s4936_s21 + $0x280] sm:$0xff]  ;;  %v348_v40 = vld [vmem:[%s4936_s21 + $0x298] sm:$0xff] }
  0xdd   : > { %1051 = vmatprep.mubr.f32.mxu1 %v443_v39  ;;  %811 = vmatprep.mubr.f32.mxu0 %v299_v41  ;;  %v338_v39 = vld [vmem:[%s4936_s21 + $0x248] sm:$0xff]  ;;  %v351_v41 = vld [vmem:[%s4936_s21 + $0x2b0] sm:$0xff] }
  0xe0   : > { %1052 = vmatmul.mubr.f32.gmra.mrb[22].mxu1 %v442_v42  ;;  %812 = vmatmul.mubr.f32.gmra.mrb[22].mxu0 %v298_v44  ;;  %v337_v42 = vld [vmem:[%s4936_s21 + $0x240] sm:$0xff]  ;;  %v354_v44 = vld [vmem:[%s4936_s21 + $0x2c8] sm:$0xff] }
  0xe1   : > { %1056 = vmatprep.mubr.f32.mxu1 %v446_v43  ;;  %816 = vmatprep.mubr.f32.mxu0 %v302_v45  ;;  %v341_v43 = vld [vmem:[%s4936_s21 + $0x260] sm:$0xff] }
  0xe2   : > { %v357_v45 = vld [vmem:[%s4936_s21 + $0x2e0] sm:$0xff] }
  0xe4   : > { %1057 = vmatmul.mubr.f32.gmra.mrb[24].mxu1 %v445_v46  ;;  %817 = vmatmul.mubr.f32.gmra.mrb[24].mxu0 %v301_v48  ;;  %v340_v46 = vld [vmem:[%s4936_s21 + $0x258] sm:$0xff] }
  0xe5   : > { %1061 = vmatprep.mubr.f32.mxu1 %v449_v47  ;;  %821 = vmatprep.mubr.f32.mxu0 %v305_v49  ;;  %v344_v47 = vld [vmem:[%s4936_s21 + $0x278] sm:$0xff]  ;;  %v363_v49 = vld [vmem:[%s4936_s21 + $0x310] sm:$0xff] }
  0xe6   : > { %v360_v48 = vld [vmem:[%s4936_s21 + $0x2f8] sm:$0xff] }
  0xe8   : > { %1062 = vmatmul.mubr.f32.gmra.mrb[26].mxu1 %v448_v50  ;;  %822 = vmatmul.mubr.f32.gmra.mrb[26].mxu0 %v304_v52  ;;  %v343_v50 = vld [vmem:[%s4936_s21 + $0x270] sm:$0xff]  ;;  %v366_v52 = vld [vmem:[%s4936_s21 + $0x328] sm:$0xff] }
  0xe9   : > { %1066 = vmatprep.mubr.f32.mxu1 %v452_v51  ;;  %826 = vmatprep.mubr.f32.mxu0 %v308_v53  ;;  %v347_v51 = vld [vmem:[%s4936_s21 + $0x290] sm:$0xff]  ;;  %v369_v53 = vld [vmem:[%s4936_s21 + $0x340] sm:$0xff] }
  0xec   : > { %1067 = vmatmul.mubr.f32.gmra.mrb[28].mxu1 %v451_v54  ;;  %827 = vmatmul.mubr.f32.gmra.mrb[28].mxu0 %v307_v56  ;;  %v346_v54 = vld [vmem:[%s4936_s21 + $0x288] sm:$0xff]  ;;  %v375_v56 = vld [vmem:[%s4936_s21 + $0x370] sm:$0xff] }
  0xed   : > { %1071 = vmatprep.mubr.f32.mxu1 %v455_v55  ;;  %831 = vmatprep.mubr.f32.mxu0 %v311_v57  ;;  %v372_v55 = vld [vmem:[%s4936_s21 + $0x358] sm:$0xff]  ;;  %v378_v57 = vld [vmem:[%s4936_s21 + $0x388] sm:$0xff] }
  0xf0   : > { %1072 = vmatmul.mubr.f32.gmra.mrb[30].mxu1 %v454_v58  ;;  %832 = vmatmul.mubr.f32.gmra.mrb[30].mxu0 %v310_v60  ;;  %v381_v58 = vld [vmem:[%s4936_s21 + $0x3a0] sm:$0xff]  ;;  %v387_v60 = vld [vmem:[%s4936_s21 + $0x3d0] sm:$0xff] }
  0xf1   : > { %4248 = vmatprep.mubr.msk.f32.mxu1 %vm495_vm4, %v267_v59  ;;  %836 = vmatprep.mubr.f32.mxu0 %v314_v61  ;;  %v384_v59 = vld [vmem:[%s4936_s21 + $0x3b8] sm:$0xff]  ;;  %v390_v61 = vld [vmem:[%s4936_s21 + $0x3e8] sm:$0xff] }
  0xf4   : > { %4249 = vmatmul.mubr.msk.f32.vlgmr.msra.gmra.mrb[32].mxu1 %vm495_vm4, %v270_v62  ;;  %837 = vmatmul.mubr.f32.gmra.mrb[32].mxu0 %v313_v0  ;;  %v393_v62 = vld [vmem:[%s4936_s21 + $0x400] sm:$0xff]  ;;  %v396_v0 = vld [vmem:[%s4936_s21 + $0x418] sm:$0xff] }
  0xf5   : > { %4251 = vmatprep.mubr.msk.f32.mxu1 %vm495_vm4, %v273_v63  ;;  %841 = vmatprep.mubr.f32.mxu0 %v317_v1  ;;  %v350_v63 = vld [vmem:[%s4936_s21 + $0x2a8] sm:$0xff]  ;;  %v399_v1 = vld [vmem:[%s4936_s21 + $0x430] sm:$0xff] }
  0xf8   : > { %4252 = vmatmul.mubr.msk.f32.gmra.mrb[34].mxu1 %vm495_vm4, %v276_v2  ;;  %842 = vmatmul.mubr.f32.gmra.mrb[34].mxu0 %v316_v4  ;;  %v349_v2 = vld [vmem:[%s4936_s21 + $0x2a0] sm:$0xff] }
  0xf9   : > { %4254 = vmatprep.mubr.msk.f32.mxu1 %vm495_vm4, %v279_v3  ;;  %846 = vmatprep.mubr.f32.mxu0 %v320_v5  ;;  %v402_v3 = vld [vmem:[%s4936_s21 + $0x448] sm:$0xff]  ;;  %v353_v4 = vld [vmem:[%s4936_s21 + $0x2c0] sm:$0xff] }
  0xfa   : > { %v405_v5 = vld [vmem:[%s4936_s21 + $0x460] sm:$0xff] }
  0xfc   : > { %4255 = vmatmul.mubr.msk.f32.gmra.mrb[36].mxu1 %vm495_vm4, %v282_v6  ;;  %847 = vmatmul.mubr.f32.gmra.mrb[36].mxu0 %v319_v8  ;;  %v352_v6 = vld [vmem:[%s4936_s21 + $0x2b8] sm:$0xff] }
  0xfd   : > { %4257 = vmatprep.mubr.msk.f32.mxu1 %vm495_vm4, %v285_v7  ;;  %851 = vmatprep.mubr.f32.mxu0 %v323_v9  ;;  %v408_v7 = vld [vmem:[%s4936_s21 + $0x478] sm:$0xff]  ;;  %v411_v9 = vld [vmem:[%s4936_s21 + $0x490] sm:$0xff] }
  0xfe   : > { %v356_v8 = vld [vmem:[%s4936_s21 + $0x2d8] sm:$0xff] }
 0x100   : > { %4258 = vmatmul.mubr.msk.f32.gmra.mrb[38].mxu1 %vm495_vm4, %v288_v10  ;;  %852 = vmatmul.mubr.f32.gmra.mrb[38].mxu0 %v322_v12  ;;  %v355_v10 = vld [vmem:[%s4936_s21 + $0x2d0] sm:$0xff] }
 0x101   : > { %4260 = vmatprep.mubr.msk.f32.mxu1 %vm495_vm4, %v291_v11  ;;  %856 = vmatprep.mubr.f32.mxu0 %v326_v13  ;;  %v414_v11 = vld [vmem:[%s4936_s21 + $0x4a8] sm:$0xff]  ;;  %v359_v12 = vld [vmem:[%s4936_s21 + $0x2f0] sm:$0xff]  ;;  %v417_v13 = vld [vmem:[%s4936_s21 + $0x4c0] sm:$0xff] }
 0x104   : > { %4261 = vmatmul.mubr.msk.f32.gmra.mrb[40].mxu1 %vm495_vm4, %v294_v14  ;;  %857 = vmatmul.mubr.f32.gmra.mrb[40].mxu0 %v325_v18  ;;  %v358_v14 = vld [vmem:[%s4936_s21 + $0x2e8] sm:$0xff]  ;;  %v429_v18 = vld [vmem:[%s4936_s21 + $0x520] sm:$0xff] }
 0x105   : > { %4263 = vmatprep.mubr.msk.f32.mxu1 %vm495_vm4, %v297_v15  ;;  %861 = vmatprep.mubr.f32.mxu0 %v329_v19  ;;  %v420_v15 = vld [vmem:[%s4936_s21 + $0x4d8] sm:$0xff] }
 0x106   : > { %v432_v19 = vld [vmem:[%s4936_s21 + $0x538] sm:$0xff] }
 0x108   : > { %4264 = vmatmul.mubr.msk.f32.gmra.mrb[42].mxu1 %vm495_vm4, %v300_v16  ;;  %862 = vmatmul.mubr.f32.gmra.mrb[42].mxu0 %v328_v22  ;;  %v423_v16 = vld [vmem:[%s4936_s21 + $0x4f0] sm:$0xff]  ;;  %v441_v22 = vld [vmem:[%s4936_s21 + $0x580] sm:$0xff] }
 0x109   : > { %4266 = vmatprep.mubr.msk.f32.mxu1 %vm495_vm4, %v303_v17  ;;  %866 = vmatprep.mubr.f32.mxu0 %v332_v23  ;;  %v426_v17 = vld [vmem:[%s4936_s21 + $0x508] sm:$0xff]  ;;  %v444_v23 = vld [vmem:[%s4936_s21 + $0x598] sm:$0xff] }
 0x10c   : > { %4267 = vmatmul.mubr.msk.f32.gmra.mrb[44].mxu1 %vm495_vm4, %v306_v20  ;;  %867 = vmatmul.mubr.f32.gmra.mrb[44].mxu0 %v331_v26  ;;  %v435_v20 = vld [vmem:[%s4936_s21 + $0x550] sm:$0xff]  ;;  %v361_v26 = vld [vmem:[%s4936_s21 + $0x300] sm:$0xff] }
 0x10d   : > { %4269 = vmatprep.mubr.msk.f32.mxu1 %vm495_vm4, %v309_v21  ;;  %871 = vmatprep.mubr.f32.mxu0 %v335_v27  ;;  %v438_v21 = vld [vmem:[%s4936_s21 + $0x568] sm:$0xff] }
 0x10e   : > { %v450_v27 = vld [vmem:[%s4936_s21 + $0x5c8] sm:$0xff] }
 0x110   : > { %4270 = vmatmul.mubr.msk.f32.gmra.mrb[46].mxu1 %vm495_vm4, %v312_v24  ;;  %872 = vmatmul.mubr.f32.gmra.mrb[46].mxu0 %v334_v30  ;;  %v447_v24 = vld [vmem:[%s4936_s21 + $0x5b0] sm:$0xff]  ;;  %v364_v30 = vld [vmem:[%s4936_s21 + $0x318] sm:$0xff] }
 0x111   : > { %4272 = vmatprep.mubr.msk.f32.mxu1 %vm495_vm4, %v315_v25  ;;  %876 = vmatprep.mubr.f32.mxu0 %v338_v39  ;;  %v362_v25 = vld [vmem:[%s4936_s21 + $0x308] sm:$0xff]  ;;  %v376_v39 = vld [vmem:[%s4936_s21 + $0x378] sm:$0xff] }
 0x114   : > { %4273 = vmatmul.mubr.msk.f32.gmra.mrb[48].mxu1 %vm495_vm4, %v318_v28  ;;  %877 = vmatmul.mubr.f32.gmra.mrb[48].mxu0 %v337_v42  ;;  %v453_v28 = vld [vmem:[%s4936_s21 + $0x5e0] sm:$0xff] }
 0x115   : > { %4275 = vmatprep.mubr.msk.f32.mxu1 %vm495_vm4, %v321_v29  ;;  %881 = vmatprep.mubr.f32.mxu0 %v341_v43  ;;  %v365_v29 = vld [vmem:[%s4936_s21 + $0x320] sm:$0xff] }
 0x118   : > { %4276 = vmatmul.mubr.msk.f32.gmra.mrb[50].mxu1 %vm495_vm4, %v324_v31  ;;  %882 = vmatmul.mubr.f32.gmra.mrb[50].mxu0 %v340_v46  ;;  %v456_v31 = vld [vmem:[%s4936_s21 + $0x5f8] sm:$0xff]  ;;  %v383_v46 = vld [vmem:[%s4936_s21 + $0x3b0] sm:$0xff] }
 0x119   : > { %4278 = vmatprep.mubr.msk.f32.mxu1 %vm495_vm4, %v327_v32  ;;  %886 = vmatprep.mubr.f32.mxu0 %v344_v47  ;;  %v368_v32 = vld [vmem:[%s4936_s21 + $0x338] sm:$0xff] }
 0x11c   : > { %4279 = vmatmul.mubr.msk.f32.gmra.mrb[52].mxu1 %vm495_vm4, %v330_v33  ;;  %887 = vmatmul.mubr.f32.gmra.mrb[52].mxu0 %v343_v50  ;;  %v367_v33 = vld [vmem:[%s4936_s21 + $0x330] sm:$0xff] }
 0x11d   : > { %4281 = vmatprep.mubr.msk.f32.mxu1 %vm495_vm4, %v333_v34  ;;  %891 = vmatprep.mubr.f32.mxu0 %v347_v51  ;;  %v371_v34 = vld [vmem:[%s4936_s21 + $0x350] sm:$0xff]  ;;  %v382_v51 = vld [vmem:[%s4936_s21 + $0x3a8] sm:$0xff] }
 0x120   : > { %4282 = vmatmul.mubr.msk.f32.gmra.mrb[54].mxu1 %vm495_vm4, %v336_v35  ;;  %892 = vmatmul.mubr.f32.gmra.mrb[54].mxu0 %v346_v54  ;;  %v370_v35 = vld [vmem:[%s4936_s21 + $0x348] sm:$0xff] }
 0x121   : > { %4284 = vmatprep.mubr.msk.f32.mxu1 %vm495_vm4, %v339_v36  ;;  %896 = vmatprep.mubr.f32.mxu0 %v350_v63  ;;  %v374_v36 = vld [vmem:[%s4936_s21 + $0x368] sm:$0xff]  ;;  %v388_v63 = vld [vmem:[%s4936_s21 + $0x3d8] sm:$0xff] }
 0x124   : > { %4285 = vmatmul.mubr.msk.f32.gmra.mrb[56].mxu1 %vm495_vm4, %v342_v37  ;;  %897 = vmatmul.mubr.f32.gmra.mrb[56].mxu0 %v349_v2  ;;  %v373_v37 = vld [vmem:[%s4936_s21 + $0x360] sm:$0xff] }
 0x125   : > { %4287 = vmatprep.mubr.msk.f32.mxu1 %vm495_vm4, %v345_v38  ;;  %901 = vmatprep.mubr.f32.mxu0 %v353_v4  ;;  %v377_v38 = vld [vmem:[%s4936_s21 + $0x380] sm:$0xff] }
 0x128   : > { %4288 = vmatmul.mubr.msk.f32.gmra.mrb[58].mxu1 %vm495_vm4, %v348_v40  ;;  %902 = vmatmul.mubr.f32.gmra.mrb[58].mxu0 %v352_v6  ;;  %v380_v40 = vld [vmem:[%s4936_s21 + $0x398] sm:$0xff]  ;;  %v395_v6 = vld [vmem:[%s4936_s21 + $0x410] sm:$0xff] }
 0x129   : > { %4290 = vmatprep.mubr.msk.f32.mxu1 %vm495_vm4, %v351_v41  ;;  %906 = vmatprep.mubr.f32.mxu0 %v356_v8 }
 0x12c   : > { %4291 = vmatmul.mubr.msk.f32.gmra.mrb[60].mxu1 %vm495_vm4, %v354_v44  ;;  %907 = vmatmul.mubr.f32.gmra.mrb[60].mxu0 %v355_v10 }
 0x12d   : > { %4293 = vmatprep.mubr.msk.f32.mxu1 %vm495_vm4, %v357_v45  ;;  %911 = vmatprep.mubr.f32.mxu0 %v359_v12  ;;  %v379_v45 = vld [vmem:[%s4936_s21 + $0x390] sm:$0xff]  ;;  %v398_v12 = vld [vmem:[%s4936_s21 + $0x428] sm:$0xff] }
 0x130   : > { %4294 = vmatmul.mubr.msk.f32.gmra.mrb[62].mxu1 %vm495_vm4, %v360_v48  ;;  %912 = vmatmul.mubr.f32.gmra.mrb[62].mxu0 %v358_v14 }
 0x131   : > { %4296 = vmatprep.mubr.msk.f32.mxu1 %vm495_vm4, %v363_v49  ;;  %916 = vmatprep.mubr.f32.mxu0 %v362_v25 }
 0x134   : > { %4297 = vmatmul.mubr.msk.f32.gmra.mrb[64].mxu1 %vm495_vm4, %v366_v52  ;;  %917 = vmatmul.mubr.f32.gmra.mrb[64].mxu0 %v361_v26  ;;  %v386_v52 = vld [vmem:[%s4936_s21 + $0x3c8] sm:$0xff] }
 0x135   : > { %4299 = vmatprep.mubr.msk.f32.mxu1 %vm495_vm4, %v369_v53  ;;  %921 = vmatprep.mubr.f32.mxu0 %v365_v29  ;;  %v403_v29 = vld [vmem:[%s4936_s21 + $0x450] sm:$0xff] }
 0x138   : > { %4300 = vmatmul.mubr.msk.f32.gmra.mrb[66].mxu1 %vm495_vm4, %v372_v55  ;;  %922 = vmatmul.mubr.f32.gmra.mrb[66].mxu0 %v364_v30 }
 0x139   : > { %4302 = vmatprep.mubr.msk.f32.mxu1 %vm495_vm4, %v375_v56  ;;  %926 = vmatprep.mubr.f32.mxu0 %v368_v32 }
 0x13c   : > { %4303 = vmatmul.mubr.msk.f32.gmra.mrb[68].mxu1 %vm495_vm4, %v378_v57  ;;  %927 = vmatmul.mubr.f32.gmra.mrb[68].mxu0 %v367_v33  ;;  %v385_v57 = vld [vmem:[%s4936_s21 + $0x3c0] sm:$0xff]  ;;  %v407_v33 = vld [vmem:[%s4936_s21 + $0x470] sm:$0xff] }
 0x13d   : > { %4305 = vmatprep.mubr.msk.f32.mxu1 %vm495_vm4, %v381_v58  ;;  %931 = vmatprep.mubr.f32.mxu0 %v371_v34  ;;  %v389_v58 = vld [vmem:[%s4936_s21 + $0x3e0] sm:$0xff] }
 0x140   : > { %4306 = vmatmul.mubr.msk.f32.gmra.mrb[70].mxu1 %vm495_vm4, %v384_v59  ;;  %932 = vmatmul.mubr.f32.gmra.mrb[70].mxu0 %v370_v35  ;;  %v406_v35 = vld [vmem:[%s4936_s21 + $0x468] sm:$0xff] }
 0x141   : > { %4308 = vmatprep.mubr.msk.f32.mxu1 %vm495_vm4, %v387_v60  ;;  %936 = vmatprep.mubr.f32.mxu0 %v374_v36 }
 0x144   : > { %4309 = vmatmul.mubr.msk.f32.gmra.mrb[72].mxu1 %vm495_vm4, %v390_v61  ;;  %937 = vmatmul.mubr.f32.gmra.mrb[72].mxu0 %v373_v37 }
 0x145   : > { %4311 = vmatprep.mubr.msk.f32.mxu1 %vm495_vm4, %v393_v62  ;;  %941 = vmatprep.mubr.f32.mxu0 %v377_v38 }
 0x148   : > { %4312 = vmatmul.mubr.msk.f32.gmra.mrb[74].mxu1 %vm495_vm4, %v396_v0  ;;  %942 = vmatmul.mubr.f32.gmra.mrb[74].mxu0 %v376_v39  ;;  %v392_v0 = vld [vmem:[%s4936_s21 + $0x3f8] sm:$0xff] }
 0x149   : > { %4314 = vmatprep.mubr.msk.f32.mxu1 %vm495_vm4, %v399_v1  ;;  %946 = vmatprep.mubr.f32.mxu0 %v380_v40 }
 0x14c   : > { %4315 = vmatmul.mubr.msk.f32.gmra.mrb[76].mxu1 %vm495_vm4, %v402_v3  ;;  %947 = vmatmul.mubr.f32.gmra.mrb[76].mxu0 %v379_v45 }
 0x14d   : > { %4317 = vmatprep.mubr.msk.f32.mxu1 %vm495_vm4, %v405_v5  ;;  %951 = vmatprep.mubr.f32.mxu0 %v383_v46  ;;  %v391_v5 = vld [vmem:[%s4936_s21 + $0x3f0] sm:$0xff] }
 0x150   : > { %4318 = vmatmul.mubr.msk.f32.gmra.mrb[78].mxu1 %vm495_vm4, %v408_v7  ;;  %952 = vmatmul.mubr.f32.gmra.mrb[78].mxu0 %v382_v51 }
 0x151   : > { %4320 = vmatprep.mubr.msk.f32.mxu1 %vm495_vm4, %v411_v9  ;;  %956 = vmatprep.mubr.f32.mxu0 %v386_v52 }
 0x154   : > { %4321 = vmatmul.mubr.msk.f32.gmra.mrb[80].mxu1 %vm495_vm4, %v414_v11  ;;  %957 = vmatmul.mubr.f32.gmra.mrb[80].mxu0 %v385_v57  ;;  %v394_v11 = vld [vmem:[%s4936_s21 + $0x408] sm:$0xff] }
 0x155   : > { %4323 = vmatprep.mubr.msk.f32.mxu1 %vm495_vm4, %v417_v13  ;;  %961 = vmatprep.mubr.f32.mxu0 %v389_v58 }
 0x158   : > { %4324 = vmatmul.mubr.msk.f32.gmra.mrb[82].mxu1 %vm495_vm4, %v420_v15  ;;  %962 = vmatmul.mubr.f32.gmra.mrb[82].mxu0 %v388_v63 }
 0x159   : > { %4326 = vmatprep.mubr.msk.f32.mxu1 %vm495_vm4, %v423_v16  ;;  %966 = vmatprep.mubr.f32.mxu0 %v392_v0 }
 0x15c   : > { %4327 = vmatmul.mubr.msk.f32.gmra.mrb[84].mxu1 %vm495_vm4, %v426_v17  ;;  %967 = vmatmul.mubr.f32.gmra.mrb[84].mxu0 %v391_v5  ;;  %v397_v17 = vld [vmem:[%s4936_s21 + $0x420] sm:$0xff] }
 0x15d   : > { %4329 = vmatprep.mubr.msk.f32.mxu1 %vm495_vm4, %v429_v18  ;;  %971 = vmatprep.mubr.f32.mxu0 %v395_v6 }
 0x160   : > { %4330 = vmatmul.mubr.msk.f32.gmra.mrb[86].mxu1 %vm495_vm4, %v432_v19  ;;  %972 = vmatmul.mubr.f32.gmra.mrb[86].mxu0 %v394_v11  ;;  %v401_v19 = vld [vmem:[%s4936_s21 + $0x440] sm:$0xff] }
 0x161   : > { %4332 = vmatprep.mubr.msk.f32.mxu1 %vm495_vm4, %v435_v20  ;;  %976 = vmatprep.mubr.f32.mxu0 %v398_v12 }
 0x164   : > { %4333 = vmatmul.mubr.msk.f32.gmra.mrb[88].mxu1 %vm495_vm4, %v438_v21  ;;  %977 = vmatmul.mubr.f32.gmra.mrb[88].mxu0 %v397_v17 }
 0x165   : > { %4335 = vmatprep.mubr.msk.f32.mxu1 %vm495_vm4, %v441_v22  ;;  %981 = vmatprep.mubr.f32.mxu0 %v401_v19 }
 0x168   : > { %4336 = vmatmul.mubr.msk.f32.gmra.mrb[90].mxu1 %vm495_vm4, %v444_v23  ;;  %v400_v23 = vld [vmem:[%s4936_s21 + $0x438] sm:$0xff] }
 0x169   : > { %4338 = vmatprep.mubr.msk.f32.mxu1 %vm495_vm4, %v447_v24  ;;  %982 = vmatmul.mubr.f32.gmra.mrb[90].mxu0 %v400_v23 }
 0x16c   : > { %4339 = vmatmul.mubr.msk.f32.gmra.mrb[92].mxu1 %vm495_vm4, %v450_v27  ;;  %v404_v27 = vld [vmem:[%s4936_s21 + $0x458] sm:$0xff]  ;;  %s4733_s21 = smov 96  }
 0x16d   : > { %4341 = vmatprep.mubr.msk.f32.mxu1 %vm495_vm4, %v453_v28  ;;  %986 = vmatprep.mubr.f32.mxu0 %v404_v27 }
 0x16e   : > { %987 = vmatmul.mubr.f32.gmra.mrb[92].mxu0 %v403_v29 }
 0x16f   : > { %991 = vmatprep.mubr.f32.mxu0 %v407_v33 }
 0x170   : > { %4342 = vmatmul.mubr.msk.f32.gmra.mrb[94].mxu1 %vm495_vm4, %v456_v31  ;;  %vm3794_vm4 = vcmask 1042434  }
 0x172   : > { %992 = vmatmul.mubr.f32.gmra.mrb[94].mxu0 %v406_v35 }
 0x187   : > { %v5340_v41 = vpop.f32.mrb[0].mxu1  ;;  %v5342_v43 = vpop.f32.mrb[0].mxu0 }
 0x188   : > { %v1000_v42 = vpop.f32.mrb[1].mxu1  ;;  %v760_v44 = vpop.f32.mrb[1].mxu0 }
 0x18b   : > { %v5346_v47 = vpop.f32.mrb[2].mxu1  ;;  %v5348_v49 = vpop.f32.mrb[2].mxu0 }
 0x18c   : > { %v1005_v48 = vpop.f32.mrb[3].mxu1  ;;  %v765_v50 = vpop.f32.mrb[3].mxu0 }
 0x18f   : > { %v5352_v53 = vpop.f32.mrb[4].mxu1  ;;  %v5354_v55 = vpop.f32.mrb[4].mxu0 }
 0x190   : > { %v1010_v54 = vpop.f32.mrb[5].mxu1  ;;  %v770_v56 = vpop.f32.mrb[5].mxu0 }
 0x193   : > { %v5358_v59 = vpop.f32.mrb[6].mxu1  ;;  %v5360_v61 = vpop.f32.mrb[6].mxu0 }
 0x194   : > { %v1015_v60 = vpop.f32.mrb[7].mxu1  ;;  %v775_v62 = vpop.f32.mrb[7].mxu0 }
 0x197   : > { %v5364_v1 = vpop.f32.mrb[8].mxu1  ;;  %v5366_v3 = vpop.f32.mrb[8].mxu0 }
 0x198   : > { %v1020_v2 = vpop.f32.mrb[9].mxu1  ;;  %v780_v4 = vpop.f32.mrb[9].mxu0 }
 0x19b   : > { %v5370_v7 = vpop.f32.mrb[10].mxu1  ;;  %v5372_v9 = vpop.f32.mrb[10].mxu0 }
 0x19c   : > { %v1025_v8 = vpop.f32.mrb[11].mxu1  ;;  %v785_v10 = vpop.f32.mrb[11].mxu0 }
 0x19f   : > { %v5376_v13 = vpop.f32.mrb[12].mxu1  ;;  %v5378_v15 = vpop.f32.mrb[12].mxu0 }
 0x1a0   : > { %v1030_v14 = vpop.f32.mrb[13].mxu1  ;;  %v790_v16 = vpop.f32.mrb[13].mxu0 }
 0x1a3   : > { %v5381_v18 = vpop.f32.mrb[14].mxu1  ;;  %v5384_v21 = vpop.f32.mrb[14].mxu0 }
 0x1a4   : > { %v1035_v20 = vpop.f32.mrb[15].mxu1  ;;  %v795_v22 = vpop.f32.mrb[15].mxu0 }
 0x1a7   : > { %v5387_v24 = vpop.f32.mrb[16].mxu1  ;;  %v5389_v26 = vpop.f32.mrb[16].mxu0 }
 0x1a8   : > { %v1040_v25 = vpop.f32.mrb[17].mxu1  ;;  %v800_v28 = vpop.f32.mrb[17].mxu0 }
 0x1ab   : > { %v5393_v30 = vpop.f32.mrb[18].mxu1  ;;  %v5395_v32 = vpop.f32.mrb[18].mxu0 }
 0x1ac   : > { %v1045_v31 = vpop.f32.mrb[19].mxu1  ;;  %v805_v34 = vpop.f32.mrb[19].mxu0 }
 0x1af   : > { %v5399_v36 = vpop.f32.mrb[20].mxu1  ;;  %v5401_v38 = vpop.f32.mrb[20].mxu0 }
 0x1b0   : > { %v1050_v37 = vpop.f32.mrb[21].mxu1  ;;  %v810_v39 = vpop.f32.mrb[21].mxu0 }
 0x1b3   : > { %v5403_v40 = vpop.f32.mrb[22].mxu1  ;;  %v5405_v44 = vpop.f32.mrb[22].mxu0 }
 0x1b4   : > { %v1055_v42 = vpop.f32.mrb[23].mxu1  ;;  %v815_v45 = vpop.f32.mrb[23].mxu0 }
 0x1b7   : > { %v5407_v46 = vpop.f32.mrb[24].mxu1  ;;  %v5409_v50 = vpop.f32.mrb[24].mxu0 }
 0x1b8   : > { %v1060_v48 = vpop.f32.mrb[25].mxu1  ;;  %v820_v51 = vpop.f32.mrb[25].mxu0 }
 0x1bb   : > { %v5411_v52 = vpop.f32.mrb[26].mxu1  ;;  %v5413_v56 = vpop.f32.mrb[26].mxu0 }
 0x1bc   : > { %v1065_v54 = vpop.f32.mrb[27].mxu1  ;;  %v825_v57 = vpop.f32.mrb[27].mxu0 }
 0x1bf   : > { %v5415_v58 = vpop.f32.mrb[28].mxu1  ;;  %v5417_v62 = vpop.f32.mrb[28].mxu0 }
 0x1c0   : > { %v1070_v60 = vpop.f32.mrb[29].mxu1  ;;  %v830_v63 = vpop.f32.mrb[29].mxu0 }
 0x1c3   : > { %v5419_v0 = vpop.f32.mrb[30].mxu1  ;;  %v5421_v4 = vpop.f32.mrb[30].mxu0 }
 0x1c4   : > { %v1075_v2 = vpop.f32.mrb[31].mxu1  ;;  %v835_v5 = vpop.f32.mrb[31].mxu0 }
 0x1c7   : > { %v4250_v6 = vpop.f32.mrb[32].mxu1  ;;  %v5429_v12 = vpop.f32.mrb[32].mxu0 }
 0x1c8   : > { %v5424_v8 = vadd.f32 %v4250_v6, %v5348_v49  ;;  %v1143_v10 = vpop.f32.mrb[33].mxu1  ;;  %v840_v16 = vpop.f32.mrb[33].mxu0 }
 0x1c9   : > { %v5427_v11 = vadd.f32 %v1143_v10, %v5342_v43 }
 0x1ca   : > { %3100 = vrot.lane.b32.xlu1 %v5424_v8, %s4733_s21  ;;  %v1528_v14 = vrot.slane %v5424_v8, 1  ;;  %v1753_v22 = vrot.slane %v5424_v8, 2  ;;  %v1978_v34 = vrot.slane %v5424_v8, 3  ;;  %v2202_v63 = vrot.slane %v5424_v8, 4 }
 0x1cb   : > { %v4253_v17 = vpop.f32.mrb[34].mxu1  ;;  %v1527_v19 = vrot.slane %v5427_v11, 1  ;;  %v1752_v43 = vrot.slane %v5427_v11, 2  ;;  %v5444_v27 = vpop.f32.mrb[34].mxu0  ;;  %v2201_v60 = vrot.slane %v5427_v11, 4 }
 0x1cc   : > { %v5436_v49 = vadd.f32 %v4253_v17, %v5360_v61  ;;  %v1153_v20 = vpop.f32.mrb[35].mxu1  ;;  %v845_v61 = vpop.f32.mrb[35].mxu0 }
 0x1cd   : > { %v5441_v23 = vadd.f32 %v1153_v20, %v5354_v55  ;;  %v1529_v25 = vsel %vm1526_vm5, %v1527_v19, %v1528_v14  ;;  %v1754_v33 = vsel %vm1751_vm6, %v1752_v43, %v1753_v22  ;;  %v1977_v55 = vrot.slane %v5427_v11, 3 }
 0x1ce   : > { %1623 = vrot.lane.b32.xlu0 %v1529_v25, %s4734_s29  ;;  %v1756_v28 = vrot.slane %v5436_v49, 2  ;;  %v1981_v45 = vrot.slane %v5436_v49, 3  ;;  %v2205_v10 = vrot.slane %v5436_v49, 4  ;;  %v2426_v19 = vrot.slane %v5427_v11, 5 }
 0x1cf   : > { %v1755_v29 = vrot.slane %v5441_v23, 2  ;;  %v4256_v31 = vpop.f32.mrb[36].mxu1  ;;  %v1980_v42 = vrot.slane %v5441_v23, 3  ;;  %v5461_v51 = vpop.f32.mrb[36].mxu0  ;;  %v1979_v57 = vsel %vm1976_vm7, %v1977_v55, %v1978_v34  ;;  %v2204_v6 = vrot.slane %v5441_v23, 4 }
 0x1d0   : > { %v5453_v35 = vadd.f32 %v4256_v31, %v5372_v9  ;;  %v1163_v37 = vpop.f32.mrb[37].mxu1  ;;  %v850_v54 = vpop.f32.mrb[37].mxu0  ;;  %v2427_v20 = vrot.slane %v5424_v8, 5  ;;  %v2203_v22 = vsel %vm688_vm1, %v2201_v60, %v2202_v63  ;;  %v2652_v31 = vrot.slane %v5424_v8, 6 }
 0x1d1   : > { %v1757_v39 = vsel %vm1751_vm6, %v1755_v29, %v1756_v28  ;;  %v5459_v48 = vadd.f32 %v1163_v37, %v5366_v3  ;;  %v1982_v5 = vsel %vm1976_vm7, %v1980_v42, %v1981_v45  ;;  %v2206_v25 = vsel %vm688_vm1, %v2204_v6, %v2205_v10 }
 0x1d2   : > { %1848 = vrot.lane.b32.xlu0 %v1754_v33, %s4735_s10  ;;  %1850 = vrot.lane.b32.xlu1 %v1757_v39, %s4735_s10  ;;  %v2430_v28 = vrot.slane %v5436_v49, 5  ;;  %v2651_v29 = vrot.slane %v5427_v11, 6  ;;  %v2428_v37 = vsel %vm2425_vm8, %v2426_v19, %v2427_v20  ;;  %v2654_v42 = vrot.slane %v5441_v23, 6 }
 0x1d3   : > { %v4259_v9 = vpop.f32.mrb[38].mxu1  ;;  %v5477_v16 = vpop.f32.mrb[38].mxu0  ;;  %v2655_v45 = vrot.slane %v5436_v49, 6  ;;  %v2880_v6 = vrot.slane %v5436_v49, 7  ;;  %v1534_v10 = vrot.slane %v5453_v35, 1 }
 0x1d4   : > { %v5469_v2 = vadd.f32 %v4259_v9, %v5384_v21  ;;  %v1173_v3 = vpop.f32.mrb[39].mxu1  ;;  %v855_v17 = vpop.f32.mrb[39].mxu0  ;;  %v2653_v9 = vsel %vm2650_vm9, %v2651_v29, %v2652_v31 }
 0x1d5   : > { %v5475_v14 = vadd.f32 %v1173_v3, %v5378_v15  ;;  %v2429_v15 = vrot.slane %v5441_v23, 5  ;;  %v2656_v63 = vsel %vm2650_vm9, %v2654_v42, %v2655_v45  ;;  %v2877_v3 = vrot.slane %v5424_v8, 7 }
 0x1d6   : > { %2073 = vrot.lane.b32.xlu0 %v1979_v57, %s4736_s28  ;;  %2075 = vrot.lane.b32.xlu1 %v1982_v5, %s4736_s28  ;;  %v2876_v57 = vrot.slane %v5427_v11, 7  ;;  %v2879_v5 = vrot.slane %v5441_v23, 7 }
 0x1d7   : > { %v4262_v21 = vpop.f32.mrb[40].mxu1  ;;  %v2431_v39 = vsel %vm2425_vm8, %v2429_v15, %v2430_v28  ;;  %v5521_v19 = vpop.f32.mrb[40].mxu0  ;;  %v1530_v28 = vrot.slane %v5441_v23, 1 }
 0x1d8   : > { %v1183_v43 = vpop.f32.mrb[41].mxu1  ;;  %v5492_v33 = vadd.f32 %v4262_v21, %v5395_v32  ;;  %v2878_v21 = vsel %vm2875_vm10, %v2876_v57, %v2877_v3  ;;  %v2881_v8 = vsel %vm2875_vm10, %v2879_v5, %v2880_v6  ;;  %v1761_v57 = vrot.slane %v5475_v14, 2 }
 0x1d9   : > { %v5495_v55 = vadd.f32 %v1183_v43, %v5389_v26  ;;  %v860_v43 = vpop.f32.mrb[41].mxu0  ;;  %v1759_v5 = vrot.slane %v5453_v35, 2 }
 0x1da   : > { %2297 = vrot.lane.b32.xlu0 %v2203_v22, %s4737_s13  ;;  %2299 = vrot.lane.b32.xlu1 %v2206_v25, %s4737_s13 }
 0x1db   : > { %v4265_v61 = vpop.f32.mrb[42].mxu1  ;;  %7305 = vst [vmem:[#allocation15_spill] sm:$0xff] %v5495_v55  ;;  %v5528_v25 = vpop.f32.mrb[42].mxu0 }
 0x1dc   : > { %v1193_v34 = vpop.f32.mrb[43].mxu1  ;;  %v5507_v26 = vadd.f32 %v4265_v61, %v5405_v44  ;;  %v1533_v44 = vrot.slane %v5459_v48, 1  ;;  %v865_v31 = vpop.f32.mrb[43].mxu0 }
 0x1dd   : > { %v5504_v32 = vadd.f32 %v1193_v34, %v5401_v38  ;;  %v1531_v34 = vrot.slane %v5436_v49, 1  ;;  %v1984_v31 = vrot.slane %v5453_v35, 3 }
 0x1de   : > { %2522 = vrot.lane.b32.xlu0 %v2428_v37, %s4738_s14  ;;  %2524 = vrot.lane.b32.xlu1 %v2431_v39, %s4738_s14  ;;  %v1535_v15 = vsel %vm1526_vm5, %v1533_v44, %v1534_v10  ;;  %v1536_v37 = vrot.slane %v5475_v14, 1  ;;  %v1986_v10 = vrot.slane %v5475_v14, 3 }
 0x1df   : > { %7306 = vst [vmem:[#allocation16_spill] sm:$0xff] %v5504_v32  ;;  %v4268_v54 = vpop.f32.mrb[44].mxu1 }
 0x1e0   : > { %v1203_v60 = vpop.f32.mrb[45].mxu1  ;;  %v5533_v29 = vadd.f32 %v4268_v54, %v5413_v56  ;;  %v1532_v54 = vsel %vm1526_vm5, %v1530_v28, %v1531_v34  ;;  %v1983_v28 = vrot.slane %v5459_v48, 3 }
 0x1e1   : > { %v5526_v20 = vadd.f32 %v1203_v60, %v5409_v50  ;;  %v1537_v50 = vrot.slane %v5469_v2, 1  ;;  %v1762_v60 = vrot.slane %v5469_v2, 2 }
 0x1e2   : > { %2747 = vrot.lane.b32.xlu0 %v2653_v9, %s4739_s15  ;;  %2749 = vrot.lane.b32.xlu1 %v2656_v63, %s4739_s15 }
 0x1e3   : > { %v4271_v38 = vpop.f32.mrb[46].mxu1  ;;  %v1538_v9 = vsel %vm1526_vm5, %v1536_v37, %v1537_v50  ;;  %v1763_v44 = vsel %vm1751_vm6, %v1761_v57, %v1762_v60  ;;  %v1985_v60 = vsel %vm1976_vm7, %v1983_v28, %v1984_v31 }
 0x1e4   : > { %v1213_v17 = vpop.f32.mrb[47].mxu1  ;;  %v5545_v45 = vadd.f32 %v4271_v38, %v5421_v4  ;;  %v1758_v4 = vrot.slane %v5459_v48, 2 }
 0x1e5   : > { %v5539_v39 = vadd.f32 %v1213_v17, %v5417_v62  ;;  %v868_v62 = vpop.f32.mrb[44].mxu0  ;;  %v1987_v17 = vrot.slane %v5469_v2, 3 }
 0x1e6   : > { %2972 = vrot.lane.b32.xlu0 %v2878_v21, %s4740_s16  ;;  %2974 = vrot.lane.b32.xlu1 %v2881_v8, %s4740_s16 }
 0x1e7   : > { %v4274_v22 = vpop.f32.mrb[48].mxu1  ;;  %v1988_v37 = vsel %vm1976_vm7, %v1986_v10, %v1987_v17  ;;  %v2660_v10 = vrot.slane %v5475_v14, 6  ;;  %v2661_v17 = vrot.slane %v5469_v2, 6 }
 0x1e8   : > { %v1223_v61 = vpop.f32.mrb[49].mxu1  ;;  %v5565_v43 = vadd.f32 %v4274_v22, %v5444_v27 }
 0x1e9   : > { %v5559_v21 = vadd.f32 %v1223_v61, %v5429_v12  ;;  %v2210_v12 = vrot.slane %v5475_v14, 4  ;;  %v2211_v61 = vrot.slane %v5469_v2, 4 }
 0x1ea   : > { %3102 = vrot.lane.b32.xlu0 %v5436_v49, %s4733_s21  ;;  %1627 = vrot.lane.b32.xlu1 %v1535_v15, %s4734_s29  ;;  %v870_v49 = vpop.f32.mrb[45].mxu0  ;;  %v1760_v15 = vsel %vm1751_vm6, %v1758_v4, %v1759_v5  ;;  %v2433_v5 = vrot.slane %v5453_v35, 5 }
 0x1eb   : > { %v4277_v42 = vpop.f32.mrb[50].mxu1  ;;  %v873_v3 = vpop.f32.mrb[46].mxu0  ;;  %v2212_v49 = vsel %vm688_vm1, %v2210_v12, %v2211_v61  ;;  %v2657_v12 = vrot.slane %v5459_v48, 6  ;;  %v2658_v61 = vrot.slane %v5453_v35, 6 }
 0x1ec   : > { %v1233_v56 = vpop.f32.mrb[51].mxu1  ;;  %v875_v38 = vpop.f32.mrb[47].mxu0  ;;  %v5579_v22 = vadd.f32 %v4277_v42, %v5477_v16  ;;  %v2432_v42 = vrot.slane %v5459_v48, 5 }
 0x1ed   : > { %v5574_v50 = vadd.f32 %v1233_v56, %v5461_v51  ;;  %v2435_v51 = vrot.slane %v5475_v14, 5  ;;  %v2436_v56 = vrot.slane %v5469_v2, 5 }
 0x1ee   : > { %1625 = vrot.lane.b32.xlu0 %v1532_v54, %s4734_s29  ;;  %1629 = vrot.lane.b32.xlu1 %v1538_v9, %s4734_s29  ;;  %v2207_v54 = vrot.slane %v5459_v48, 4  ;;  %v2208_v9 = vrot.slane %v5453_v35, 4 }
 0x1ef   : > { %v4280_v63 = vpop.f32.mrb[52].mxu1 }
 0x1f0   : > { %v1243_v6 = vpop.f32.mrb[53].mxu1  ;;  %v2209_v16 = vsel %vm688_vm1, %v2207_v54, %v2208_v9  ;;  %v5605_v31 = vadd.f32 %v4280_v63, %v5528_v25  ;;  %v2886_v9 = vrot.slane %v5469_v2, 7 }
 0x1f2   : > { %3104 = vrot.lane.b32.xlu0 %v5453_v35, %s4733_s21  ;;  %1854 = vrot.lane.b32.xlu1 %v1763_v44, %s4735_s10  ;;  %v2437_v44 = vsel %vm2425_vm8, %v2435_v51, %v2436_v56  ;;  %v2882_v51 = vrot.slane %v5459_v48, 7 }
 0x1f3   : > { %v4283_v8 = vpop.f32.mrb[54].mxu1 }
 0x1f4   : > { %v1253_v34 = vpop.f32.mrb[55].mxu1  ;;  %v5619_v25 = vadd.f32 %v4283_v8, %v873_v3 }
 0x1f6   : > { %1852 = vrot.lane.b32.xlu0 %v1760_v15, %s4735_s10  ;;  %2079 = vrot.lane.b32.xlu1 %v1988_v37, %s4736_s28  ;;  %v5598_v15 = vadd.f32 %v1243_v6, %v5521_v19  ;;  %v2434_v37 = vsel %vm2425_vm8, %v2432_v42, %v2433_v5  ;;  %v2662_v19 = vsel %vm2650_vm9, %v2660_v10, %v2661_v17  ;;  %v2885_v6 = vrot.slane %v5475_v14, 7  ;;  %v878_v5 = vpop.f32.mrb[48].mxu0 }
 0x1f7   : > { %v4286_v27 = vpop.f32.mrb[56].mxu1  ;;  %v2883_v42 = vrot.slane %v5453_v35, 7  ;;  %v880_v3 = vpop.f32.mrb[49].mxu0  ;;  %v1542_v10 = vrot.slane %v5504_v32, 1 }
 0x1f8   : > { %v1263_v57 = vpop.f32.mrb[57].mxu1  ;;  %v1540_v3 = vrot.slane %v5492_v33, 1 }
 0x1f9   : > { %v2884_v35 = vsel %vm2875_vm10, %v2882_v51, %v2883_v42  ;;  %v1767_v51 = vrot.slane %v5504_v32, 2  ;;  %v1768_v42 = vrot.slane %v5507_v26, 2 }
 0x1fa   : > { %2077 = vrot.lane.b32.xlu0 %v1985_v60, %s4736_s28  ;;  %2303 = vrot.lane.b32.xlu1 %v2212_v49, %s4737_s13  ;;  %v5615_v60 = vadd.f32 %v1253_v34, %v868_v62  ;;  %v2659_v49 = vsel %vm2650_vm9, %v2657_v12, %v2658_v61  ;;  %v2888_v62 = vrot.slane %v5495_v55, 7  ;;  %v2889_v34 = vrot.slane %v5492_v33, 7 }
 0x1fb   : > { %v5589_v4 = vpop.f32.mrb[58].mxu1  ;;  %v1543_v61 = vrot.slane %v5507_v26, 1 }
 0x1fc   : > { %v1273_v38 = vpop.f32.mrb[59].mxu1  ;;  %v2890_v12 = vsel %vm2875_vm10, %v2888_v62, %v2889_v34 }
 0x1fe   : > { %2301 = vrot.lane.b32.xlu0 %v2209_v16, %s4737_s13  ;;  %2528 = vrot.lane.b32.xlu1 %v2437_v44, %s4738_s14  ;;  %v2887_v16 = vsel %vm2875_vm10, %v2885_v6, %v2886_v9  ;;  %v883_v44 = vpop.f32.mrb[50].mxu0 }
 0x1ff   : > { %v5602_v28 = vpop.f32.mrb[60].mxu1  ;;  %v5647_v9 = vadd.f32 %v4286_v27, %v883_v44  ;;  %v1539_v27 = vrot.slane %v5495_v55, 1 }
 0x200   : > { %v5610_v54 = vpop.f32.mrb[61].mxu1 }
 0x201   : > { %7308 = vst [vmem:[#allocation18_spill] sm:$0xff] %v5647_v9 }
 0x202   : > { %2526 = vrot.lane.b32.xlu0 %v2434_v37, %s4738_s14  ;;  %2753 = vrot.lane.b32.xlu1 %v2662_v19, %s4739_s15  ;;  %v885_v37 = vpop.f32.mrb[51].mxu0  ;;  %v5641_v19 = vadd.f32 %v1263_v57, %v878_v5 }
 0x203   : > { %v5621_v63 = vpop.f32.mrb[62].mxu1  ;;  %v888_v62 = vpop.f32.mrb[52].mxu0 }
 0x204   : > { %v5625_v56 = vpop.f32.mrb[63].mxu1  ;;  %7307 = vst [vmem:[#allocation17_spill] sm:$0xff] %v5641_v19  ;;  %v890_v57 = vpop.f32.mrb[53].mxu0  ;;  %v2213_v19 = vrot.slane %v5495_v55, 4 }
 0x205   : > { %v893_v5 = vpop.f32.mrb[54].mxu0 }
 0x206   : > { %2751 = vrot.lane.b32.xlu0 %v2659_v49, %s4739_s15  ;;  %2978 = vrot.lane.b32.xlu1 %v2887_v16, %s4740_s16  ;;  %v1544_v16 = vsel %vm1526_vm5, %v1542_v10, %v1543_v61  ;;  %v5663_v10 = vadd.f32 %v1273_v38, %v888_v62  ;;  %v5666_v37 = vadd.f32 %v5589_v4, %v893_v5  ;;  %v1993_v61 = vrot.slane %v5507_v26, 3 }
 0x207   : > { %v5633_v8 = vpop.f32.mrb[64].mxu1  ;;  %v1541_v38 = vsel %vm1526_vm5, %v1539_v27, %v1540_v3  ;;  %v1764_v62 = vrot.slane %v5495_v55, 2  ;;  %v2217_v5 = vrot.slane %v5507_v26, 4  ;;  %v1989_v27 = vrot.slane %v5495_v55, 3 }
 0x208   : > { %v5636_v17 = vpop.f32.mrb[65].mxu1  ;;  %7309 = vst [vmem:[#allocation19_spill] sm:$0xff] %v5663_v10  ;;  %7310 = vst [vmem:[#allocation20_spill] sm:$0xff] %v5666_v37  ;;  %v1990_v3 = vrot.slane %v5492_v33, 3  ;;  %v2441_v37 = vrot.slane %v5504_v32, 5  ;;  %v2442_v10 = vrot.slane %v5507_v26, 5 }
 0x20a   : > { %2976 = vrot.lane.b32.xlu0 %v2884_v35, %s4740_s16  ;;  %2980 = vrot.lane.b32.xlu1 %v2890_v12, %s4740_s16  ;;  %v895_v35 = vpop.f32.mrb[55].mxu0  ;;  %v1992_v12 = vrot.slane %v5504_v32, 3 }
 0x20b   : > { %v5645_v6 = vpop.f32.mrb[66].mxu1 }
 0x20c   : > { %v5649_v49 = vpop.f32.mrb[67].mxu1  ;;  %v1994_v57 = vsel %vm1976_vm7, %v1992_v12, %v1993_v61 }
 0x20e   : > { %3106 = vrot.lane.b32.xlu0 %v5469_v2, %s4733_s21  ;;  %1633 = vrot.lane.b32.xlu1 %v1544_v16, %s4734_s29  ;;  %v1769_v2 = vsel %vm1751_vm6, %v1767_v51, %v1768_v42  ;;  %v1765_v51 = vrot.slane %v5492_v33, 2  ;;  %v2216_v42 = vrot.slane %v5504_v32, 4 }
 0x20f   : > { %v5657_v34 = vpop.f32.mrb[68].mxu1 }
 0x210   : > { %v5661_v44 = vpop.f32.mrb[69].mxu1  ;;  %v1766_v12 = vsel %vm1751_vm6, %v1764_v62, %v1765_v51  ;;  %v2218_v61 = vsel %vm688_vm1, %v2216_v42, %v2217_v5  ;;  %v2443_v62 = vsel %vm2425_vm8, %v2441_v37, %v2442_v10  ;;  %v2214_v51 = vrot.slane %v5492_v33, 4 }
 0x211   : > { %v2666_v42 = vrot.slane %v5504_v32, 6  ;;  %v2667_v5 = vrot.slane %v5507_v26, 6 }
 0x212   : > { %3108 = vrot.lane.b32.xlu0 %v5492_v33, %s4733_s21  ;;  %1858 = vrot.lane.b32.xlu1 %v1769_v2, %s4735_s10  ;;  %v2215_v10 = vsel %vm688_vm1, %v2213_v19, %v2214_v51  ;;  %v2664_v51 = vrot.slane %v5492_v33, 6 }
 0x213   : > { %v5674_v16 = vpop.f32.mrb[70].mxu1  ;;  %v2668_v37 = vsel %vm2650_vm9, %v2666_v42, %v2667_v5  ;;  %v2894_v42 = vrot.slane %v5526_v20, 7  ;;  %v2895_v5 = vrot.slane %v5533_v29, 7 }
 0x214   : > { %v5678_v4 = vpop.f32.mrb[71].mxu1 }
 0x216   : > { %1631 = vrot.lane.b32.xlu0 %v1541_v38, %s4734_s29  ;;  %2083 = vrot.lane.b32.xlu1 %v1994_v57, %s4736_s28  ;;  %v1991_v57 = vsel %vm1976_vm7, %v1989_v27, %v1990_v3  ;;  %v2438_v27 = vrot.slane %v5495_v55, 5  ;;  %v2439_v3 = vrot.slane %v5492_v33, 5 }
 0x217   : > { %v5686_v35 = vpop.f32.mrb[72].mxu1 }
 0x218   : > { %v5690_v2 = vpop.f32.mrb[73].mxu1 }
 0x21a   : > { %1856 = vrot.lane.b32.xlu0 %v1766_v12, %s4735_s10  ;;  %2307 = vrot.lane.b32.xlu1 %v2218_v61, %s4737_s13 }
 0x21b   : > { %v5698_v38 = vpop.f32.mrb[74].mxu1 }
 0x21c   : > { %7311 = vst [vmem:[#allocation21_spill] sm:$0xff] %v5698_v38  ;;  %v5701_v9 = vpop.f32.mrb[75].mxu1  ;;  %v2891_v38 = vrot.slane %v5504_v32, 7  ;;  %v898_v32 = vpop.f32.mrb[56].mxu0 }
 0x21d   : > { %7312 = vst [vmem:[#allocation22_spill] sm:$0xff] %v5701_v9  ;;  %v2892_v9 = vrot.slane %v5507_v26, 7  ;;  %v5739_v33 = vadd.f32 %v5610_v54, %v898_v32  ;;  %v1773_v54 = vrot.slane %v5539_v39, 2 }
 0x21e   : > { %2081 = vrot.lane.b32.xlu0 %v1991_v57, %s4736_s28  ;;  %2532 = vrot.lane.b32.xlu1 %v2443_v62, %s4738_s14 }
 0x21f   : > { %v5710_v12 = vpop.f32.mrb[76].mxu1  ;;  %v2893_v19 = vsel %vm2875_vm10, %v2891_v38, %v2892_v9  ;;  %v1548_v9 = vrot.slane %v5539_v39, 1 }
 0x220   : > { %7313 = vst [vmem:[#allocation23_spill] sm:$0xff] %v5710_v12  ;;  %v5712_v61 = vpop.f32.mrb[77].mxu1  ;;  %v2440_v12 = vsel %vm2425_vm8, %v2438_v27, %v2439_v3 }
 0x221   : > { %7314 = vst [vmem:[#allocation24_spill] sm:$0xff] %v5712_v61  ;;  %v2663_v61 = vrot.slane %v5495_v55, 6 }
 0x222   : > { %2305 = vrot.lane.b32.xlu0 %v2215_v10, %s4737_s13  ;;  %2757 = vrot.lane.b32.xlu1 %v2668_v37, %s4739_s15  ;;  %v900_v10 = vpop.f32.mrb[57].mxu0 }
 0x223   : > { %v5722_v57 = vpop.f32.mrb[78].mxu1  ;;  %v2896_v10 = vsel %vm2875_vm10, %v2894_v42, %v2895_v5 }
 0x224   : > { %7315 = vst [vmem:[#allocation25_spill] sm:$0xff] %v5722_v57  ;;  %v5724_v62 = vpop.f32.mrb[79].mxu1  ;;  %v903_v57 = vpop.f32.mrb[58].mxu0 }
 0x225   : > { %v5742_v38 = vadd.f32 %v5602_v28, %v903_v57  ;;  %v905_v55 = vpop.f32.mrb[59].mxu0 }
 0x226   : > { %2530 = vrot.lane.b32.xlu0 %v2440_v12, %s4738_s14  ;;  %2982 = vrot.lane.b32.xlu1 %v2893_v19, %s4740_s16  ;;  %v2665_v19 = vsel %vm2650_vm9, %v2663_v61, %v2664_v51  ;;  %v1774_v61 = vrot.slane %v5545_v45, 2  ;;  %v908_v57 = vpop.f32.mrb[60].mxu0 }
 0x227   : > { %v4322_v37 = vpop.f32.mrb[80].mxu1  ;;  %v910_v51 = vpop.f32.mrb[61].mxu0 }
 0x228   : > { %v5735_v27 = vadd.f32 %v4322_v37, %v5346_v47  ;;  %v1383_v3 = vpop.f32.mrb[81].mxu1  ;;  %v1549_v47 = vrot.slane %v5545_v45, 1  ;;  %v913_v5 = vpop.f32.mrb[62].mxu0 }
 0x229   : > { %v5745_v12 = vadd.f32 %v1383_v3, %v5340_v41 }
 0x22a   : > { %2755 = vrot.lane.b32.xlu0 %v2665_v19, %s4739_s15  ;;  %2984 = vrot.lane.b32.xlu1 %v2896_v10, %s4740_s16  ;;  %v1550_v41 = vsel %vm1526_vm5, %v1548_v9, %v1549_v47  ;;  %v1546_v9 = vrot.slane %v5533_v29, 1  ;;  %v5770_v19 = vadd.f32 %v5625_v56, %v908_v57  ;;  %v5773_v10 = vadd.f32 %v5621_v63, %v913_v5 }
 0x22b   : > { %v4325_v37 = vpop.f32.mrb[82].mxu1  ;;  %v1770_v57 = vrot.slane %v5526_v20, 2  ;;  %v2223_v5 = vrot.slane %v5545_v45, 4 }
 0x22c   : > { %v5753_v32 = vadd.f32 %v4325_v37, %v5358_v59  ;;  %v1393_v28 = vpop.f32.mrb[83].mxu1  ;;  %v1545_v59 = vrot.slane %v5526_v20, 1  ;;  %v1775_v37 = vsel %vm1751_vm6, %v1773_v54, %v1774_v61  ;;  %v2222_v54 = vrot.slane %v5539_v39, 4 }
 0x22d   : > { %v5756_v55 = vadd.f32 %v1393_v28, %v5352_v53  ;;  %v1998_v28 = vrot.slane %v5539_v39, 3 }
 0x22e   : > { %7316 = vst [vmem:[#allocation26_spill] sm:$0xff] %v5753_v32  ;;  %3110 = vrot.lane.b32.xlu0 %v5507_v26, %s4733_s21  ;;  %1637 = vrot.lane.b32.xlu1 %v1550_v41, %s4734_s29  ;;  %v915_v26 = vpop.f32.mrb[63].mxu0  ;;  %v1547_v51 = vsel %vm1526_vm5, %v1545_v59, %v1546_v9  ;;  %v2224_v9 = vsel %vm688_vm1, %v2222_v54, %v2223_v5  ;;  %v2672_v5 = vrot.slane %v5539_v39, 6 }
 0x22f   : > { %v4328_v42 = vpop.f32.mrb[84].mxu1 }
 0x230   : > { %v5766_v53 = vadd.f32 %v4328_v42, %v5370_v7  ;;  %v1403_v3 = vpop.f32.mrb[85].mxu1  ;;  %v1999_v7 = vrot.slane %v5545_v45, 3 }
 0x231   : > { %v5776_v47 = vadd.f32 %v1403_v3, %v5364_v1  ;;  %v1771_v1 = vrot.slane %v5533_v29, 2 }
 0x232   : > { %7317 = vst [vmem:[#allocation27_spill] sm:$0xff] %v5766_v53  ;;  %3112 = vrot.lane.b32.xlu0 %v5533_v29, %s4733_s21  ;;  %1862 = vrot.lane.b32.xlu1 %v1775_v37, %s4735_s10  ;;  %v2000_v42 = vsel %vm1976_vm7, %v1998_v28, %v1999_v7  ;;  %v2447_v28 = vrot.slane %v5539_v39, 5  ;;  %v2448_v7 = vrot.slane %v5545_v45, 5 }
 0x233   : > { %7318 = vst [vmem:[#allocation28_spill] sm:$0xff] %v5776_v47  ;;  %v4331_v56 = vpop.f32.mrb[86].mxu1  ;;  %v1772_v37 = vsel %vm1751_vm6, %v1770_v57, %v1771_v1  ;;  %v2246_v47 = vrot.slane %v5770_v19, 4 }
 0x234   : > { %v5785_v41 = vadd.f32 %v4331_v56, %v5381_v18  ;;  %v1413_v63 = vpop.f32.mrb[87].mxu1  ;;  %v1996_v56 = vrot.slane %v5533_v29, 3 }
 0x235   : > { %v5791_v61 = vadd.f32 %v1413_v63, %v5376_v13  ;;  %v1995_v13 = vrot.slane %v5526_v20, 3 }
 0x236   : > { %7319 = vst [vmem:[#allocation29_spill] sm:$0xff] %v5785_v41  ;;  %1635 = vrot.lane.b32.xlu0 %v1547_v51, %s4734_s29  ;;  %2087 = vrot.lane.b32.xlu1 %v2000_v42, %s4736_s28  ;;  %v2220_v51 = vrot.slane %v5533_v29, 4  ;;  %v2449_v42 = vsel %vm2425_vm8, %v2447_v28, %v2448_v7 }
 0x237   : > { %7320 = vst [vmem:[#allocation30_spill] sm:$0xff] %v5791_v61  ;;  %v4334_v18 = vpop.f32.mrb[88].mxu1  ;;  %v1997_v1 = vsel %vm1976_vm7, %v1995_v13, %v1996_v56  ;;  %v2444_v56 = vrot.slane %v5526_v20, 5  ;;  %v2450_v61 = vrot.slane %v5559_v21, 5 }
 0x238   : > { %v5799_v3 = vadd.f32 %v4334_v18, %v5393_v30  ;;  %v1423_v26 = vpop.f32.mrb[89].mxu1  ;;  %v2673_v18 = vrot.slane %v5545_v45, 6 }
 0x239   : > { %v5805_v59 = vadd.f32 %v1423_v26, %v5387_v24  ;;  %v2219_v24 = vrot.slane %v5526_v20, 4 }
 0x23a   : > { %7321 = vst [vmem:[#allocation31_spill] sm:$0xff] %v5799_v3  ;;  %1860 = vrot.lane.b32.xlu0 %v1772_v37, %s4735_s10  ;;  %2311 = vrot.lane.b32.xlu1 %v2224_v9, %s4737_s13  ;;  %v2445_v9 = vrot.slane %v5533_v29, 5  ;;  %v2001_v3 = vrot.slane %v5559_v21, 3 }
 0x23b   : > { %7322 = vst [vmem:[#allocation32_spill] sm:$0xff] %v5805_v59  ;;  %v4337_v30 = vpop.f32.mrb[90].mxu1  ;;  %v2453_v59 = vrot.slane %v5574_v50, 5 }
 0x23c   : > { %v5813_v63 = vadd.f32 %v4337_v30, %v5403_v40  ;;  %v1433_v57 = vpop.f32.mrb[91].mxu1  ;;  %v5834_v28 = vpop.permute.xlu1 %3100  ;;  %v2674_v30 = vsel %vm2650_vm9, %v2672_v5, %v2673_v18  ;;  %v2670_v5 = vrot.slane %v5533_v29, 6 }
 0x23d   : > { %v5819_v54 = vadd.f32 %v1433_v57, %v5399_v36  ;;  %v2221_v36 = vsel %vm688_vm1, %v2219_v24, %v2220_v51  ;;  %v2897_v57 = vrot.slane %v5539_v39, 7 }
 0x23e   : > { %7323 = vst [vmem:[#allocation33_spill] sm:$0xff] %v5813_v63  ;;  %2085 = vrot.lane.b32.xlu0 %v1997_v1, %s4736_s28  ;;  %2536 = vrot.lane.b32.xlu1 %v2449_v42, %s4738_s14 }
 0x23f   : > { %7324 = vst [vmem:[#allocation34_spill] sm:$0xff] %v5819_v54  ;;  %v4340_v40 = vpop.f32.mrb[92].mxu1 }
 0x240   : > { %v5827_v26 = vadd.f32 %v4340_v40, %v5411_v52  ;;  %v1443_v37 = vpop.f32.mrb[93].mxu1  ;;  %v5829_v13 = vpop.permute.xlu0 %1623  ;;  %v2898_v52 = vrot.slane %v5545_v45, 7  ;;  %v2446_v40 = vsel %vm2425_vm8, %v2444_v56, %v2445_v9 }
 0x241   : > { %v5837_v7 = vadd.f32 %v1443_v37, %v5407_v46  ;;  %v2669_v46 = vrot.slane %v5526_v20, 6 }
 0x242   : > { %7325 = vst [vmem:[#allocation35_spill] sm:$0xff] %v5827_v26  ;;  %2309 = vrot.lane.b32.xlu0 %v2221_v36, %s4737_s13  ;;  %2761 = vrot.lane.b32.xlu1 %v2674_v30, %s4739_s15  ;;  %v2899_v36 = vsel %vm2875_vm10, %v2897_v57, %v2898_v52  ;;  %v2900_v30 = vrot.slane %v5559_v21, 7 }
 0x243   : > { %7326 = vst [vmem:[#allocation36_spill] sm:$0xff] %v5837_v7  ;;  %v4343_v1 = vpop.f32.mrb[94].mxu1  ;;  %v2671_v52 = vsel %vm2650_vm9, %v2669_v46, %v2670_v5  ;;  %v2229_v7 = vrot.slane %v5579_v22, 4 }
 0x244   : > { %v5845_v24 = vadd.f32 %v4343_v1, %v5419_v0  ;;  %v1453_v51 = vpop.f32.mrb[95].mxu1  ;;  %v1849_v42 = vpop.permute.xlu0 %1848  ;;  %v2901_v0 = vrot.slane %v5565_v43, 7 }
 0x245   : > { %v5851_v18 = vadd.f32 %v1453_v51, %v5415_v58  ;;  %v5853_v37 = vpop.permute.xlu1 %1850  ;;  %v918_v1 = vpop.f32.mrb[64].mxu0 }
 0x246   : > { %7327 = vst [vmem:[#allocation37_spill] sm:$0xff] %v5845_v24  ;;  %2534 = vrot.lane.b32.xlu0 %v2446_v40, %s4738_s14  ;;  %2986 = vrot.lane.b32.xlu1 %v2899_v36, %s4740_s16  ;;  %v920_v56 = vpop.f32.mrb[65].mxu0  ;;  %v5861_v29 = vadd.f32 %v5636_v17, %v918_v1  ;;  %v1554_v40 = vrot.slane %v5574_v50, 1  ;;  %v1555_v36 = vrot.slane %v5579_v22, 1 }
 0x247   : > { %7328 = vst [vmem:[#allocation38_spill] sm:$0xff] %v5851_v18  ;;  %v923_v9 = vpop.f32.mrb[66].mxu0  ;;  %v2902_v18 = vsel %vm2875_vm10, %v2900_v30, %v2901_v0  ;;  %v1779_v56 = vrot.slane %v5574_v50, 2 }
 0x248   : > { %v2074_v24 = vpop.permute.xlu0 %2073  ;;  %v5864_v58 = vadd.f32 %v5633_v8, %v923_v9  ;;  %v925_v51 = vpop.f32.mrb[67].mxu0  ;;  %v1556_v8 = vsel %vm1526_vm5, %v1554_v40, %v1555_v36  ;;  %v1780_v9 = vrot.slane %v5579_v22, 2 }
 0x249   : > { %v5866_v57 = vpop.permute.xlu1 %2075  ;;  %v928_v46 = vpop.f32.mrb[68].mxu0 }
 0x24a   : > { %2759 = vrot.lane.b32.xlu0 %v2671_v52, %s4739_s15  ;;  %2988 = vrot.lane.b32.xlu1 %v2902_v18, %s4740_s16  ;;  %v930_v5 = vpop.f32.mrb[69].mxu0  ;;  %v1551_v18 = vrot.slane %v5559_v21, 1  ;;  %v5884_v51 = vadd.f32 %v5649_v49, %v928_v46  ;;  %v1781_v26 = vsel %vm1751_vm6, %v1779_v56, %v1780_v9  ;;  %v1777_v46 = vrot.slane %v5565_v43, 2 }
 0x24b   : > { %v933_v30 = vpop.f32.mrb[70].mxu0  ;;  %v2005_v5 = vrot.slane %v5579_v22, 3 }
 0x24c   : > { %v2298_v17 = vpop.permute.xlu0 %2297  ;;  %v5887_v52 = vadd.f32 %v5645_v6, %v933_v30  ;;  %v935_v40 = vpop.f32.mrb[71].mxu0  ;;  %v1776_v6 = vrot.slane %v5559_v21, 2 }
 0x24d   : > { %v5874_v1 = vpop.permute.xlu1 %2299  ;;  %v2228_v40 = vrot.slane %v5574_v50, 4 }
 0x24e   : > { %3114 = vrot.lane.b32.xlu0 %v5545_v45, %s4733_s21  ;;  %1641 = vrot.lane.b32.xlu1 %v1556_v8, %s4734_s29  ;;  %v1552_v45 = vrot.slane %v5565_v43, 1  ;;  %v2004_v8 = vrot.slane %v5574_v50, 3  ;;  %v1778_v54 = vsel %vm1751_vm6, %v1776_v6, %v1777_v46  ;;  %v2225_v6 = vrot.slane %v5559_v21, 4 }
 0x24f   : > { %v2226_v46 = vrot.slane %v5565_v43, 4 }
 0x250   : > { %v2523_v0 = vpop.permute.xlu0 %2522  ;;  %v1553_v56 = vsel %vm1526_vm5, %v1551_v18, %v1552_v45  ;;  %v2006_v9 = vsel %vm1976_vm7, %v2004_v8, %v2005_v5  ;;  %v2002_v18 = vrot.slane %v5565_v43, 3  ;;  %v2230_v5 = vsel %vm688_vm1, %v2228_v40, %v2229_v7 }
 0x251   : > { %v5889_v36 = vpop.permute.xlu1 %2524 }
 0x252   : > { %3116 = vrot.lane.b32.xlu0 %v5565_v43, %s4733_s21  ;;  %1866 = vrot.lane.b32.xlu1 %v1781_v26, %s4735_s10  ;;  %v1719_v26 = vadd.f32 %v5829_v13, %v5427_v11 }
 0x254   : > { %v2748_v49 = vpop.permute.xlu0 %2747  ;;  %v1944_v45 = vadd.f32 %v1849_v42, %v1719_v26  ;;  %v2678_v42 = vrot.slane %v5574_v50, 6  ;;  %v2003_v26 = vsel %vm1976_vm7, %v2001_v3, %v2002_v18  ;;  %v2904_v18 = vrot.slane %v5579_v22, 7 }
 0x255   : > { %v5900_v30 = vpop.permute.xlu1 %2749 }
 0x256   : > { %1639 = vrot.lane.b32.xlu0 %v1553_v56, %s4734_s29  ;;  %2091 = vrot.lane.b32.xlu1 %v2006_v9, %s4736_s28  ;;  %v2454_v56 = vrot.slane %v5579_v22, 5  ;;  %v2169_v11 = vadd.f32 %v2074_v24, %v1944_v45  ;;  %v2679_v9 = vrot.slane %v5579_v22, 6 }
 0x258   : > { %v2973_v63 = vpop.permute.xlu0 %2972  ;;  %v2393_v7 = vadd.f32 %v2298_v17, %v2169_v11  ;;  %v2680_v41 = vsel %vm2650_vm9, %v2678_v42, %v2679_v9  ;;  %v2451_v17 = vrot.slane %v5565_v43, 5 }
 0x259   : > { %v5913_v8 = vpop.permute.xlu1 %2974 }
 0x25a   : > { %1864 = vrot.lane.b32.xlu0 %v1778_v54, %s4735_s10  ;;  %2315 = vrot.lane.b32.xlu1 %v2230_v5, %s4737_s13  ;;  %v2455_v54 = vsel %vm2425_vm8, %v2453_v59, %v2454_v56  ;;  %v2618_v24 = vadd.f32 %v2523_v0, %v2393_v7  ;;  %v2227_v5 = vsel %vm688_vm1, %v2225_v6, %v2226_v46  ;;  %v2903_v59 = vrot.slane %v5574_v50, 7 }
 0x25b   : > { %v2452_v46 = vsel %vm2425_vm8, %v2450_v61, %v2451_v17 }
 0x25c   : > { %v5920_v13 = vpop.permute.xlu0 %3102  ;;  %v2843_v11 = vadd.f32 %v2748_v49, %v2618_v24  ;;  %v2675_v49 = vrot.slane %v5559_v21, 6  ;;  %v2905_v7 = vsel %vm2875_vm10, %v2903_v59, %v2904_v18 }
 0x25d   : > { %v5926_v40 = vpop.permute.xlu1 %1627 }
 0x25e   : > { %2089 = vrot.lane.b32.xlu0 %v2003_v26, %s4736_s28  ;;  %2540 = vrot.lane.b32.xlu1 %v2455_v54, %s4738_s14  ;;  %v3068_v0 = vadd.f32 %v2973_v63, %v2843_v11  ;;  %v2906_v26 = vrot.slane %v5598_v15, 7  ;;  %v938_v63 = vpop.f32.mrb[72].mxu0  ;;  %v1560_v54 = vrot.slane %v5615_v60, 1 }
 0x25f   : > { %v5961_v24 = vadd.f32 %v5661_v44, %v938_v63 }
 0x260   : > { %v1626_v45 = vpop.permute.xlu0 %1625  ;;  %v3196_v61 = vadd.f32 %v5834_v28, %v3068_v0  ;;  %v1785_v0 = vrot.slane %v5615_v60, 2 }
 0x261   : > { %v1720_v53 = vadd.f32 %v1626_v45, %v5441_v23  ;;  %v5937_v3 = vpop.permute.xlu1 %1629  ;;  %v2676_v23 = vrot.slane %v5565_v43, 6 }
 0x262   : > { %2313 = vrot.lane.b32.xlu0 %v2227_v5, %s4737_s13  ;;  %2765 = vrot.lane.b32.xlu1 %v2680_v41, %s4739_s15  ;;  %v2907_v41 = vrot.slane %v5605_v31, 7  ;;  %v3260_v18 = vmul.f32 0.2, %v3196_v61  ;;  %vm3228_vm11 = vcmp.ge.f32.partialorder %v3196_v61, 0.0 }
 0x263   : > { %v1945_v56 = vadd.f32 %v5853_v37, %v1720_v53  ;;  %v940_v53 = vpop.f32.mrb[73].mxu0  ;;  %v2677_v59 = vsel %vm2650_vm9, %v2675_v49, %v2676_v23 }
 0x264   : > { %v5944_v6 = vpop.permute.xlu0 %3104  ;;  %v943_v37 = vpop.f32.mrb[74].mxu0  ;;  %v2908_v28 = vsel %vm2875_vm10, %v2906_v26, %v2907_v41  ;;  %v5982_v26 = vsel %vm3228_vm11, %v3196_v61, %v3260_v18  ;;  %v2234_v18 = vrot.slane %v5615_v60, 4 }
 0x265   : > { %v2170_v42 = vadd.f32 %v5866_v57, %v1945_v56  ;;  %v5950_v9 = vpop.permute.xlu1 %1854  ;;  %v5964_v45 = vadd.f32 %v5657_v34, %v943_v37  ;;  %v945_v5 = vpop.f32.mrb[75].mxu0 }
 0x266   : > { %2538 = vrot.lane.b32.xlu0 %v2452_v46, %s4738_s14  ;;  %2990 = vrot.lane.b32.xlu1 %v2905_v7, %s4740_s16  ;;  %v948_v23 = vpop.f32.mrb[76].mxu0  ;;  %v1721_v5 = vadd.f32 %v5926_v40, %v5459_v48  ;;  %v1722_v40 = vadd.f32 %v5937_v3, %v5475_v14 }
 0x267   : > { %v2394_v43 = vadd.f32 %v5874_v1, %v2170_v42  ;;  %v1561_v1 = vrot.slane %v5619_v25, 1  ;;  %v1557_v42 = vrot.slane %v5598_v15, 1  ;;  %v950_v7 = vpop.f32.mrb[77].mxu0 }
 0x268   : > { %v1853_v57 = vpop.permute.xlu0 %1852 }
 0x269   : > { %v2619_v17 = vadd.f32 %v5889_v36, %v2394_v43  ;;  %v2080_v11 = vpop.permute.xlu1 %2079  ;;  %v1786_v36 = vrot.slane %v5619_v25, 2  ;;  %v1562_v49 = vsel %vm1526_vm5, %v1560_v54, %v1561_v1  ;;  %v2010_v43 = vrot.slane %v5615_v60, 3 }
 0x26a   : > { %2763 = vrot.lane.b32.xlu0 %v2677_v59, %s4739_s15  ;;  %2992 = vrot.lane.b32.xlu1 %v2908_v28, %s4740_s16  ;;  %v3399_v59 = vmul.f32 %v5982_v26, %v5982_v26  ;;  %v1783_v28 = vrot.slane %v5605_v31, 2  ;;  %v1946_v1 = vadd.f32 %v1853_v57, %v1721_v5  ;;  %v2007_v5 = vrot.slane %v5598_v15, 3 }
 0x26b   : > { %v2844_v44 = vadd.f32 %v5900_v30, %v2619_v17  ;;  %v1558_v30 = vrot.slane %v5605_v31, 1  ;;  %v1787_v53 = vsel %vm1751_vm6, %v1785_v0, %v1786_v36  ;;  %v2235_v36 = vrot.slane %v5619_v25, 4 }
 0x26c   : > { %v2078_v34 = vpop.permute.xlu0 %2077  ;;  %v3431_v57 = vsel %vm3325_vm12, %v3399_v59, 0.0 }
 0x26d   : > { %v3069_v56 = vadd.f32 %v5913_v8, %v2844_v44  ;;  %v2304_v46 = vpop.permute.xlu1 %2303  ;;  %v953_v8 = vpop.f32.mrb[78].mxu0  ;;  %v3326_v44 = vsel %vm3325_vm12, %v5982_v26, 0.0 }
 0x26e   : > { %3118 = vrot.lane.b32.xlu0 %v5579_v22, %s4733_s21  ;;  %1645 = vrot.lane.b32.xlu1 %v1562_v49, %s4734_s29  ;;  %v5988_v22 = vadd.f32 %v5678_v4, %v948_v23  ;;  %v5991_v37 = vadd.f32 %v5674_v16, %v953_v8  ;;  %v955_v54 = vpop.f32.mrb[79].mxu0  ;;  %v1559_v16 = vsel %vm1526_vm5, %v1557_v42, %v1558_v30  ;;  %v1782_v4 = vrot.slane %v5598_v15, 2 }
 0x26f   : > { %v3197_v41 = vadd.f32 %v5920_v13, %v3069_v56  ;;  %v2011_v13 = vrot.slane %v5619_v25, 3  ;;  %v1947_v23 = vadd.f32 %v5950_v9, %v1722_v40  ;;  %v2171_v42 = vadd.f32 %v2078_v34, %v1946_v1  ;;  %v958_v9 = vpop.f32.mrb[80].mxu0 }
 0x270   : > { %v2302_v63 = vpop.permute.xlu0 %2301  ;;  %v960_v59 = vpop.f32.mrb[81].mxu0 }
 0x271   : > { %vm3229_vm13 = vcmp.ge.f32.partialorder %v3197_v41, 0.0  ;;  %v3261_v61 = vmul.f32 0.2, %v3197_v41  ;;  %v2529_v17 = vpop.permute.xlu1 %2528  ;;  %v2012_v14 = vsel %vm1976_vm7, %v2010_v43, %v2011_v13  ;;  %v2395_v8 = vadd.f32 %v2302_v63, %v2171_v42  ;;  %v7329_v42 = vld [vmem:[#allocation22_spill] sm:$0xff] }
 0x272   : > { %3120 = vrot.lane.b32.xlu0 %v5605_v31, %s4733_s21  ;;  %1870 = vrot.lane.b32.xlu1 %v1787_v53, %s4735_s10  ;;  %v1784_v53 = vsel %vm1751_vm6, %v1782_v4, %v1783_v28  ;;  %v2236_v43 = vsel %vm688_vm1, %v2234_v18, %v2235_v36  ;;  %v6031_v13 = vadd.f32 %v5690_v2, %v958_v9  ;;  %v2459_v63 = vrot.slane %v5615_v60, 5  ;;  %v963_v28 = vpop.f32.mrb[82].mxu0  ;;  %v7331_v9 = vld [vmem:[#allocation21_spill] sm:$0xff] }
 0x273   : > { %v6004_v48 = vsel %vm3229_vm13, %v3197_v41, %v3261_v61  ;;  %v2172_v41 = vadd.f32 %v2080_v11, %v1947_v23  ;;  %v2008_v61 = vrot.slane %v5605_v31, 3  ;;  %v2460_v4 = vrot.slane %v5619_v25, 5  ;;  %v965_v18 = vpop.f32.mrb[83].mxu0 }
 0x274   : > { %v2527_v0 = vpop.permute.xlu0 %2526  ;;  %v3327_v56 = vsel %vm3325_vm12, %v6004_v48, 0.0  ;;  %v3400_v49 = vmul.f32 %v6004_v48, %v6004_v48  ;;  %v6038_v1 = vadd.f32 %v5686_v35, %v963_v28  ;;  %v2231_v36 = vrot.slane %v5598_v15, 4 }
 0x275   : > { %v2754_v30 = vpop.permute.xlu1 %2753  ;;  %v6018_v3 = vadd.f32 %v3327_v56, %v3326_v44  ;;  %v2620_v40 = vadd.f32 %v2527_v0, %v2395_v8  ;;  %v2232_v56 = vrot.slane %v5605_v31, 4  ;;  %v2685_v23 = vrot.slane %v5619_v25, 6 }
 0x276   : > { %1643 = vrot.lane.b32.xlu0 %v1559_v16, %s4734_s29  ;;  %2095 = vrot.lane.b32.xlu1 %v2012_v14, %s4736_s28  ;;  %v3432_v7 = vsel %vm3325_vm12, %v3400_v49, 0.0  ;;  %v2396_v16 = vadd.f32 %v2304_v46, %v2172_v41  ;;  %v968_v46 = vpop.f32.mrb[84].mxu0  ;;  %v2684_v49 = vrot.slane %v5615_v60, 6  ;;  %v2461_v8 = vsel %vm2425_vm8, %v2459_v63, %v2460_v4 }
 0x277   : > { %v6025_v54 = vadd.f32 %v3432_v7, %v3431_v57  ;;  %v6045_v14 = vadd.f32 %v7329_v42, %v968_v46  ;;  %v970_v57 = vpop.f32.mrb[85].mxu0  ;;  %v2233_v28 = vsel %vm688_vm1, %v2231_v36, %v2232_v56  ;;  %v2909_v63 = vrot.slane %v5615_v60, 7  ;;  %v7333_v42 = vld [vmem:[#allocation17_spill] sm:$0xff] }
 0x278   : > { %v2752_v34 = vpop.permute.xlu0 %2751  ;;  %v2621_v44 = vadd.f32 %v2529_v17, %v2396_v16  ;;  %v2009_v17 = vsel %vm1976_vm7, %v2007_v5, %v2008_v61  ;;  %v2686_v5 = vsel %vm2650_vm9, %v2684_v49, %v2685_v23  ;;  %v2457_v61 = vrot.slane %v5605_v31, 5 }
 0x279   : > { %v2979_v11 = vpop.permute.xlu1 %2978  ;;  %v2845_v2 = vadd.f32 %v2752_v34, %v2620_v40  ;;  %7330 = vst [vmem:[#allocation22_spill] sm:$0xff] %v6045_v14  ;;  %v2682_v46 = vrot.slane %v5605_v31, 6  ;;  %v2912_v57 = vrot.slane %v7333_v42, 7 }
 0x27a   : > { %1868 = vrot.lane.b32.xlu0 %v1784_v53, %s4735_s10  ;;  %2319 = vrot.lane.b32.xlu1 %v2236_v43, %s4737_s13  ;;  %v2846_v7 = vadd.f32 %v2754_v30, %v2621_v44  ;;  %v973_v53 = vpop.f32.mrb[86].mxu0  ;;  %v2456_v30 = vrot.slane %v5598_v15, 5 }
 0x27b   : > { %v6054_v34 = vadd.f32 %v7331_v9, %v973_v53  ;;  %v975_v43 = vpop.f32.mrb[87].mxu0  ;;  %v7334_v53 = vld [vmem:[#allocation18_spill] sm:$0xff] }
 0x27c   : > { %v2977_v0 = vpop.permute.xlu0 %2976  ;;  %v3071_v59 = vadd.f32 %v2979_v11, %v2846_v7  ;;  %v2910_v11 = vrot.slane %v5619_v25, 7  ;;  %v2458_v23 = vsel %vm2425_vm8, %v2456_v30, %v2457_v61  ;;  %v978_v7 = vpop.f32.mrb[88].mxu0  ;;  %v2913_v9 = vrot.slane %v7334_v53, 7 }
 0x27d   : > { %v3070_v35 = vadd.f32 %v2977_v0, %v2845_v2  ;;  %v6047_v41 = vpop.permute.xlu1 %2980  ;;  %7332 = vst [vmem:[#allocation21_spill] sm:$0xff] %v6054_v34  ;;  %v980_v43 = vpop.f32.mrb[89].mxu0 }
 0x27e   : > { %2093 = vrot.lane.b32.xlu0 %v2009_v17, %s4736_s28  ;;  %2544 = vrot.lane.b32.xlu1 %v2461_v8, %s4738_s14  ;;  %v2911_v31 = vsel %vm2875_vm10, %v2909_v63, %v2910_v11 }
 0x27f   : > { %v3198_v16 = vadd.f32 %v5944_v6, %v3070_v35  ;;  %v2681_v6 = vrot.slane %v5598_v15, 6 }
 0x280   : > { %v3107_v40 = vpop.permute.xlu0 %3106 }
 0x281   : > { %vm3230_vm14 = vcmp.ge.f32.partialorder %v3198_v16, 0.0  ;;  %v3262_v4 = vmul.f32 0.2, %v3198_v16  ;;  %v3199_v18 = vadd.f32 %v3107_v40, %v3071_v59  ;;  %v6062_v44 = vpop.permute.xlu1 %1633 }
 0x282   : > { %2317 = vrot.lane.b32.xlu0 %v2233_v28, %s4737_s13  ;;  %2769 = vrot.lane.b32.xlu1 %v2686_v5, %s4739_s15 }
 0x283   : > { %v6068_v2 = vsel %vm3230_vm14, %v3198_v16, %v3262_v4  ;;  %vm3231_vm15 = vcmp.ge.f32.partialorder %v3199_v18, 0.0  ;;  %v3263_v36 = vmul.f32 0.2, %v3199_v18  ;;  %v2683_v4 = vsel %vm2650_vm9, %v2681_v6, %v2682_v46 }
 0x284   : > { %v3329_v0 = vsel %vm3325_vm12, %v6068_v2, 0.0  ;;  %v3401_v56 = vmul.f32 %v6068_v2, %v6068_v2  ;;  %v6075_v49 = vpop.permute.xlu0 %3108  ;;  %vm3796_vm14 = vcmask 1043459  }
 0x285   : > { %v3330_v35 = vadd.f32 %v3329_v0, %v6018_v3  ;;  %v6080_v17 = vsel %vm3231_vm15, %v3199_v18, %v3263_v36  ;;  %v1859_v8 = vpop.permute.xlu1 %1858  ;;  %v983_v3 = vpop.f32.mrb[90].mxu0  ;;  %v7335_v18 = vld [vmem:[#allocation24_spill] sm:$0xff]  ;;  %v7337_v36 = vld [vmem:[#allocation23_spill] sm:$0xff]  ;;  %vm3798_vm15 = vcmask 1044484  }
 0x286   : > { %v3434_v59 = vsel %vm3325_vm12, %v3401_v56, 0.0  ;;  %v3331_v16 = vsel %vm3325_vm12, %v6080_v17, 0.0  ;;  %v3402_v30 = vmul.f32 %v6080_v17, %v6080_v17  ;;  %2542 = vrot.lane.b32.xlu0 %v2458_v23, %s4738_s14  ;;  %2994 = vrot.lane.b32.xlu1 %v2911_v31, %s4740_s16  ;;  %v985_v5 = vpop.f32.mrb[91].mxu0  ;;  %v6097_v11 = vadd.f32 %v7335_v18, %v978_v7  ;;  %v7342_v7 = vld [vmem:[#allocation25_spill] sm:$0xff] }
 0x287   : > { %v3435_v40 = vadd.f32 %v3434_v59, %v6025_v54  ;;  %v6092_v28 = vadd.f32 %v3331_v16, %v3330_v35  ;;  %v6100_v0 = vadd.f32 %v7337_v36, %v983_v3  ;;  %v988_v56 = vpop.f32.mrb[92].mxu0  ;;  %v2914_v54 = vsel %vm2875_vm10, %v2912_v57, %v2913_v9  ;;  %v7339_v35 = vld [vmem:[#allocation19_spill] sm:$0xff]  ;;  %v7340_v59 = vld [vmem:[#allocation20_spill] sm:$0xff] }
 0x288   : > { %v3436_v61 = vsel %vm3325_vm12, %v3402_v30, 0.0  ;;  %v1632_v63 = vpop.permute.xlu0 %1631  ;;  %7336 = vst [vmem:[#allocation18_spill] sm:$0xff] %v6097_v11  ;;  %v1566_v43 = vrot.slane %v7339_v35, 1  ;;  %v1567_v16 = vrot.slane %v7340_v59, 1  ;;  %v990_v30 = vpop.f32.mrb[93].mxu0  ;;  %v6110_v46 = vadd.f32 %v5724_v62, %v988_v56 }
 0x289   : > { %7338 = vst [vmem:[#allocation24_spill] sm:$0xff] %v6100_v0  ;;  %v6102_v23 = vadd.f32 %v3436_v61, %v3435_v40  ;;  %v2084_v31 = vpop.permute.xlu1 %2083  ;;  %v993_v6 = vpop.f32.mrb[94].mxu0  ;;  %v1791_v9 = vrot.slane %v7339_v35, 2  ;;  %v1792_v18 = vrot.slane %v7340_v59, 2  ;;  %v1563_v62 = vrot.slane %v7333_v42, 1 }
 0x28a   : > { %2767 = vrot.lane.b32.xlu0 %v2683_v4, %s4739_s15  ;;  %2996 = vrot.lane.b32.xlu1 %v2914_v54, %s4740_s16  ;;  %7341 = vst [vmem:[#allocation23_spill] sm:$0xff] %v6110_v46  ;;  %v6113_v3 = vadd.f32 %v7342_v7, %v993_v6  ;;  %v995_v40 = vpop.f32.mrb[95].mxu0  ;;  %v1568_v57 = vsel %vm1526_vm5, %v1566_v43, %v1567_v16  ;;  %v1564_v36 = vrot.slane %v7334_v53, 1  ;;  %v2016_v30 = vrot.slane %v7339_v35, 3  ;;  %v7345_v6 = vld [vmem:[#allocation15_spill] sm:$0xff] }
 0x28b   : > { %v1793_v54 = vsel %vm1751_vm6, %v1791_v9, %v1792_v18  ;;  %v2017_v43 = vrot.slane %v7340_v59, 3  ;;  %v1723_v7 = vadd.f32 %v1632_v63, %v7345_v6  ;;  %v1789_v9 = vrot.slane %v7334_v53, 2 }
 0x28c   : > { %7343 = vst [vmem:[#allocation20_spill] sm:$0xff] %v6113_v3  ;;  %v1857_v5 = vpop.permute.xlu0 %1856  ;;  %v1788_v3 = vrot.slane %v7333_v42, 2  ;;  %v2240_v18 = vrot.slane %v7339_v35, 4  ;;  %v2014_v6 = vrot.slane %v7334_v53, 3 }
 0x28d   : > { %v2308_v61 = vpop.permute.xlu1 %2307  ;;  %v1948_v0 = vadd.f32 %v1857_v5, %v1723_v7  ;;  %v2018_v34 = vsel %vm1976_vm7, %v2016_v30, %v2017_v43  ;;  %v2466_v7 = vrot.slane %v7340_v59, 5 }
 0x28e   : > { %3122 = vrot.lane.b32.xlu0 %v5619_v25, %s4733_s21  ;;  %1649 = vrot.lane.b32.xlu1 %v1568_v57, %s4734_s29  ;;  %v7344_v25 = vld [vmem:[#allocation16_spill] sm:$0xff]  ;;  %v1565_v57 = vsel %vm1526_vm5, %v1563_v62, %v1564_v36  ;;  %v1790_v36 = vsel %vm1751_vm6, %v1788_v3, %v1789_v9  ;;  %v2238_v3 = vrot.slane %v7334_v53, 4 }
 0x28f   : > { %v1724_v16 = vadd.f32 %v6062_v44, %v7344_v25  ;;  %v2013_v25 = vrot.slane %v7333_v42, 3 }
 0x290   : > { %v2082_v4 = vpop.permute.xlu0 %2081 }
 0x291   : > { %v2533_v56 = vpop.permute.xlu1 %2532  ;;  %v1949_v46 = vadd.f32 %v1859_v8, %v1724_v16  ;;  %v2173_v63 = vadd.f32 %v2082_v4, %v1948_v0  ;;  %v2465_v8 = vrot.slane %v7339_v35, 5  ;;  %v2690_v4 = vrot.slane %v7339_v35, 6 }
 0x292   : > { %3124 = vrot.lane.b32.xlu0 %v7334_v53, %s4733_s21  ;;  %1874 = vrot.lane.b32.xlu1 %v1793_v54, %s4735_s10  ;;  %v2241_v54 = vrot.slane %v7340_v59, 4 }
 0x293   : > { %v2174_v44 = vadd.f32 %v2084_v31, %v1949_v46  ;;  %v2237_v46 = vrot.slane %v7333_v42, 4 }
 0x294   : > { %v2306_v40 = vpop.permute.xlu0 %2305  ;;  %v2242_v43 = vsel %vm688_vm1, %v2240_v18, %v2241_v54  ;;  %v2015_v18 = vsel %vm1976_vm7, %v2013_v25, %v2014_v6  ;;  %v2467_v54 = vsel %vm2425_vm8, %v2465_v8, %v2466_v7 }
 0x295   : > { %v2758_v11 = vpop.permute.xlu1 %2757  ;;  %v2398_v5 = vadd.f32 %v2308_v61, %v2174_v44  ;;  %v2397_v16 = vadd.f32 %v2306_v40, %v2173_v63  ;;  %v2691_v61 = vrot.slane %v7340_v59, 6 }
 0x296   : > { %1647 = vrot.lane.b32.xlu0 %v1565_v57, %s4734_s29  ;;  %2099 = vrot.lane.b32.xlu1 %v2018_v34, %s4736_s28 }
 0x297   : > { %v2623_v34 = vadd.f32 %v2533_v56, %v2398_v5  ;;  %v2463_v5 = vrot.slane %v7334_v53, 5 }
 0x298   : > { %v2531_v62 = vpop.permute.xlu0 %2530 }
 0x299   : > { %v2983_v30 = vpop.permute.xlu1 %2982  ;;  %v2622_v0 = vadd.f32 %v2531_v62, %v2397_v16  ;;  %v2848_v40 = vadd.f32 %v2758_v11, %v2623_v34  ;;  %v2239_v62 = vsel %vm688_vm1, %v2237_v46, %v2238_v3  ;;  %v2462_v11 = vrot.slane %v7333_v42, 5 }
 0x29a   : > { %1872 = vrot.lane.b32.xlu0 %v1790_v36, %s4735_s10  ;;  %2323 = vrot.lane.b32.xlu1 %v2242_v43, %s4737_s13  ;;  %v2692_v36 = vsel %vm2650_vm9, %v2690_v4, %v2691_v61  ;;  %v2915_v16 = vrot.slane %v7339_v35, 7  ;;  %v2688_v43 = vrot.slane %v7334_v53, 6 }
 0x29b   : > { %v3073_v56 = vadd.f32 %v2983_v30, %v2848_v40  ;;  %v2916_v30 = vrot.slane %v7340_v59, 7  ;;  %v2464_v61 = vsel %vm2425_vm8, %v2462_v11, %v2463_v5 }
 0x29c   : > { %v2756_v31 = vpop.permute.xlu0 %2755 }
 0x29d   : > { %v2847_v57 = vadd.f32 %v2756_v31, %v2622_v0  ;;  %v6152_v9 = vpop.permute.xlu1 %2984  ;;  %v2918_v0 = vrot.slane %v5739_v33, 7  ;;  %v2919_v31 = vrot.slane %v5742_v38, 7  ;;  %v2917_v40 = vsel %vm2875_vm10, %v2915_v16, %v2916_v30 }
 0x29e   : > { %2097 = vrot.lane.b32.xlu0 %v2015_v18, %s4736_s28  ;;  %2548 = vrot.lane.b32.xlu1 %v2467_v54, %s4738_s14  ;;  %v1573_v30 = vrot.slane %v5773_v10, 1 }
 0x29f   : > { %v3072_v44 = vadd.f32 %v6047_v41, %v2847_v57  ;;  %v2687_v41 = vrot.slane %v7333_v42, 6  ;;  %v2920_v11 = vsel %vm2875_vm10, %v2918_v0, %v2919_v31  ;;  %v1570_v0 = vrot.slane %v5742_v38, 1 }
 0x2a0   : > { %v3111_v63 = vpop.permute.xlu0 %3110  ;;  %v1794_v31 = vrot.slane %v5739_v33, 2 }
 0x2a1   : > { %v3200_v25 = vadd.f32 %v6075_v49, %v3072_v44  ;;  %v3201_v6 = vadd.f32 %v3111_v63, %v3073_v56  ;;  %v6164_v8 = vpop.permute.xlu1 %1637  ;;  %v2689_v56 = vsel %vm2650_vm9, %v2687_v41, %v2688_v43  ;;  %v6192_v44 = vld [vmem:[%s7256_s2] sm:$0xff] }
 0x2a2   : > { %2321 = vrot.lane.b32.xlu0 %v2239_v62, %s4737_s13  ;;  %2773 = vrot.lane.b32.xlu1 %v2692_v36, %s4739_s15  ;;  %v3504_v5 = vmul.f32 %v6192_v44, %v6004_v48  ;;  %v3505_v43 = vmul.f32 %v6192_v44, %v6068_v2  ;;  %v1569_v48 = vrot.slane %v5739_v33, 1 }
 0x2a3   : > { %vm3232_vm0 = vcmp.ge.f32.partialorder %v3200_v25, 0.0  ;;  %v3264_v7 = vmul.f32 0.2, %v3200_v25  ;;  %vm3233_vm2 = vcmp.ge.f32.partialorder %v3201_v6, 0.0  ;;  %v3265_v34 = vmul.f32 0.2, %v3201_v6 }
 0x2a4   : > { %v6172_v49 = vpop.permute.xlu0 %3112 }
 0x2a5   : > { %v3296_v46 = vsel %vm3232_vm0, %v3200_v25, %v3264_v7  ;;  %v6176_v3 = vsel %vm3233_vm2, %v3201_v6, %v3265_v34  ;;  %v6178_v4 = vpop.permute.xlu1 %1862  ;;  %vm3800_vm0 = vcmask 1045509   ;;  %vm3802_vm2 = vcmask 1046534  }
 0x2a6   : > { %v3403_v53 = vmul.f32 %v3296_v46, %v3296_v46  ;;  %v3333_v57 = vsel %vm3325_vm12, %v3296_v46, 0.0  ;;  %2546 = vrot.lane.b32.xlu0 %v2464_v61, %s4738_s14  ;;  %2998 = vrot.lane.b32.xlu1 %v2917_v40, %s4740_s16  ;;  %v3404_v54 = vmul.f32 %v6176_v3, %v6176_v3  ;;  %v3335_v62 = vsel %vm3325_vm12, %v6176_v3, 0.0 }
 0x2a7   : > { %v3334_v18 = vadd.f32 %v3333_v57, %v6092_v28  ;;  %v1572_v28 = vrot.slane %v5770_v19, 1  ;;  %v1795_v61 = vrot.slane %v5742_v38, 2  ;;  %v3503_v40 = vmul.f32 %v6192_v44, %v5982_v26 }
 0x2a8   : > { %v3438_v63 = vsel %vm3325_vm12, %v3403_v53, 0.0  ;;  %v1636_v36 = vpop.permute.xlu0 %1635  ;;  %v3440_v41 = vsel %vm3325_vm12, %v3404_v54, 0.0  ;;  %v3542_v53 = vsel %vm3325_vm12, %v3504_v5, 0.0  ;;  %v2019_v54 = vrot.slane %v5739_v33, 3 }
 0x2a9   : > { %v3439_v25 = vadd.f32 %v3438_v63, %v6102_v23  ;;  %v6202_v6 = vadd.f32 %v3335_v62, %v3334_v18  ;;  %v2088_v16 = vpop.permute.xlu1 %2087  ;;  %v1797_v23 = vrot.slane %v5770_v19, 2  ;;  %v1574_v2 = vsel %vm1526_vm5, %v1572_v28, %v1573_v30 }
 0x2aa   : > { %2771 = vrot.lane.b32.xlu0 %v2689_v56, %s4739_s15  ;;  %3000 = vrot.lane.b32.xlu1 %v2920_v11, %s4740_s16  ;;  %v1798_v18 = vrot.slane %v5773_v10, 2  ;;  %v2020_v56 = vrot.slane %v5742_v38, 3  ;;  %v3549_v63 = vsel %vm3325_vm12, %v3505_v43, 0.0  ;;  %v3506_v26 = vmul.f32 %v6192_v44, %v6080_v17 }
 0x2ab   : > { %v6210_v7 = vadd.f32 %v3440_v41, %v3439_v25  ;;  %v3543_v62 = vrot.slane %v3542_v53, 4  ;;  %v1571_v28 = vsel %vm1526_vm5, %v1569_v48, %v1570_v0  ;;  %v1796_v5 = vsel %vm1751_vm6, %v1794_v31, %v1795_v61 }
 0x2ac   : > { %v1861_v34 = vpop.permute.xlu0 %1860  ;;  %v1799_v41 = vsel %vm1751_vm6, %v1797_v23, %v1798_v18  ;;  %v2023_v43 = vrot.slane %v5773_v10, 3  ;;  %v3550_v14 = vrot.slane %v3549_v63, 4  ;;  %v3507_v17 = vmul.f32 %v6192_v44, %v3296_v46 }
 0x2ad   : > { %v2312_v57 = vpop.permute.xlu1 %2311  ;;  %v2021_v48 = vsel %vm1976_vm7, %v2019_v54, %v2020_v56  ;;  %v3556_v31 = vsel %vm3325_vm12, %v3506_v26, 0.0  ;;  %v1726_v23 = vadd.f32 %v6164_v8, %v5539_v39  ;;  %v1725_v61 = vadd.f32 %v1636_v36, %v5526_v20 }
 0x2ae   : > { %3126 = vrot.lane.b32.xlu0 %v7340_v59, %s4733_s21  ;;  %1653 = vrot.lane.b32.xlu1 %v1574_v2, %s4734_s29  ;;  %v3535_v59 = vsel %vm3325_vm12, %v3503_v40, 0.0  ;;  %v2022_v2 = vrot.slane %v5770_v19, 3  ;;  %v2468_v40 = vrot.slane %v5739_v33, 5  ;;  %v3544_v46 = vadd.f32 %v3543_v62, %v3542_v53 }
 0x2af   : > { %v3536_v18 = vrot.slane %v3535_v59, 4  ;;  %v3508_v54 = vmul.f32 %v6192_v44, %v6176_v3  ;;  %v1951_v56 = vadd.f32 %v6178_v4, %v1726_v23  ;;  %v1950_v26 = vadd.f32 %v1861_v34, %v1725_v61 }
 0x2b0   : > { %v2086_v11 = vpop.permute.xlu0 %2085  ;;  %v2024_v39 = vsel %vm1976_vm7, %v2022_v2, %v2023_v43  ;;  %v3551_v8 = vadd.f32 %v3550_v14, %v3549_v63  ;;  %v3557_v20 = vrot.slane %v3556_v31, 4  ;;  %v3563_v36 = vsel %vm3325_vm12, %v3507_v17, 0.0 }
 0x2b1   : > { %v2537_v30 = vpop.permute.xlu1 %2536  ;;  %v2469_v53 = vrot.slane %v5742_v38, 5  ;;  %v2176_v62 = vadd.f32 %v2088_v16, %v1951_v56  ;;  %v2175_v42 = vadd.f32 %v2086_v11, %v1950_v26  ;;  %v2471_v3 = vrot.slane %v5770_v19, 5 }
 0x2b2   : > { %3128 = vrot.lane.b32.xlu0 %v5742_v38, %s4733_s21  ;;  %1878 = vrot.lane.b32.xlu1 %v1799_v41, %s4735_s10  ;;  %v2247_v41 = vrot.slane %v5773_v10, 4  ;;  %v2693_v4 = vrot.slane %v5739_v33, 6  ;;  %v3537_v34 = vadd.f32 %v3536_v18, %v3535_v59  ;;  %v3545_v23 = vrot.slane %v3544_v46, 2 }
 0x2b3   : > { %v2472_v63 = vrot.slane %v5773_v10, 5  ;;  %v3564_v2 = vrot.slane %v3563_v36, 4  ;;  %v2400_v43 = vadd.f32 %v2312_v57, %v2176_v62  ;;  %v3552_v35 = vrot.slane %v3551_v8, 2 }
 0x2b4   : > { %v2310_v25 = vpop.permute.xlu0 %2309  ;;  %v2248_v14 = vsel %vm688_vm1, %v2246_v47, %v2247_v41  ;;  %v3558_v16 = vadd.f32 %v3557_v20, %v3556_v31  ;;  %v2696_v11 = vrot.slane %v5770_v19, 6  ;;  %v2694_v59 = vrot.slane %v5742_v38, 6 }
 0x2b5   : > { %v2762_v0 = vpop.permute.xlu1 %2761  ;;  %v2399_v17 = vadd.f32 %v2310_v25, %v2175_v42  ;;  %v2625_v18 = vadd.f32 %v2537_v30, %v2400_v43  ;;  %v2697_v41 = vrot.slane %v5773_v10, 6  ;;  %v2921_v56 = vrot.slane %v5770_v19, 7 }
 0x2b6   : > { %1651 = vrot.lane.b32.xlu0 %v1571_v28, %s4734_s29  ;;  %2103 = vrot.lane.b32.xlu1 %v2024_v39, %s4736_s28  ;;  %v3570_v28 = vsel %vm3325_vm12, %v3508_v54, 0.0  ;;  %v3538_v54 = vrot.slane %v3537_v34, 2  ;;  %v2473_v25 = vsel %vm2425_vm8, %v2471_v3, %v2472_v63  ;;  %v2922_v31 = vrot.slane %v5773_v10, 7 }
 0x2b7   : > { %v3571_v57 = vrot.slane %v3570_v28, 4  ;;  %v3565_v26 = vadd.f32 %v3564_v2, %v3563_v36  ;;  %v2850_v20 = vadd.f32 %v2762_v0, %v2625_v18  ;;  %v3553_v32 = vadd.f32 %v3552_v35, %v3551_v8 }
 0x2b8   : > { %v2535_v61 = vpop.permute.xlu0 %2534  ;;  %v3559_v30 = vrot.slane %v3558_v16, 2  ;;  %v2925_v43 = vrot.slane %v5864_v58, 7  ;;  %v7347_v0 = vrot.slane %v5739_v33, 4  ;;  %v2470_v35 = vsel %vm2425_vm8, %v2468_v40, %v2469_v53 }
 0x2b9   : > { %v2987_v39 = vpop.permute.xlu1 %2986  ;;  %v2624_v47 = vadd.f32 %v2535_v61, %v2399_v17  ;;  %v2924_v61 = vrot.slane %v5861_v29, 7  ;;  %v3539_v8 = vadd.f32 %v3538_v54, %v3537_v34  ;;  %v2698_v63 = vsel %vm2650_vm9, %v2696_v11, %v2697_v41 }
 0x2ba   : > { %1876 = vrot.lane.b32.xlu0 %v1796_v5, %s4735_s10  ;;  %2327 = vrot.lane.b32.xlu1 %v2248_v14, %s4737_s13  ;;  %v3546_v5 = vadd.f32 %v3545_v23, %v3544_v46  ;;  %v3075_v17 = vadd.f32 %v2987_v39, %v2850_v20  ;;  %v7346_v46 = vrot.slane %v5742_v38, 4  ;;  %v3572_v23 = vadd.f32 %v3571_v57, %v3570_v28 }
 0x2bb   : > { %v2695_v2 = vsel %vm2650_vm9, %v2693_v4, %v2694_v59  ;;  %v3566_v39 = vrot.slane %v3565_v26, 2  ;;  %v2923_v40 = vsel %vm2875_vm10, %v2921_v56, %v2922_v31  ;;  %v2926_v53 = vsel %vm2875_vm10, %v2924_v61, %v2925_v43 }
 0x2bc   : > { %v2760_v42 = vpop.permute.xlu0 %2759  ;;  %v2245_v36 = vsel %vm688_vm1, %v7347_v0, %v7346_v46  ;;  %v3547_v18 = vrot.slane %v3546_v5, 1  ;;  %v3540_v28 = vrot.slane %v3539_v8, 1  ;;  %v1578_v59 = vrot.slane %v5884_v51, 1 }
 0x2bd   : > { %v2849_v62 = vadd.f32 %v2760_v42, %v2624_v47  ;;  %v6271_v14 = vpop.permute.xlu1 %2988  ;;  %v3554_v42 = vrot.slane %v3553_v32, 1  ;;  %v3567_v54 = vadd.f32 %v3566_v39, %v3565_v26 }
 0x2be   : > { %2101 = vrot.lane.b32.xlu0 %v2021_v48, %s4736_s28  ;;  %2552 = vrot.lane.b32.xlu1 %v2473_v25, %s4738_s14  ;;  %v3560_v25 = vadd.f32 %v3559_v30, %v3558_v16  ;;  %v1579_v16 = vrot.slane %v5887_v52, 1  ;;  %v3548_v41 = vadd.f32 %v3547_v18, %v3546_v5 }
 0x2bf   : > { %v3074_v3 = vadd.f32 %v6152_v9, %v2849_v62  ;;  %v3555_v31 = vadd.f32 %v3554_v42, %v3553_v32 }
 0x2c0   : > { %v3115_v48 = vpop.permute.xlu0 %3114  ;;  %v3561_v43 = vrot.slane %v3560_v25, 1 }
 0x2c1   : > { %v3202_v9 = vadd.f32 %v6172_v49, %v3074_v3  ;;  %v3203_v47 = vadd.f32 %v3115_v48, %v3075_v17  ;;  %v6287_v38 = vpop.permute.xlu1 %1641  ;;  %v3573_v49 = vrot.slane %v3572_v23, 2  ;;  %v3568_v48 = vrot.slane %v3567_v54, 1 }
 0x2c2   : > { %2325 = vrot.lane.b32.xlu0 %v2245_v36, %s4737_s13  ;;  %2777 = vrot.lane.b32.xlu1 %v2698_v63, %s4739_s15 }
 0x2c3   : > { %vm3234_vm11 = vcmp.ge.f32.partialorder %v3202_v9, 0.0  ;;  %v3266_v4 = vmul.f32 0.2, %v3202_v9  ;;  %vm3235_vm13 = vcmp.ge.f32.partialorder %v3203_v47, 0.0  ;;  %v3267_v34 = vmul.f32 0.2, %v3203_v47 }
 0x2c4   : > { %v6293_v11 = vpop.permute.xlu0 %3116  ;;  %v3574_v3 = vadd.f32 %v3573_v49, %v3572_v23  ;;  %v1803_v23 = vrot.slane %v5884_v51, 2  ;;  %v1580_v49 = vsel %vm1526_vm5, %v1578_v59, %v1579_v16  ;;  %v1800_v16 = vrot.slane %v5861_v29, 2 }
 0x2c5   : > { %v3298_v57 = vsel %vm3234_vm11, %v3202_v9, %v3266_v4  ;;  %v3299_v20 = vsel %vm3235_vm13, %v3203_v47, %v3267_v34  ;;  %v6297_v56 = vpop.permute.xlu1 %1866  ;;  %v3562_v34 = vadd.f32 %v3561_v43, %v3560_v25  ;;  %v1576_v25 = vrot.slane %v5864_v58, 1 }
 0x2c6   : > { %v3405_v62 = vmul.f32 %v3298_v57, %v3298_v57  ;;  %v3509_v30 = vmul.f32 %v6192_v44, %v3298_v57  ;;  %v3337_v61 = vsel %vm3325_vm12, %v3298_v57, 0.0  ;;  %2550 = vrot.lane.b32.xlu0 %v2470_v35, %s4738_s14  ;;  %3002 = vrot.lane.b32.xlu1 %v2923_v40, %s4740_s16  ;;  %v3406_v5 = vmul.f32 %v3299_v20, %v3299_v20 }
 0x2c7   : > { %v3338_v17 = vadd.f32 %v3337_v61, %v6202_v6  ;;  %v3510_v26 = vmul.f32 %v6192_v44, %v3299_v20  ;;  %v3339_v0 = vsel %vm3325_vm12, %v3299_v20, 0.0  ;;  %v3541_v6 = vadd.f32 %v3540_v28, %v3539_v8 }
 0x2c8   : > { %v3577_v46 = vsel %vm3325_vm12, %v3509_v30, 0.0  ;;  %v3442_v32 = vsel %vm3325_vm12, %v3405_v62, 0.0  ;;  %v1640_v36 = vpop.permute.xlu0 %1639  ;;  %v3444_v9 = vsel %vm3325_vm12, %v3406_v5, 0.0  ;;  %v3575_v8 = vrot.slane %v3574_v3, 1 }
 0x2c9   : > { %v3578_v63 = vrot.slane %v3577_v46, 4  ;;  %v3443_v35 = vadd.f32 %v3442_v32, %v6210_v7  ;;  %v6309_v18 = vadd.f32 %v3339_v0, %v3338_v17  ;;  %v6311_v39 = vpop.permute.xlu1 %2091  ;;  %v3584_v44 = vsel %vm3325_vm12, %v3510_v26, 0.0 }
 0x2ca   : > { %2775 = vrot.lane.b32.xlu0 %v2695_v2, %s4739_s15  ;;  %3004 = vrot.lane.b32.xlu1 %v2926_v53, %s4740_s16  ;;  %v3585_v40 = vrot.slane %v3584_v44, 4  ;;  %v1804_v7 = vrot.slane %v5887_v52, 2  ;;  %v3793_v4 = vsel %vm3792_vm3, %v3548_v41, %v3541_v6  ;;  %v3569_v2 = vadd.f32 %v3568_v48, %v3567_v54 }
 0x2cb   : > { %v3579_v47 = vadd.f32 %v3578_v63, %v3577_v46  ;;  %v6318_v42 = vadd.f32 %v3444_v9, %v3443_v35  ;;  %v3795_v57 = vsel %vm3794_vm4, %v3555_v31, %v3793_v4  ;;  %v1575_v30 = vrot.slane %v5861_v29, 1 }
 0x2cc   : > { %v1865_v28 = vpop.permute.xlu0 %1864  ;;  %v3586_v53 = vadd.f32 %v3585_v40, %v3584_v44  ;;  %v3797_v54 = vsel %vm3796_vm14, %v3562_v34, %v3795_v57  ;;  %v3576_v31 = vadd.f32 %v3575_v8, %v3574_v3  ;;  %v2028_v43 = vrot.slane %v5884_v51, 3 }
 0x2cd   : > { %v3580_v20 = vrot.slane %v3579_v47, 2  ;;  %v2316_v62 = vpop.permute.xlu1 %2315  ;;  %v3799_v17 = vsel %vm3798_vm15, %v3569_v2, %v3797_v54  ;;  %v1805_v32 = vsel %vm1751_vm6, %v1803_v23, %v1804_v7  ;;  %v1577_v3 = vsel %vm1526_vm5, %v1575_v30, %v1576_v25 }
 0x2ce   : > { %3130 = vrot.lane.b32.xlu0 %v5773_v10, %s4733_s21  ;;  %1657 = vrot.lane.b32.xlu1 %v1580_v49, %s4734_s29  ;;  %v3587_v59 = vrot.slane %v3586_v53, 2  ;;  %v2029_v10 = vrot.slane %v5887_v52, 3  ;;  %v1801_v0 = vrot.slane %v5864_v58, 2  ;;  %v2252_v48 = vrot.slane %v5884_v51, 4 }
 0x2cf   : > { %v3581_v41 = vadd.f32 %v3580_v20, %v3579_v47  ;;  %v1728_v6 = vadd.f32 %v6287_v38, %v5574_v50  ;;  %v1727_v9 = vadd.f32 %v1640_v36, %v5559_v21  ;;  %v3801_v44 = vsel %vm3800_vm0, %v3576_v31, %v3799_v17 }
 0x2d0   : > { %v2090_v61 = vpop.permute.xlu0 %2089  ;;  %v3588_v26 = vadd.f32 %v3587_v59, %v3586_v53  ;;  %vm7291_vm11 = vcmask 1047559   ;;  %v2030_v47 = vsel %vm1976_vm7, %v2028_v43, %v2029_v10  ;;  %v2253_v40 = vrot.slane %v5887_v52, 4 }
 0x2d1   : > { %v3582_v5 = vrot.slane %v3581_v41, 1  ;;  %v2541_v46 = vpop.permute.xlu1 %2540  ;;  %v1953_v34 = vadd.f32 %v6297_v56, %v1728_v6  ;;  %v1952_v8 = vadd.f32 %v1865_v28, %v1727_v9  ;;  %v1802_v57 = vsel %vm1751_vm6, %v1800_v16, %v1801_v0 }
 0x2d2   : > { %3132 = vrot.lane.b32.xlu0 %v5864_v58, %s4733_s21  ;;  %1882 = vrot.lane.b32.xlu1 %v1805_v32, %s4735_s10  ;;  %v3589_v35 = vrot.slane %v3588_v26, 1  ;;  %v2025_v56 = vrot.slane %v5861_v29, 3  ;;  %v2026_v28 = vrot.slane %v5864_v58, 3  ;;  %v2477_v2 = vrot.slane %v5884_v51, 5 }
 0x2d3   : > { %v3583_v63 = vadd.f32 %v3582_v5, %v3581_v41  ;;  %v2178_v50 = vadd.f32 %v6311_v39, %v1953_v34  ;;  %v2177_v38 = vadd.f32 %v2090_v61, %v1952_v8  ;;  %v2254_v39 = vsel %vm688_vm1, %v2252_v48, %v2253_v40 }
 0x2d4   : > { %v2314_v23 = vpop.permute.xlu0 %2313  ;;  %v3590_v4 = vadd.f32 %v3589_v35, %v3588_v26  ;;  %v2478_v25 = vrot.slane %v5887_v52, 5  ;;  %v2027_v54 = vsel %vm1976_vm7, %v2025_v56, %v2026_v28  ;;  %v2249_v31 = vrot.slane %v5861_v29, 4 }
 0x2d5   : > { %v3803_v7 = vsel %vm3802_vm2, %v3583_v63, %v3801_v44  ;;  %v2766_v49 = vpop.permute.xlu1 %2765  ;;  %v2402_v20 = vadd.f32 %v2316_v62, %v2178_v50  ;;  %v2401_v53 = vadd.f32 %v2314_v23, %v2177_v38  ;;  %v2250_v61 = vrot.slane %v5864_v58, 4 }
 0x2d6   : > { %1655 = vrot.lane.b32.xlu0 %v1577_v3, %s4734_s29  ;;  %2107 = vrot.lane.b32.xlu1 %v2030_v47, %s4736_s28  ;;  %v3805_v21 = vsel %vm7291_vm11, %v3590_v4, %v3803_v7  ;;  %v2702_v62 = vrot.slane %v5884_v51, 6  ;;  %v2479_v5 = vsel %vm2425_vm8, %v2477_v2, %v2478_v25  ;;  %v2703_v26 = vrot.slane %v5887_v52, 6 }
 0x2d7   : > { %3832 = vst.msk [vmem:[%s6354_s11] sm:$0xff] %vm3325_vm12, %v3805_v21  ;;  %v2627_v41 = vadd.f32 %v2541_v46, %v2402_v20  ;;  %v2251_v0 = vsel %vm688_vm1, %v2249_v31, %v2250_v61  ;;  %v2474_v48 = vrot.slane %v5861_v29, 5  ;;  %v2475_v63 = vrot.slane %v5864_v58, 5 }
 0x2d8   : > { %v2539_v36 = vpop.permute.xlu0 %2538  ;;  %v2927_v35 = vrot.slane %v5884_v51, 7  ;;  %v2704_v23 = vsel %vm2650_vm9, %v2702_v62, %v2703_v26  ;;  %v2928_v47 = vrot.slane %v5887_v52, 7  ;;  %v2699_v4 = vrot.slane %v5861_v29, 6 }
 0x2d9   : > { %v2991_v30 = vpop.permute.xlu1 %2990  ;;  %v2626_v59 = vadd.f32 %v2539_v36, %v2401_v53  ;;  %v2852_v43 = vadd.f32 %v2766_v49, %v2627_v41  ;;  %v2930_v34 = vrot.slane %v5961_v24, 7  ;;  %v2931_v8 = vrot.slane %v5964_v45, 7 }
 0x2da   : > { %1880 = vrot.lane.b32.xlu0 %v1802_v57, %s4735_s10  ;;  %2331 = vrot.lane.b32.xlu1 %v2254_v39, %s4737_s13  ;;  %v2476_v38 = vsel %vm2425_vm8, %v2474_v48, %v2475_v63  ;;  %v2929_v36 = vsel %vm2875_vm10, %v2927_v35, %v2928_v47  ;;  %v1581_v26 = vrot.slane %v5961_v24, 1  ;;  %v1807_v47 = vrot.slane %v5964_v45, 2 }
 0x2db   : > { %v3077_v46 = vadd.f32 %v2991_v30, %v2852_v43  ;;  %v2932_v39 = vsel %vm2875_vm10, %v2930_v34, %v2931_v8  ;;  %v2259_v34 = vrot.slane %v5991_v37, 4 }
 0x2dc   : > { %v2764_v16 = vpop.permute.xlu0 %2763 }
 0x2dd   : > { %v2851_v10 = vadd.f32 %v2764_v16, %v2626_v59  ;;  %v6370_v17 = vpop.permute.xlu1 %2992  ;;  %v1585_v16 = vrot.slane %v5991_v37, 1 }
 0x2de   : > { %2105 = vrot.lane.b32.xlu0 %v2027_v54, %s4736_s28  ;;  %2556 = vrot.lane.b32.xlu1 %v2479_v5, %s4738_s14 }
 0x2df   : > { %v3076_v32 = vadd.f32 %v6271_v14, %v2851_v10  ;;  %v1810_v10 = vrot.slane %v5991_v37, 2 }
 0x2e0   : > { %v3119_v3 = vpop.permute.xlu0 %3118 }
 0x2e1   : > { %v3204_v6 = vadd.f32 %v6293_v11, %v3076_v32  ;;  %v3205_v9 = vadd.f32 %v3119_v3, %v3077_v46  ;;  %v1646_v44 = vpop.permute.xlu1 %1645  ;;  %v2700_v11 = vrot.slane %v5864_v58, 6  ;;  %v1582_v46 = vrot.slane %v5964_v45, 1 }
 0x2e2   : > { %2329 = vrot.lane.b32.xlu0 %v2251_v0, %s4737_s13  ;;  %2781 = vrot.lane.b32.xlu1 %v2704_v23, %s4739_s15  ;;  %v2034_v32 = vrot.slane %v5988_v22, 3  ;;  %v2035_v3 = vrot.slane %v5991_v37, 3  ;;  %v1806_v23 = vrot.slane %v5961_v24, 2 }
 0x2e3   : > { %vm3236_vm13 = vcmp.ge.f32.partialorder %v3204_v6, 0.0  ;;  %v3268_v14 = vmul.f32 0.2, %v3204_v6  ;;  %vm3237_vm11 = vcmp.ge.f32.partialorder %v3205_v9, 0.0  ;;  %v3269_v40 = vmul.f32 0.2, %v3205_v9 }
 0x2e4   : > { %v6386_v7 = vpop.permute.xlu0 %3120  ;;  %v2701_v30 = vsel %vm2650_vm9, %v2699_v4, %v2700_v11  ;;  %v2258_v11 = vrot.slane %v5988_v22, 4  ;;  %v1808_v8 = vsel %vm1751_vm6, %v1806_v23, %v1807_v47  ;;  %v2705_v23 = vrot.slane %v5961_v24, 6 }
 0x2e5   : > { %v6392_v49 = vsel %vm3236_vm13, %v3204_v6, %v3268_v14  ;;  %v6394_v21 = vsel %vm3237_vm11, %v3205_v9, %v3269_v40  ;;  %v1871_v50 = vpop.permute.xlu1 %1870  ;;  %v1583_v6 = vsel %vm1526_vm5, %v1581_v26, %v1582_v46  ;;  %v2036_v9 = vsel %vm1976_vm7, %v2034_v32, %v2035_v3 }
 0x2e6   : > { %v3407_v57 = vmul.f32 %v6392_v49, %v6392_v49  ;;  %v3341_v56 = vsel %vm3325_vm12, %v6392_v49, 0.0  ;;  %2554 = vrot.lane.b32.xlu0 %v2476_v38, %s4738_s14  ;;  %3006 = vrot.lane.b32.xlu1 %v2929_v36, %s4740_s16  ;;  %v3408_v28 = vmul.f32 %v6394_v21, %v6394_v21  ;;  %v3343_v20 = vsel %vm3325_vm12, %v6394_v21, 0.0 }
 0x2e7   : > { %v3342_v58 = vadd.f32 %v3341_v56, %v6309_v18  ;;  %v1584_v18 = vrot.slane %v5988_v22, 1  ;;  %v2031_v38 = vrot.slane %v5961_v24, 3  ;;  %v2032_v36 = vrot.slane %v5964_v45, 3 }
 0x2e8   : > { %v3446_v2 = vsel %vm3325_vm12, %v3407_v57, 0.0  ;;  %v1644_v53 = vpop.permute.xlu0 %1643  ;;  %v3448_v54 = vsel %vm3325_vm12, %v3408_v28, 0.0  ;;  %v2260_v28 = vsel %vm688_vm1, %v2258_v11, %v2259_v34  ;;  %v2480_v46 = vrot.slane %v5961_v24, 5 }
 0x2e9   : > { %v3447_v25 = vadd.f32 %v3446_v2, %v6318_v42  ;;  %v6413_v41 = vadd.f32 %v3343_v20, %v3342_v58  ;;  %v2096_v59 = vpop.permute.xlu1 %2095  ;;  %v1586_v43 = vsel %vm1526_vm5, %v1584_v18, %v1585_v16  ;;  %v1809_v42 = vrot.slane %v5988_v22, 2 }
 0x2ea   : > { %2779 = vrot.lane.b32.xlu0 %v2701_v30, %s4739_s15  ;;  %3008 = vrot.lane.b32.xlu1 %v2932_v39, %s4740_s16  ;;  %v1729_v63 = vadd.f32 %v1644_v53, %v5598_v15  ;;  %v2484_v2 = vrot.slane %v5991_v37, 5  ;;  %v2033_v39 = vsel %vm1976_vm7, %v2031_v38, %v2032_v36  ;;  %v2708_v18 = vrot.slane %v5988_v22, 6 }
 0x2eb   : > { %v6420_v31 = vadd.f32 %v3448_v54, %v3447_v25  ;;  %v1811_v48 = vsel %vm1751_vm6, %v1809_v42, %v1810_v10  ;;  %v2255_v25 = vrot.slane %v5961_v24, 4  ;;  %v2481_v32 = vrot.slane %v5964_v45, 5 }
 0x2ec   : > { %v1869_v61 = vpop.permute.xlu0 %1868  ;;  %v2933_v3 = vrot.slane %v5988_v22, 7  ;;  %v2723_v47 = vrot.slane %v5745_v12, 6 }
 0x2ed   : > { %v2320_v62 = vpop.permute.xlu1 %2319  ;;  %v1954_v40 = vadd.f32 %v1869_v61, %v1729_v63  ;;  %v2482_v34 = vsel %vm2425_vm8, %v2480_v46, %v2481_v32  ;;  %v1602_v46 = vrot.slane %v5756_v55, 1  ;;  %v7348_v32 = vld [vmem:[#allocation26_spill] sm:$0xff] }
 0x2ee   : > { %3134 = vrot.lane.b32.xlu0 %v5887_v52, %s4733_s21  ;;  %1661 = vrot.lane.b32.xlu1 %v1586_v43, %s4734_s29  ;;  %v1730_v52 = vadd.f32 %v1646_v44, %v5615_v60  ;;  %v2709_v43 = vrot.slane %v5991_v37, 6 }
 0x2f0   : > { %v2094_v5 = vpop.permute.xlu0 %2093  ;;  %v1955_v14 = vadd.f32 %v1871_v50, %v1730_v52  ;;  %v2483_v50 = vrot.slane %v5988_v22, 5  ;;  %v2710_v63 = vsel %vm2650_vm9, %v2708_v18, %v2709_v43  ;;  %v1600_v18 = vrot.slane %v5735_v27, 1 }
 0x2f1   : > { %v2545_v0 = vpop.permute.xlu1 %2544  ;;  %v2179_v60 = vadd.f32 %v2094_v5, %v1954_v40  ;;  %v1824_v43 = vrot.slane %v5745_v12, 2 }
 0x2f2   : > { %3136 = vrot.lane.b32.xlu0 %v5964_v45, %s4733_s21  ;;  %1886 = vrot.lane.b32.xlu1 %v1811_v48, %s4735_s10  ;;  %v2180_v15 = vadd.f32 %v2096_v59, %v1955_v14  ;;  %v2256_v59 = vrot.slane %v5964_v45, 4  ;;  %v2724_v14 = vrot.slane %v5735_v27, 6 }
 0x2f4   : > { %v2318_v35 = vpop.permute.xlu0 %2317  ;;  %v2404_v57 = vadd.f32 %v2320_v62, %v2180_v15  ;;  %v2485_v62 = vsel %vm2425_vm8, %v2483_v50, %v2484_v2  ;;  %v2257_v26 = vsel %vm688_vm1, %v2255_v25, %v2256_v59 }
 0x2f5   : > { %v2770_v4 = vpop.permute.xlu1 %2769  ;;  %v2403_v56 = vadd.f32 %v2318_v35, %v2179_v60  ;;  %v2934_v35 = vrot.slane %v5991_v37, 7 }
 0x2f6   : > { %1659 = vrot.lane.b32.xlu0 %v1583_v6, %s4734_s29  ;;  %2111 = vrot.lane.b32.xlu1 %v2036_v9, %s4736_s28  ;;  %v2629_v20 = vadd.f32 %v2545_v0, %v2404_v57  ;;  %v2948_v57 = vrot.slane %v5745_v12, 7 }
 0x2f7   : > { %v2935_v15 = vsel %vm2875_vm10, %v2933_v3, %v2934_v35  ;;  %v1603_v3 = vrot.slane %v7348_v32, 1 }
 0x2f8   : > { %v2543_v44 = vpop.permute.xlu0 %2542  ;;  %v2854_v16 = vadd.f32 %v2770_v4, %v2629_v20  ;;  %v2725_v20 = vsel %vm2650_vm9, %v2723_v47, %v2724_v14 }
 0x2f9   : > { %v2995_v58 = vpop.permute.xlu1 %2994  ;;  %v2628_v53 = vadd.f32 %v2543_v44, %v2403_v56  ;;  %v2949_v56 = vrot.slane %v5735_v27, 7 }
 0x2fa   : > { %1884 = vrot.lane.b32.xlu0 %v1808_v8, %s4735_s10  ;;  %2335 = vrot.lane.b32.xlu1 %v2260_v28, %s4737_s13  ;;  %v3079_v42 = vadd.f32 %v2995_v58, %v2854_v16  ;;  %v2936_v16 = vrot.slane %v6031_v13, 7 }
 0x2fb   : > { %v2950_v25 = vsel %vm2875_vm10, %v2948_v57, %v2949_v56 }
 0x2fc   : > { %v2768_v30 = vpop.permute.xlu0 %2767 }
 0x2fd   : > { %v2853_v54 = vadd.f32 %v2768_v30, %v2628_v53  ;;  %v6458_v61 = vpop.permute.xlu1 %2996 }
 0x2fe   : > { %2109 = vrot.lane.b32.xlu0 %v2033_v39, %s4736_s28  ;;  %2560 = vrot.lane.b32.xlu1 %v2485_v62, %s4738_s14 }
 0x2ff   : > { %v3078_v10 = vadd.f32 %v6370_v17, %v2853_v54  ;;  %v2937_v54 = vrot.slane %v6038_v1, 7 }
 0x300   : > { %v3123_v5 = vpop.permute.xlu0 %3122 }
 0x301   : > { %v3206_v0 = vadd.f32 %v6386_v7, %v3078_v10  ;;  %v3207_v48 = vadd.f32 %v3123_v5, %v3079_v42  ;;  %v1650_v52 = vpop.permute.xlu1 %1649  ;;  %v2706_v7 = vrot.slane %v5964_v45, 6  ;;  %v1825_v42 = vrot.slane %v5735_v27, 2 }
 0x302   : > { %2333 = vrot.lane.b32.xlu0 %v2257_v26, %s4737_s13  ;;  %2785 = vrot.lane.b32.xlu1 %v2710_v63, %s4739_s15  ;;  %v2938_v26 = vsel %vm2875_vm10, %v2936_v16, %v2937_v54 }
 0x303   : > { %vm3238_vm11 = vcmp.ge.f32.partialorder %v3206_v0, 0.0  ;;  %v3270_v17 = vmul.f32 0.2, %v3206_v0  ;;  %vm3239_vm13 = vcmp.ge.f32.partialorder %v3207_v48, 0.0  ;;  %v3271_v6 = vmul.f32 0.2, %v3207_v48 }
 0x304   : > { %v6474_v9 = vpop.permute.xlu0 %3124 }
 0x305   : > { %v6480_v40 = vsel %vm3238_vm11, %v3206_v0, %v3270_v17  ;;  %v6482_v4 = vsel %vm3239_vm13, %v3207_v48, %v3271_v6  ;;  %v1875_v11 = vpop.permute.xlu1 %1874  ;;  %v7350_v48 = vld [vmem:[#allocation17_spill] sm:$0xff]  ;;  %v2049_v17 = vrot.slane %v5745_v12, 3  ;;  %v2050_v6 = vrot.slane %v5735_v27, 3 }
 0x306   : > { %v3409_v60 = vmul.f32 %v6480_v40, %v6480_v40  ;;  %v3345_v44 = vsel %vm3325_vm12, %v6480_v40, 0.0  ;;  %2558 = vrot.lane.b32.xlu0 %v2482_v34, %s4738_s14  ;;  %3010 = vrot.lane.b32.xlu1 %v2935_v15, %s4740_s16  ;;  %v3410_v8 = vmul.f32 %v6482_v4, %v6482_v4  ;;  %v3347_v36 = vsel %vm3325_vm12, %v6482_v4, 0.0 }
 0x307   : > { %v3346_v45 = vadd.f32 %v3345_v44, %v6413_v41  ;;  %v2707_v41 = vsel %vm2650_vm9, %v2705_v23, %v2706_v7  ;;  %v1827_v23 = vrot.slane %v5756_v55, 2  ;;  %v1828_v7 = vrot.slane %v7348_v32, 2 }
 0x308   : > { %v3450_v38 = vsel %vm3325_vm12, %v3409_v60, 0.0  ;;  %v1648_v50 = vpop.permute.xlu0 %1647  ;;  %v3452_v53 = vsel %vm3325_vm12, %v3410_v8, 0.0  ;;  %v1826_v15 = vsel %vm1751_vm6, %v1824_v43, %v1825_v42  ;;  %v1604_v60 = vsel %vm1526_vm5, %v1602_v46, %v1603_v3 }
 0x309   : > { %v3451_v58 = vadd.f32 %v3450_v38, %v6420_v31  ;;  %v6501_v28 = vadd.f32 %v3347_v36, %v3346_v45  ;;  %v2100_v2 = vpop.permute.xlu1 %2099  ;;  %v1599_v31 = vrot.slane %v5745_v12, 1  ;;  %v1731_v63 = vadd.f32 %v1648_v50, %v7350_v48 }
 0x30a   : > { %2783 = vrot.lane.b32.xlu0 %v2707_v41, %s4739_s15  ;;  %2795 = vrot.lane.b32.xlu1 %v2725_v20, %s4739_s15  ;;  %v2051_v8 = vsel %vm1976_vm7, %v2049_v17, %v2050_v6  ;;  %v1829_v38 = vsel %vm1751_vm6, %v1827_v23, %v1828_v7  ;;  %v2273_v36 = vrot.slane %v5745_v12, 4  ;;  %v2053_v41 = vrot.slane %v7348_v32, 3  ;;  %v7352_v17 = vld [vmem:[#allocation27_spill] sm:$0xff] }
 0x30b   : > { %v6508_v30 = vadd.f32 %v3452_v53, %v3451_v58  ;;  %v1601_v5 = vsel %vm1526_vm5, %v1599_v31, %v1600_v18  ;;  %v2052_v58 = vrot.slane %v5756_v55, 3  ;;  %v2499_v31 = vrot.slane %v5735_v27, 5 }
 0x30c   : > { %v1873_v39 = vpop.permute.xlu0 %1872  ;;  %v2277_v43 = vrot.slane %v7348_v32, 4  ;;  %v2502_v46 = vrot.slane %v7348_v32, 5  ;;  %v2730_v6 = vrot.slane %v7352_v17, 6  ;;  %v1587_v23 = vrot.slane %v6031_v13, 1 }
 0x30d   : > { %v2324_v59 = vpop.permute.xlu1 %2323  ;;  %v1956_v14 = vadd.f32 %v1873_v39, %v1731_v63  ;;  %v1588_v7 = vrot.slane %v6038_v1, 1 }
 0x30e   : > { %3138 = vrot.lane.b32.xlu0 %v5991_v37, %s4733_s21  ;;  %3020 = vrot.lane.b32.xlu1 %v2950_v25, %s4740_s16  ;;  %v7349_v37 = vld [vmem:[#allocation19_spill] sm:$0xff]  ;;  %v2498_v25 = vrot.slane %v5745_v12, 5 }
 0x30f   : > { %v1732_v0 = vadd.f32 %v1650_v52, %v7349_v37 }
 0x310   : > { %v2098_v62 = vpop.permute.xlu0 %2097  ;;  %v2500_v48 = vsel %vm2425_vm8, %v2498_v25, %v2499_v31 }
 0x311   : > { %v2549_v10 = vpop.permute.xlu1 %2548  ;;  %v1957_v47 = vadd.f32 %v1875_v11, %v1732_v0  ;;  %v2181_v44 = vadd.f32 %v2098_v62, %v1956_v14  ;;  %v2274_v11 = vrot.slane %v5735_v27, 4  ;;  %v2054_v62 = vsel %vm1976_vm7, %v2052_v58, %v2053_v41 }
 0x312   : > { %1671 = vrot.lane.b32.xlu0 %v1601_v5, %s4734_s29  ;;  %3012 = vrot.lane.b32.xlu1 %v2938_v26, %s4740_s16  ;;  %v2501_v26 = vrot.slane %v5756_v55, 5 }
 0x313   : > { %v2182_v52 = vadd.f32 %v2100_v2, %v1957_v47  ;;  %v2275_v39 = vsel %vm688_vm1, %v2273_v36, %v2274_v11 }
 0x314   : > { %v2322_v35 = vpop.permute.xlu0 %2321 }
 0x315   : > { %v2774_v34 = vpop.permute.xlu1 %2773  ;;  %v2406_v50 = vadd.f32 %v2324_v59, %v2182_v52  ;;  %v2405_v57 = vadd.f32 %v2322_v35, %v2181_v44  ;;  %v2276_v59 = vrot.slane %v5756_v55, 4  ;;  %v7351_v35 = vld [vmem:[#allocation28_spill] sm:$0xff]  ;;  %v2503_v52 = vsel %vm2425_vm8, %v2501_v26, %v2502_v46 }
 0x316   : > { %1896 = vrot.lane.b32.xlu0 %v1826_v15, %s4735_s10  ;;  %1673 = vrot.lane.b32.xlu1 %v1604_v60, %s4734_s29 }
 0x317   : > { %v2631_v2 = vadd.f32 %v2549_v10, %v2406_v50  ;;  %v2278_v63 = vsel %vm688_vm1, %v2276_v59, %v2277_v43  ;;  %v1589_v50 = vsel %vm1526_vm5, %v1587_v23, %v1588_v7  ;;  %v2726_v43 = vrot.slane %v5756_v55, 6 }
 0x318   : > { %v2547_v45 = vpop.permute.xlu0 %2546 }
 0x319   : > { %v2999_v56 = vpop.permute.xlu1 %2998  ;;  %v2630_v20 = vadd.f32 %v2547_v45, %v2405_v57  ;;  %v2856_v18 = vadd.f32 %v2774_v34, %v2631_v2  ;;  %v1813_v57 = vrot.slane %v6038_v1, 2  ;;  %v7353_v2 = vld [vmem:[#allocation22_spill] sm:$0xff] }
 0x31a   : > { %2121 = vrot.lane.b32.xlu0 %v2051_v8, %s4736_s28  ;;  %1898 = vrot.lane.b32.xlu1 %v1829_v38, %s4735_s10  ;;  %v1812_v38 = vrot.slane %v6031_v13, 2 }
 0x31b   : > { %v3081_v42 = vadd.f32 %v2999_v56, %v2856_v18 }
 0x31c   : > { %v2772_v53 = vpop.permute.xlu0 %2771  ;;  %v1814_v46 = vsel %vm1751_vm6, %v1812_v38, %v1813_v57 }
 0x31d   : > { %v2855_v16 = vadd.f32 %v2772_v53, %v2630_v20  ;;  %v6548_v54 = vpop.permute.xlu1 %3000  ;;  %v1590_v20 = vrot.slane %v7353_v2, 1  ;;  %v7354_v53 = vld [vmem:[#allocation21_spill] sm:$0xff] }
 0x31e   : > { %2345 = vrot.lane.b32.xlu0 %v2275_v39, %s4737_s13  ;;  %2123 = vrot.lane.b32.xlu1 %v2054_v62, %s4736_s28  ;;  %v1591_v39 = vrot.slane %v7354_v53, 1  ;;  %v1816_v23 = vrot.slane %v7354_v53, 2 }
 0x31f   : > { %v3080_v10 = vadd.f32 %v6458_v61, %v2855_v16  ;;  %v2729_v61 = vrot.slane %v7351_v35, 6 }
 0x320   : > { %v3127_v5 = vpop.permute.xlu0 %3126 }
 0x321   : > { %v3208_v3 = vadd.f32 %v6474_v9, %v3080_v10  ;;  %v3209_v37 = vadd.f32 %v3127_v5, %v3081_v42  ;;  %v6558_v0 = vpop.permute.xlu1 %1653  ;;  %v2731_v8 = vsel %vm2650_vm9, %v2729_v61, %v2730_v6  ;;  %v2727_v42 = vrot.slane %v7348_v32, 6 }
 0x322   : > { %2570 = vrot.lane.b32.xlu0 %v2500_v48, %s4738_s14  ;;  %2347 = vrot.lane.b32.xlu1 %v2278_v63, %s4737_s13  ;;  %v1606_v10 = vrot.slane %v7352_v17, 1  ;;  %v1815_v48 = vrot.slane %v7353_v2, 2  ;;  %v1592_v6 = vsel %vm1526_vm5, %v1590_v20, %v1591_v39  ;;  %v2041_v20 = vrot.slane %v7354_v53, 3 }
 0x323   : > { %vm3240_vm11 = vcmp.ge.f32.partialorder %v3208_v3, 0.0  ;;  %v3272_v9 = vmul.f32 0.2, %v3208_v3  ;;  %vm3241_vm13 = vcmp.ge.f32.partialorder %v3209_v37, 0.0  ;;  %v3273_v47 = vmul.f32 0.2, %v3209_v37 }
 0x324   : > { %v6568_v14 = vpop.permute.xlu0 %3128  ;;  %v6633_v7 = vsel %vm2650_vm9, %v2726_v43, %v2727_v42  ;;  %v2264_v42 = vrot.slane %v7353_v2, 4 }
 0x325   : > { %v6570_v34 = vsel %vm3240_vm11, %v3208_v3, %v3272_v9  ;;  %v6572_v15 = vsel %vm3241_vm13, %v3209_v37, %v3273_v47  ;;  %v6574_v60 = vpop.permute.xlu1 %1878  ;;  %v2037_v3 = vrot.slane %v6031_v13, 3  ;;  %v2038_v37 = vrot.slane %v6038_v1, 3  ;;  %v7355_v47 = vld [vmem:[#allocation30_spill] sm:$0xff] }
 0x326   : > { %v3411_v44 = vmul.f32 %v6570_v34, %v6570_v34  ;;  %v3349_v45 = vsel %vm3325_vm12, %v6570_v34, 0.0  ;;  %3140 = vrot.lane.b32.xlu0 %v6038_v1, %s4733_s21  ;;  %2572 = vrot.lane.b32.xlu1 %v2503_v52, %s4738_s14  ;;  %v3412_v11 = vmul.f32 %v6572_v15, %v6572_v15  ;;  %v3351_v58 = vsel %vm3325_vm12, %v6572_v15, 0.0 }
 0x327   : > { %v3350_v36 = vadd.f32 %v3349_v45, %v6501_v28  ;;  %v6599_v28 = vld [vmem:[%s7256_s2] sm:$0xff]  ;;  %v1831_v9 = vrot.slane %v7352_v17, 2  ;;  %v1608_v52 = vrot.slane %v7355_v47, 1 }
 0x328   : > { %v3454_v56 = vsel %vm3325_vm12, %v3411_v44, 0.0  ;;  %v1652_v41 = vpop.permute.xlu0 %1651  ;;  %v3511_v25 = vmul.f32 %v6599_v28, %v6392_v49  ;;  %v3512_v31 = vmul.f32 %v6599_v28, %v6394_v21  ;;  %v3456_v62 = vsel %vm3325_vm12, %v3412_v11, 0.0  ;;  %v7356_v44 = vld [vmem:[#allocation29_spill] sm:$0xff] }
 0x329   : > { %v3455_v59 = vadd.f32 %v3454_v56, %v6508_v30  ;;  %v6606_v18 = vadd.f32 %v3351_v58, %v3350_v36  ;;  %v6608_v16 = vpop.permute.xlu1 %2103  ;;  %v1605_v49 = vrot.slane %v7351_v35, 1  ;;  %v3513_v21 = vmul.f32 %v6599_v28, %v6480_v40 }
 0x32a   : > { %2799 = vrot.lane.b32.xlu1 %v2731_v8, %s4739_s15  ;;  %1663 = vrot.lane.b32.xlu0 %v1589_v50, %s4734_s29  ;;  %v3591_v63 = vsel %vm3325_vm12, %v3511_v25, 0.0  ;;  %v3598_v61 = vsel %vm3325_vm12, %v3512_v31, 0.0  ;;  %v1609_v45 = vrot.slane %v7356_v44, 1  ;;  %v3514_v38 = vmul.f32 %v6599_v28, %v6482_v4 }
 0x32b   : > { %v6618_v30 = vadd.f32 %v3456_v62, %v3455_v59  ;;  %v3605_v8 = vsel %vm3325_vm12, %v3513_v21, 0.0  ;;  %v2261_v36 = vrot.slane %v6031_v13, 4  ;;  %v2262_v11 = vrot.slane %v6038_v1, 4 }
 0x32c   : > { %v1877_v26 = vpop.permute.xlu0 %1876  ;;  %v3592_v50 = vrot.slane %v3591_v63, 4  ;;  %v3599_v57 = vrot.slane %v3598_v61, 4  ;;  %v2040_v58 = vrot.slane %v7353_v2, 3  ;;  %v2039_v25 = vsel %vm1976_vm7, %v2037_v3, %v2038_v37 }
 0x32d   : > { %v2328_v40 = vpop.permute.xlu1 %2327  ;;  %v1817_v31 = vsel %vm1751_vm6, %v1815_v48, %v1816_v23  ;;  %v2486_v59 = vrot.slane %v6031_v13, 5  ;;  %v2487_v4 = vrot.slane %v6038_v1, 5  ;;  %v3606_v62 = vrot.slane %v3605_v8, 4 }
 0x32e   : > { %1888 = vrot.lane.b32.xlu0 %v1814_v46, %s4735_s10  ;;  %1665 = vrot.lane.b32.xlu1 %v1592_v6, %s4734_s29  ;;  %v3515_v43 = vmul.f32 %v6599_v28, %v6570_v34  ;;  %v6655_v21 = vsel %vm1526_vm5, %v1605_v49, %v1606_v10  ;;  %v3612_v46 = vsel %vm3325_vm12, %v3514_v38, 0.0  ;;  %v1734_v3 = vadd.f32 %v6558_v0, %v5770_v19 }
 0x32f   : > { %v1733_v37 = vadd.f32 %v1652_v41, %v5739_v33  ;;  %v2265_v48 = vrot.slane %v7354_v53, 4  ;;  %v3593_v6 = vadd.f32 %v3592_v50, %v3591_v63  ;;  %v3600_v34 = vadd.f32 %v3599_v57, %v3598_v61 }
 0x330   : > { %v2102_v56 = vpop.permute.xlu0 %2101  ;;  %v3516_v49 = vmul.f32 %v6599_v28, %v6572_v15  ;;  %v1959_v10 = vadd.f32 %v6574_v60, %v1734_v3  ;;  %v2488_v19 = vsel %vm2425_vm8, %v2486_v59, %v2487_v4  ;;  %v3607_v0 = vadd.f32 %v3606_v62, %v3605_v8 }
 0x331   : > { %v2553_v39 = vpop.permute.xlu1 %2552  ;;  %v1958_v38 = vadd.f32 %v1877_v26, %v1733_v37  ;;  %v3613_v33 = vrot.slane %v3612_v46, 4  ;;  %v3619_v41 = vsel %vm3325_vm12, %v3515_v43, 0.0  ;;  %v2711_v63 = vrot.slane %v6031_v13, 6 }
 0x332   : > { %2113 = vrot.lane.b32.xlu0 %v2039_v25, %s4736_s28  ;;  %1890 = vrot.lane.b32.xlu1 %v1817_v31, %s4735_s10  ;;  %v2263_v25 = vsel %vm688_vm1, %v2261_v36, %v2262_v11  ;;  %v2042_v31 = vsel %vm1976_vm7, %v2040_v58, %v2041_v20  ;;  %v2184_v61 = vadd.f32 %v6608_v16, %v1959_v10  ;;  %v2712_v60 = vrot.slane %v6038_v1, 6 }
 0x333   : > { %v2183_v36 = vadd.f32 %v2102_v56, %v1958_v38  ;;  %v2266_v15 = vsel %vm688_vm1, %v2264_v42, %v2265_v48  ;;  %v3594_v26 = vrot.slane %v3593_v6, 2  ;;  %v3601_v11 = vrot.slane %v3600_v34, 2 }
 0x334   : > { %v2326_v23 = vpop.permute.xlu0 %2325  ;;  %v2489_v8 = vrot.slane %v7353_v2, 5  ;;  %v2490_v57 = vrot.slane %v7354_v53, 5  ;;  %v3620_v58 = vrot.slane %v3619_v41, 4  ;;  %v3626_v20 = vsel %vm3325_vm12, %v3516_v49, 0.0 }
 0x335   : > { %v2778_v5 = vpop.permute.xlu1 %2777  ;;  %v2408_v59 = vadd.f32 %v2328_v40, %v2184_v61  ;;  %v2407_v4 = vadd.f32 %v2326_v23, %v2183_v36  ;;  %v3608_v43 = vrot.slane %v3607_v0, 2  ;;  %v3614_v16 = vadd.f32 %v3613_v33, %v3612_v46 }
 0x336   : > { %2337 = vrot.lane.b32.xlu0 %v2263_v25, %s4737_s13  ;;  %2115 = vrot.lane.b32.xlu1 %v2042_v31, %s4736_s28  ;;  %v7357_v1 = vrot.slane %v7351_v35, 2  ;;  %v6686_v42 = vsel %vm1526_vm5, %v1608_v52, %v1609_v45  ;;  %v2714_v40 = vrot.slane %v7353_v2, 6  ;;  %v2715_v48 = vrot.slane %v7354_v53, 6 }
 0x337   : > { %v2633_v3 = vadd.f32 %v2553_v39, %v2408_v59  ;;  %v3595_v23 = vadd.f32 %v3594_v26, %v3593_v6  ;;  %v3627_v46 = vrot.slane %v3626_v20, 4  ;;  %v2713_v31 = vsel %vm2650_vm9, %v2711_v63, %v2712_v60 }
 0x338   : > { %v2551_v50 = vpop.permute.xlu0 %2550  ;;  %v6683_v56 = vsel %vm1751_vm6, %v7357_v1, %v1831_v9  ;;  %v2491_v49 = vsel %vm2425_vm8, %v2489_v8, %v2490_v57  ;;  %v3602_v10 = vadd.f32 %v3601_v11, %v3600_v34  ;;  %v3621_v38 = vadd.f32 %v3620_v58, %v3619_v41 }
 0x339   : > { %v3003_v62 = vpop.permute.xlu1 %3002  ;;  %v2632_v37 = vadd.f32 %v2551_v50, %v2407_v4  ;;  %v2858_v9 = vadd.f32 %v2778_v5, %v2633_v3  ;;  %v3609_v52 = vadd.f32 %v3608_v43, %v3607_v0  ;;  %v3615_v45 = vrot.slane %v3614_v16, 2 }
 0x33a   : > { %2562 = vrot.lane.b32.xlu0 %v2488_v19, %s4738_s14  ;;  %2339 = vrot.lane.b32.xlu1 %v2266_v15, %s4737_s13  ;;  %v2055_v39 = vrot.slane %v7351_v35, 3  ;;  %v2056_v6 = vrot.slane %v7352_v17, 3  ;;  %v2939_v34 = vrot.slane %v7353_v2, 7  ;;  %v1833_v5 = vrot.slane %v7355_v47, 2 }
 0x33b   : > { %v3083_v61 = vadd.f32 %v3003_v62, %v2858_v9  ;;  %v3596_v41 = vrot.slane %v3595_v23, 1  ;;  %v3628_v36 = vadd.f32 %v3627_v46, %v3626_v20  ;;  %v2716_v0 = vsel %vm2650_vm9, %v2714_v40, %v2715_v48 }
 0x33c   : > { %v2776_v25 = vpop.permute.xlu0 %2775  ;;  %v2940_v60 = vrot.slane %v7354_v53, 7  ;;  %v3603_v26 = vrot.slane %v3602_v10, 1  ;;  %v3622_v11 = vrot.slane %v3621_v38, 2  ;;  %v3610_v58 = vrot.slane %v3609_v52, 1 }
 0x33d   : > { %v2857_v19 = vadd.f32 %v2776_v25, %v2632_v37  ;;  %v6692_v33 = vpop.permute.xlu1 %3004  ;;  %v1834_v20 = vrot.slane %v7356_v44, 2  ;;  %v2279_v59 = vrot.slane %v7351_v35, 4  ;;  %v3597_v43 = vadd.f32 %v3596_v41, %v3595_v23 }
 0x33e   : > { %2787 = vrot.lane.b32.xlu0 %v2713_v31, %s4739_s15  ;;  %2564 = vrot.lane.b32.xlu1 %v2491_v49, %s4738_s14  ;;  %v2941_v3 = vsel %vm2875_vm10, %v2939_v34, %v2940_v60  ;;  %v3604_v37 = vadd.f32 %v3603_v26, %v3602_v10  ;;  %v3611_v25 = vadd.f32 %v3610_v58, %v3609_v52  ;;  %v2059_v58 = vrot.slane %v7356_v44, 3 }
 0x33f   : > { %v3082_v63 = vadd.f32 %v6548_v54, %v2857_v19  ;;  %v3616_v54 = vadd.f32 %v3615_v45, %v3614_v16  ;;  %v2280_v16 = vrot.slane %v7352_v17, 4 }
 0x340   : > { %v3131_v15 = vpop.permute.xlu0 %3130 }
 0x341   : > { %v3210_v50 = vadd.f32 %v6568_v14, %v3082_v63  ;;  %v3211_v8 = vadd.f32 %v3131_v15, %v3083_v61  ;;  %v6704_v57 = vpop.permute.xlu1 %1657  ;;  %v3629_v14 = vrot.slane %v3628_v36, 2  ;;  %v3617_v23 = vrot.slane %v3616_v54, 1 }
 0x342   : > { %2797 = vrot.lane.b32.xlu0 %v6633_v7, %s4739_s15  ;;  %2789 = vrot.lane.b32.xlu1 %v2716_v0, %s4739_s15  ;;  %v3623_v7 = vadd.f32 %v3622_v11, %v3621_v38  ;;  %v2058_v11 = vrot.slane %v7355_v47, 3 }
 0x343   : > { %vm3242_vm11 = vcmp.ge.f32.partialorder %v3210_v50, 0.0  ;;  %v3274_v4 = vmul.f32 0.2, %v3210_v50  ;;  %vm3243_vm13 = vcmp.ge.f32.partialorder %v3211_v8, 0.0  ;;  %v3275_v62 = vmul.f32 0.2, %v3211_v8 }
 0x344   : > { %v6711_v1 = vpop.permute.xlu0 %3132  ;;  %v3630_v45 = vadd.f32 %v3629_v14, %v3628_v36  ;;  %v3624_v41 = vrot.slane %v3623_v7, 1  ;;  %v2057_v36 = vsel %vm1976_vm7, %v2055_v39, %v2056_v6 }
 0x345   : > { %v3306_v40 = vsel %vm3242_vm11, %v3210_v50, %v3274_v4  ;;  %v3307_v48 = vsel %vm3243_vm13, %v3211_v8, %v3275_v62  ;;  %v6715_v46 = vpop.permute.xlu1 %1882  ;;  %v3806_v4 = vsel %vm3792_vm3, %v3604_v37, %v3597_v43  ;;  %v3618_v62 = vadd.f32 %v3617_v23, %v3616_v54 }
 0x346   : > { %v3413_v31 = vmul.f32 %v3306_v40, %v3306_v40  ;;  %v3517_v49 = vmul.f32 %v6599_v28, %v3306_v40  ;;  %v3353_v9 = vsel %vm3325_vm12, %v3306_v40, 0.0  ;;  %1675 = vrot.lane.b32.xlu0 %v6655_v21, %s4734_s29  ;;  %3014 = vrot.lane.b32.xlu1 %v2941_v3, %s4740_s16  ;;  %v3414_v10 = vmul.f32 %v3307_v48, %v3307_v48 }
 0x347   : > { %v3354_v19 = vadd.f32 %v3353_v9, %v6606_v18  ;;  %v3518_v38 = vmul.f32 %v6599_v28, %v3307_v48  ;;  %v3355_v63 = vsel %vm3325_vm12, %v3307_v48, 0.0  ;;  %v3631_v14 = vrot.slane %v3630_v45, 1 }
 0x348   : > { %v3633_v61 = vsel %vm3325_vm12, %v3517_v49, 0.0  ;;  %v3458_v52 = vsel %vm3325_vm12, %v3413_v31, 0.0  ;;  %v1656_v34 = vpop.permute.xlu0 %1655  ;;  %v3460_v18 = vsel %vm3325_vm12, %v3414_v10, 0.0  ;;  %v3625_v39 = vadd.f32 %v3624_v41, %v3623_v7 }
 0x349   : > { %v3634_v15 = vrot.slane %v3633_v61, 4  ;;  %v3459_v21 = vadd.f32 %v3458_v52, %v6618_v30  ;;  %v6728_v0 = vadd.f32 %v3355_v63, %v3354_v19  ;;  %v6730_v60 = vpop.permute.xlu1 %2107  ;;  %v3640_v26 = vsel %vm3325_vm12, %v3518_v38, 0.0 }
 0x34a   : > { %1900 = vrot.lane.b32.xlu0 %v6683_v56, %s4735_s10  ;;  %1677 = vrot.lane.b32.xlu1 %v6686_v42, %s4734_s29  ;;  %v3641_v8 = vrot.slane %v3640_v26, 4  ;;  %v1835_v56 = vsel %vm1751_vm6, %v1833_v5, %v1834_v20  ;;  %v3807_v42 = vsel %vm3794_vm4, %v3611_v25, %v3806_v4  ;;  %v2281_v31 = vsel %vm688_vm1, %v2279_v59, %v2280_v16 }
 0x34b   : > { %v3635_v50 = vadd.f32 %v3634_v15, %v3633_v61  ;;  %v6740_v30 = vadd.f32 %v3460_v18, %v3459_v21  ;;  %v2504_v37 = vrot.slane %v7351_v35, 5  ;;  %v2505_v49 = vrot.slane %v7352_v17, 5 }
 0x34c   : > { %v1881_v3 = vpop.permute.xlu0 %1880  ;;  %v3642_v40 = vadd.f32 %v3641_v8, %v3640_v26  ;;  %v3808_v5 = vsel %vm3796_vm14, %v3618_v62, %v3807_v42  ;;  %v3632_v20 = vadd.f32 %v3631_v14, %v3630_v45  ;;  %v2282_v7 = vrot.slane %v7355_v47, 4  ;;  %v7359_v14 = vld [vmem:[#allocation32_spill] sm:$0xff]  ;;  %v7360_v42 = vld [vmem:[#allocation31_spill] sm:$0xff] }
 0x34d   : > { %v3636_v6 = vrot.slane %v3635_v50, 2  ;;  %v2332_v48 = vpop.permute.xlu1 %2331  ;;  %v2283_v9 = vrot.slane %v7356_v44, 4  ;;  %v3809_v23 = vsel %vm3798_vm15, %v3625_v39, %v3808_v5  ;;  %v2060_v59 = vsel %vm1976_vm7, %v2058_v11, %v2059_v58 }
 0x34e   : > { %2125 = vrot.lane.b32.xlu0 %v2057_v36, %s4736_s28  ;;  %1902 = vrot.lane.b32.xlu1 %v1835_v56, %s4735_s10  ;;  %v3643_v54 = vrot.slane %v3642_v40, 2  ;;  %v3810_v45 = vsel %vm3800_vm0, %v3632_v20, %v3809_v23  ;;  %v2506_v63 = vsel %vm2425_vm8, %v2504_v37, %v2505_v49  ;;  %v2507_v26 = vrot.slane %v7355_v47, 5  ;;  %v7361_v49 = vld [vmem:[#allocation18_spill] sm:$0xff] }
 0x34f   : > { %v3637_v43 = vadd.f32 %v3636_v6, %v3635_v50  ;;  %v2284_v41 = vsel %vm688_vm1, %v2282_v7, %v2283_v9  ;;  %v2508_v36 = vrot.slane %v7356_v44, 5  ;;  %v1735_v11 = vadd.f32 %v1656_v34, %v5861_v29 }
 0x350   : > { %v2106_v25 = vpop.permute.xlu0 %2105  ;;  %v3644_v10 = vadd.f32 %v3643_v54, %v3642_v40  ;;  %vm7358_vm11 = vcmask 1047559   ;;  %v1611_v56 = vrot.slane %v7359_v14, 1  ;;  %v1612_v39 = vrot.slane %v7360_v42, 1 }
 0x351   : > { %v3638_v19 = vrot.slane %v3637_v43, 1  ;;  %v2557_v38 = vpop.permute.xlu1 %2556  ;;  %v1960_v8 = vadd.f32 %v1881_v3, %v1735_v11  ;;  %v2509_v62 = vsel %vm2425_vm8, %v2507_v26, %v2508_v36  ;;  %v1736_v29 = vadd.f32 %v6704_v57, %v5884_v51  ;;  %v7362_v57 = vld [vmem:[#allocation24_spill] sm:$0xff] }
 0x352   : > { %2349 = vrot.lane.b32.xlu0 %v2281_v31, %s4737_s13  ;;  %2127 = vrot.lane.b32.xlu1 %v2060_v59, %s4736_s28  ;;  %v3645_v61 = vrot.slane %v3644_v10, 1  ;;  %v1836_v31 = vrot.slane %v7359_v14, 2  ;;  %v1613_v37 = vsel %vm1526_vm5, %v1611_v56, %v1612_v39  ;;  %v2942_v51 = vrot.slane %v7361_v49, 7 }
 0x353   : > { %v3639_v16 = vadd.f32 %v3638_v19, %v3637_v43  ;;  %v2185_v34 = vadd.f32 %v2106_v25, %v1960_v8  ;;  %v1961_v6 = vadd.f32 %v6715_v46, %v1736_v29  ;;  %v1837_v43 = vrot.slane %v7360_v42, 2 }
 0x354   : > { %v2330_v52 = vpop.permute.xlu0 %2329  ;;  %v3646_v21 = vadd.f32 %v3645_v61, %v3644_v10  ;;  %v2943_v5 = vrot.slane %v7362_v57, 7  ;;  %v2061_v23 = vrot.slane %v7359_v14, 3  ;;  %v2062_v59 = vrot.slane %v7360_v42, 3  ;;  %v7364_v61 = vld [vmem:[#allocation33_spill] sm:$0xff] }
 0x355   : > { %v3811_v15 = vsel %vm3802_vm2, %v3639_v16, %v3810_v45  ;;  %v2782_v18 = vpop.permute.xlu1 %2781  ;;  %v2409_v3 = vadd.f32 %v2330_v52, %v2185_v34  ;;  %v1838_v9 = vsel %vm1751_vm6, %v1836_v31, %v1837_v43  ;;  %v1615_v45 = vrot.slane %v7364_v61, 1 }
 0x356   : > { %2574 = vrot.lane.b32.xlu0 %v2506_v63, %s4738_s14  ;;  %2351 = vrot.lane.b32.xlu1 %v2284_v41, %s4737_s13  ;;  %v3812_v50 = vsel %vm7358_vm11, %v3646_v21, %v3811_v15  ;;  %v2944_v10 = vsel %vm2875_vm10, %v2942_v51, %v2943_v5  ;;  %v2285_v15 = vrot.slane %v7359_v14, 4  ;;  %v2286_v21 = vrot.slane %v7360_v42, 4 }
 0x357   : > { %3833 = vst.msk [vmem:[%s6354_s11 + $0x8] sm:$0xff] %vm3325_vm12, %v3812_v50  ;;  %v2063_v36 = vsel %vm1976_vm7, %v2061_v23, %v2062_v59  ;;  %v1840_v50 = vrot.slane %v7364_v61, 2  ;;  %v2065_v29 = vrot.slane %v7364_v61, 3 }
 0x358   : > { %v2555_v58 = vpop.permute.xlu0 %2554 }
 0x359   : > { %v3007_v4 = vpop.permute.xlu1 %3006  ;;  %v2634_v20 = vadd.f32 %v2555_v58, %v2409_v3 }
 0x35a   : > { %3142 = vrot.lane.b32.xlu0 %v7354_v53, %s4733_s21  ;;  %2576 = vrot.lane.b32.xlu1 %v2509_v62, %s4738_s14  ;;  %v2186_v53 = vadd.f32 %v6730_v60, %v1961_v6  ;;  %v7363_v60 = vld [vmem:[#allocation34_spill] sm:$0xff]  ;;  %v2287_v6 = vsel %vm688_vm1, %v2285_v15, %v2286_v21 }
 0x35b   : > { %v1614_v16 = vrot.slane %v7363_v60, 1  ;;  %v2064_v39 = vrot.slane %v7363_v60, 3  ;;  %v2288_v3 = vrot.slane %v7363_v60, 4  ;;  %v2513_v23 = vrot.slane %v7363_v60, 5 }
 0x35c   : > { %v2780_v40 = vpop.permute.xlu0 %2779  ;;  %v2410_v46 = vadd.f32 %v2332_v48, %v2186_v53  ;;  %v1593_v53 = vrot.slane %v7361_v49, 1 }
 0x35d   : > { %v6783_v54 = vpop.permute.xlu1 %3008  ;;  %v2859_v25 = vadd.f32 %v2780_v40, %v2634_v20  ;;  %v1616_v11 = vsel %vm1526_vm5, %v1614_v16, %v1615_v45  ;;  %v2289_v40 = vrot.slane %v7364_v61, 4  ;;  %v2066_v51 = vsel %vm1976_vm7, %v2064_v39, %v2065_v29 }
 0x35e   : > { %1679 = vrot.lane.b32.xlu0 %v1613_v37, %s4734_s29  ;;  %3144 = vrot.lane.b32.xlu1 %v7362_v57, %s4733_s21  ;;  %v2635_v52 = vadd.f32 %v2557_v38, %v2410_v46  ;;  %v1839_v38 = vrot.slane %v7363_v60, 2  ;;  %v1594_v20 = vrot.slane %v7362_v57, 1  ;;  %v2514_v16 = vrot.slane %v7364_v61, 5 }
 0x35f   : > { %v3084_v63 = vadd.f32 %v6692_v33, %v2859_v25  ;;  %v2510_v33 = vrot.slane %v7359_v14, 5  ;;  %v1818_v45 = vrot.slane %v7361_v49, 2 }
 0x360   : > { %v3135_v7 = vpop.permute.xlu0 %3134  ;;  %v2860_v48 = vadd.f32 %v2782_v18, %v2635_v52  ;;  %v2511_v18 = vrot.slane %v7360_v42, 5  ;;  %v1595_v59 = vsel %vm1526_vm5, %v1593_v53, %v1594_v20  ;;  %v1819_v52 = vrot.slane %v7362_v57, 2 }
 0x361   : > { %v6794_v19 = vpop.permute.xlu1 %1661  ;;  %v3212_v58 = vadd.f32 %v6711_v1, %v3084_v63  ;;  %v2044_v63 = vrot.slane %v7362_v57, 3  ;;  %v2268_v53 = vrot.slane %v7362_v57, 4 }
 0x362   : > { %1904 = vrot.lane.b32.xlu0 %v1838_v9, %s4735_s10  ;;  %3016 = vrot.lane.b32.xlu1 %v2944_v10, %s4740_s16  ;;  %v3085_v8 = vadd.f32 %v3007_v4, %v2860_v48  ;;  %v1841_v4 = vsel %vm1751_vm6, %v1839_v38, %v1840_v50  ;;  %v2512_v37 = vsel %vm2425_vm8, %v2510_v33, %v2511_v18  ;;  %v2043_v48 = vrot.slane %v7361_v49, 3  ;;  %v7365_v50 = vld [vmem:[#allocation23_spill] sm:$0xff]  ;;  %v7366_v33 = vld [vmem:[#allocation20_spill] sm:$0xff] }
 0x363   : > { %v3276_v1 = vmul.f32 0.2, %v3212_v58  ;;  %vm3244_vm13 = vcmp.ge.f32.partialorder %v3212_v58, 0.0  ;;  %v2290_v9 = vsel %vm688_vm1, %v2288_v3, %v2289_v40  ;;  %v1597_v18 = vrot.slane %v7366_v33, 1 }
 0x364   : > { %v6803_v41 = vpop.permute.xlu0 %3136  ;;  %v3213_v62 = vadd.f32 %v3135_v7, %v3085_v8  ;;  %v1596_v8 = vrot.slane %v7365_v50, 1  ;;  %v1820_v3 = vsel %vm1751_vm6, %v1818_v45, %v1819_v52  ;;  %v1821_v20 = vrot.slane %v7365_v50, 2 }
 0x365   : > { %v1887_v26 = vpop.permute.xlu1 %1886  ;;  %v6830_v46 = vsel %vm3244_vm13, %v3212_v58, %v3276_v1  ;;  %v7367_v58 = vld [vmem:[#allocation36_spill] sm:$0xff]  ;;  %v2492_v45 = vrot.slane %v7361_v49, 5  ;;  %v2493_v52 = vrot.slane %v7362_v57, 5 }
 0x366   : > { %2129 = vrot.lane.b32.xlu0 %v2063_v36, %s4736_s28  ;;  %1681 = vrot.lane.b32.xlu1 %v1616_v11, %s4734_s29  ;;  %v3277_v31 = vmul.f32 0.2, %v3213_v62  ;;  %vm3245_vm11 = vcmp.ge.f32.partialorder %v3213_v62, 0.0  ;;  %v3519_v15 = vmul.f32 %v6599_v28, %v6830_v46  ;;  %v1738_v36 = vadd.f32 %v6794_v19, %v5988_v22  ;;  %v7368_v19 = vld [vmem:[#allocation35_spill] sm:$0xff] }
 0x367   : > { %v2267_v22 = vrot.slane %v7361_v49, 4  ;;  %v1842_v40 = vrot.slane %v7367_v58, 2 }
 0x368   : > { %v1660_v56 = vpop.permute.xlu0 %1659  ;;  %v6832_v25 = vsel %vm3245_vm11, %v3213_v62, %v3277_v31  ;;  %v1617_v62 = vrot.slane %v7367_v58, 1  ;;  %v1963_v39 = vadd.f32 %v1887_v26, %v1738_v36  ;;  %v3647_v26 = vsel %vm3325_vm12, %v3519_v15, 0.0 }
 0x369   : > { %v2112_v34 = vpop.permute.xlu1 %2111  ;;  %v3520_v21 = vmul.f32 %v6599_v28, %v6832_v25  ;;  %v1737_v11 = vadd.f32 %v1660_v56, %v5961_v24  ;;  %v2045_v24 = vsel %vm1976_vm7, %v2043_v48, %v2044_v63  ;;  %v1618_v56 = vrot.slane %v7368_v19, 1 }
 0x36a   : > { %2353 = vrot.lane.b32.xlu0 %v2287_v6, %s4737_s13  ;;  %1906 = vrot.lane.b32.xlu1 %v1841_v4, %s4735_s10  ;;  %v2515_v4 = vsel %vm2425_vm8, %v2513_v23, %v2514_v16  ;;  %v2188_v31 = vadd.f32 %v2112_v34, %v1963_v39  ;;  %v3415_v34 = vmul.f32 %v6830_v46, %v6830_v46  ;;  %v1843_v63 = vrot.slane %v7368_v19, 2 }
 0x36b   : > { %v3654_v1 = vsel %vm3325_vm12, %v3520_v21, 0.0  ;;  %v2047_v36 = vrot.slane %v7366_v33, 3  ;;  %v6881_v39 = vsel %vm1526_vm5, %v1617_v62, %v1618_v56  ;;  %v2270_v56 = vrot.slane %v7365_v50, 4 }
 0x36c   : > { %v1885_v43 = vpop.permute.xlu0 %1884  ;;  %v3655_v48 = vrot.slane %v3654_v1, 4 }
 0x36d   : > { %v2336_v5 = vpop.permute.xlu1 %2335  ;;  %v1962_v29 = vadd.f32 %v1885_v43, %v1737_v11 }
 0x36e   : > { %2578 = vrot.lane.b32.xlu0 %v2512_v37, %s4738_s14  ;;  %2131 = vrot.lane.b32.xlu1 %v2066_v51, %s4736_s28  ;;  %v1598_v51 = vsel %vm1526_vm5, %v1596_v8, %v1597_v18  ;;  %v2412_v23 = vadd.f32 %v2336_v5, %v2188_v31  ;;  %v2046_v5 = vrot.slane %v7365_v50, 3  ;;  %v2717_v8 = vrot.slane %v7361_v49, 6 }
 0x36f   : > { %v2718_v18 = vrot.slane %v7362_v57, 6 }
 0x370   : > { %v2110_v7 = vpop.permute.xlu0 %2109 }
 0x371   : > { %v2561_v10 = vpop.permute.xlu1 %2560  ;;  %v2187_v43 = vadd.f32 %v2110_v7, %v1962_v29  ;;  %v3648_v7 = vrot.slane %v3647_v26, 4 }
 0x372   : > { %2355 = vrot.lane.b32.xlu1 %v2290_v9, %s4737_s13  ;;  %1667 = vrot.lane.b32.xlu0 %v1595_v59, %s4734_s29  ;;  %v1822_v9 = vrot.slane %v7366_v33, 2  ;;  %v2637_v15 = vadd.f32 %v2561_v10, %v2412_v23 }
 0x373   : > { %v3649_v31 = vadd.f32 %v3648_v7, %v3647_v26  ;;  %v3416_v26 = vmul.f32 %v6832_v25, %v6832_v25 }
 0x374   : > { %v2334_v38 = vpop.permute.xlu0 %2333  ;;  %v1823_v10 = vsel %vm1751_vm6, %v1821_v20, %v1822_v9 }
 0x375   : > { %v2786_v6 = vpop.permute.xlu1 %2785  ;;  %v2411_v59 = vadd.f32 %v2334_v38, %v2187_v43  ;;  %v2269_v38 = vsel %vm688_vm1, %v2267_v22, %v2268_v53  ;;  %v3357_v43 = vsel %vm3325_vm12, %v6830_v46, 0.0  ;;  %v3462_v22 = vsel %vm3325_vm12, %v3415_v34, 0.0 }
 0x376   : > { %2580 = vrot.lane.b32.xlu1 %v2515_v4, %s4738_s14  ;;  %1892 = vrot.lane.b32.xlu0 %v1820_v3, %s4735_s10  ;;  %v2862_v29 = vadd.f32 %v2786_v6, %v2637_v15  ;;  %v2048_v6 = vsel %vm1976_vm7, %v2046_v5, %v2047_v36  ;;  %v2719_v46 = vsel %vm2650_vm9, %v2717_v8, %v2718_v18  ;;  %v2271_v53 = vrot.slane %v7366_v33, 4 }
 0x377   : > { %v3358_v20 = vadd.f32 %v3357_v43, %v6728_v0  ;;  %v3463_v9 = vadd.f32 %v3462_v22, %v6740_v30  ;;  %v2720_v34 = vrot.slane %v7365_v50, 6  ;;  %v3359_v30 = vsel %vm3325_vm12, %v6832_v25, 0.0 }
 0x378   : > { %v2559_v37 = vpop.permute.xlu0 %2558  ;;  %v2272_v15 = vsel %vm688_vm1, %v2270_v56, %v2271_v53 }
 0x379   : > { %v3011_v16 = vpop.permute.xlu1 %3010  ;;  %v2636_v21 = vadd.f32 %v2559_v37, %v2411_v59  ;;  %v3656_v37 = vadd.f32 %v3655_v48, %v3654_v1  ;;  %v2495_v1 = vrot.slane %v7365_v50, 5  ;;  %v3360_v5 = vadd.f32 %v3359_v30, %v3358_v20 }
 0x37a   : > { %2117 = vrot.lane.b32.xlu0 %v2045_v24, %s4736_s28  ;;  %1669 = vrot.lane.b32.xlu1 %v1598_v51, %s4734_s29  ;;  %v2494_v24 = vsel %vm2425_vm8, %v2492_v45, %v2493_v52  ;;  %v3087_v57 = vadd.f32 %v3011_v16, %v2862_v29  ;;  %v3650_v16 = vrot.slane %v3649_v31, 2  ;;  %v2496_v52 = vrot.slane %v7366_v33, 5 }
 0x37b   : > { %v3657_v45 = vrot.slane %v3656_v37, 2 }
 0x37c   : > { %v2784_v11 = vpop.permute.xlu0 %2783  ;;  %v3651_v18 = vadd.f32 %v3650_v16, %v3649_v31 }
 0x37d   : > { %v2861_v4 = vadd.f32 %v2784_v11, %v2636_v21  ;;  %v6883_v3 = vpop.permute.xlu1 %2795  ;;  %v2721_v21 = vrot.slane %v7366_v33, 6  ;;  %v3658_v25 = vadd.f32 %v3657_v45, %v3656_v37  ;;  %v2497_v37 = vsel %vm2425_vm8, %v2495_v1, %v2496_v52 }
 0x37e   : > { %2341 = vrot.lane.b32.xlu0 %v2269_v38, %s4737_s13  ;;  %1894 = vrot.lane.b32.xlu1 %v1823_v10, %s4735_s10  ;;  %v2068_v45 = vrot.slane %v7368_v19, 3 }
 0x37f   : > { %v3086_v62 = vadd.f32 %v6783_v54, %v2861_v4  ;;  %v3659_v1 = vrot.slane %v3658_v25, 1 }
 0x380   : > { %v3139_v51 = vpop.permute.xlu0 %3138 }
 0x381   : > { %v3214_v54 = vadd.f32 %v6803_v41, %v3086_v62  ;;  %v3215_v23 = vadd.f32 %v3139_v51, %v3087_v57  ;;  %v6903_v59 = vpop.permute.xlu1 %3020  ;;  %v3464_v41 = vsel %vm3325_vm12, %v3416_v26, 0.0 }
 0x382   : > { %2566 = vrot.lane.b32.xlu0 %v2494_v24, %s4738_s14  ;;  %2119 = vrot.lane.b32.xlu1 %v2048_v6, %s4736_s28  ;;  %v3465_v36 = vadd.f32 %v3464_v41, %v3463_v9 }
 0x383   : > { %vm3246_vm13 = vcmp.ge.f32.partialorder %v3214_v54, 0.0  ;;  %v3278_v7 = vmul.f32 0.2, %v3214_v54  ;;  %vm3247_vm11 = vcmp.ge.f32.partialorder %v3215_v23, 0.0  ;;  %v3279_v0 = vmul.f32 0.2, %v3215_v23 }
 0x384   : > { %v1672_v48 = vpop.permute.xlu0 %1671 }
 0x385   : > { %v3310_v11 = vsel %vm3246_vm13, %v3214_v54, %v3278_v7  ;;  %v3311_v38 = vsel %vm3247_vm11, %v3215_v23, %v3279_v0  ;;  %v6914_v8 = vpop.permute.xlu1 %3012  ;;  %v1743_v6 = vadd.f32 %v1672_v48, %v5745_v12  ;;  %v2067_v12 = vrot.slane %v7367_v58, 3 }
 0x386   : > { %v3417_v29 = vmul.f32 %v3310_v11, %v3310_v11  ;;  %v3521_v4 = vmul.f32 %v6599_v28, %v3310_v11  ;;  %v3361_v10 = vsel %vm3325_vm12, %v3310_v11, 0.0  ;;  %2791 = vrot.lane.b32.xlu0 %v2719_v46, %s4739_s15  ;;  %2343 = vrot.lane.b32.xlu1 %v2272_v15, %s4737_s13  ;;  %v3418_v43 = vmul.f32 %v3311_v38, %v3311_v38 }
 0x387   : > { %v3362_v24 = vadd.f32 %v3361_v10, %v3360_v5  ;;  %v3522_v22 = vmul.f32 %v6599_v28, %v3311_v38  ;;  %v3363_v31 = vsel %vm3325_vm12, %v3311_v38, 0.0  ;;  %v3652_v7 = vrot.slane %v3651_v18, 1 }
 0x388   : > { %v3661_v57 = vsel %vm3325_vm12, %v3521_v4, 0.0  ;;  %v3466_v62 = vsel %vm3325_vm12, %v3417_v29, 0.0  ;;  %v1897_v56 = vpop.permute.xlu0 %1896  ;;  %v3468_v20 = vsel %vm3325_vm12, %v3418_v43, 0.0  ;;  %v2722_v5 = vsel %vm2650_vm9, %v2720_v34, %v2721_v21 }
 0x389   : > { %v3662_v26 = vrot.slane %v3661_v57, 4  ;;  %v3467_v51 = vadd.f32 %v3466_v62, %v3465_v36  ;;  %v6925_v53 = vadd.f32 %v3363_v31, %v3362_v24  ;;  %v1674_v46 = vpop.permute.xlu1 %1673  ;;  %v3668_v28 = vsel %vm3325_vm12, %v3522_v22, 0.0  ;;  %v7370_v22 = vld [vmem:[#allocation37_spill] sm:$0xff] }
 0x38a   : > { %v1968_v9 = vadd.f32 %v1897_v56, %v1743_v6  ;;  %1683 = vrot.lane.b32.xlu0 %v6881_v39, %s4734_s29  ;;  %2568 = vrot.lane.b32.xlu1 %v2497_v37, %s4738_s14  ;;  %v3669_v16 = vrot.slane %v3668_v28, 4  ;;  %v1744_v52 = vadd.f32 %v1674_v46, %v5756_v55  ;;  %v1844_v39 = vsel %vm1751_vm6, %v1842_v40, %v1843_v63  ;;  %v7369_v63 = vld [vmem:[#allocation38_spill] sm:$0xff] }
 0x38b   : > { %v3663_v54 = vadd.f32 %v3662_v26, %v3661_v57  ;;  %v6934_v23 = vadd.f32 %v3468_v20, %v3467_v51  ;;  %v2291_v29 = vrot.slane %v7367_v58, 4  ;;  %v2292_v4 = vrot.slane %v7368_v19, 4 }
 0x38c   : > { %v2122_v0 = vpop.permute.xlu0 %2121  ;;  %v3670_v41 = vadd.f32 %v3669_v16, %v3668_v28  ;;  %v3653_v10 = vadd.f32 %v3652_v7, %v3651_v18  ;;  %v3660_v24 = vadd.f32 %v3659_v1, %v3658_v25  ;;  %v1620_v43 = vrot.slane %v7369_v63, 1 }
 0x38d   : > { %v3664_v30 = vrot.slane %v3663_v54, 2  ;;  %v2193_v48 = vadd.f32 %v2122_v0, %v1968_v9  ;;  %v1899_v15 = vpop.permute.xlu1 %1898  ;;  %v1621_v57 = vrot.slane %v7370_v22, 1  ;;  %v2069_v6 = vsel %vm1976_vm7, %v2067_v12, %v2068_v45 }
 0x38e   : > { %v1969_v36 = vadd.f32 %v1899_v15, %v1744_v52  ;;  %1908 = vrot.lane.b32.xlu0 %v1844_v39, %s4735_s10  ;;  %2793 = vrot.lane.b32.xlu1 %v2722_v5, %s4739_s15  ;;  %v3671_v38 = vrot.slane %v3670_v41, 2  ;;  %v2293_v25 = vsel %vm688_vm1, %v2291_v29, %v2292_v4  ;;  %v2516_v51 = vrot.slane %v7367_v58, 5 }
 0x38f   : > { %v3665_v11 = vadd.f32 %v3664_v30, %v3663_v54  ;;  %v3813_v46 = vsel %vm3792_vm3, %v3660_v24, %v3653_v10  ;;  %v1622_v20 = vsel %vm1526_vm5, %v1620_v43, %v1621_v57  ;;  %v2517_v28 = vrot.slane %v7368_v19, 5 }
 0x390   : > { %v2346_v40 = vpop.permute.xlu0 %2345  ;;  %v3672_v34 = vadd.f32 %v3671_v38, %v3670_v41  ;;  %v1845_v9 = vrot.slane %v7369_v63, 2  ;;  %v1846_v45 = vrot.slane %v7370_v22, 2  ;;  %v2071_v15 = vrot.slane %v7370_v22, 3 }
 0x391   : > { %v3666_v62 = vrot.slane %v3665_v11, 1  ;;  %v2417_v21 = vadd.f32 %v2346_v40, %v2193_v48  ;;  %v2124_v31 = vpop.permute.xlu1 %2123  ;;  %v2518_v39 = vsel %vm2425_vm8, %v2516_v51, %v2517_v28  ;;  %v2070_v48 = vrot.slane %v7369_v63, 3 }
 0x392   : > { %v2194_v56 = vadd.f32 %v2124_v31, %v1969_v36  ;;  %2133 = vrot.lane.b32.xlu0 %v2069_v6, %s4736_s28  ;;  %3148 = vrot.lane.b32.xlu1 %v5735_v27, %s4733_s21  ;;  %v3673_v18 = vrot.slane %v3672_v34, 1  ;;  %v1847_v41 = vsel %vm1751_vm6, %v1845_v9, %v1846_v45  ;;  %v2295_v38 = vrot.slane %v7370_v22, 4 }
 0x393   : > { %v3667_v26 = vadd.f32 %v3666_v62, %v3665_v11  ;;  %v2294_v11 = vrot.slane %v7369_v63, 4  ;;  %v2072_v4 = vsel %vm1976_vm7, %v2070_v48, %v2071_v15  ;;  %v2945_v10 = vrot.slane %v7365_v50, 7 }
 0x394   : > { %v2571_v37 = vpop.permute.xlu0 %2570  ;;  %v3674_v54 = vadd.f32 %v3673_v18, %v3672_v34  ;;  %v2951_v57 = vrot.slane %v5756_v55, 7  ;;  %v2952_v62 = vrot.slane %v7348_v32, 7  ;;  %v2519_v6 = vrot.slane %v7369_v63, 5 }
 0x395   : > { %v3814_v12 = vsel %vm3794_vm4, %v3667_v26, %v3813_v46  ;;  %v2642_v16 = vadd.f32 %v2571_v37, %v2417_v21  ;;  %v2348_v27 = vpop.permute.xlu1 %2347  ;;  %v2296_v43 = vsel %vm688_vm1, %v2294_v11, %v2295_v38  ;;  %v2732_v55 = vrot.slane %v7355_v47, 6 }
 0x396   : > { %v2418_v7 = vadd.f32 %v2348_v27, %v2194_v56  ;;  %2357 = vrot.lane.b32.xlu0 %v2293_v25, %s4737_s13  ;;  %1685 = vrot.lane.b32.xlu1 %v1622_v20, %s4734_s29  ;;  %v6965_v1 = vsel %vm3796_vm14, %v3674_v54, %v3814_v12  ;;  %v2520_v56 = vrot.slane %v7370_v22, 5  ;;  %v2953_v26 = vsel %vm2875_vm10, %v2951_v57, %v2952_v62 }
 0x397   : > { %v2867_v52 = vadd.f32 %v6883_v3, %v2642_v16  ;;  %v2733_v18 = vrot.slane %v7356_v44, 6  ;;  %v2954_v37 = vrot.slane %v7351_v35, 7  ;;  %v2955_v20 = vrot.slane %v7352_v17, 7 }
 0x398   : > { %v6968_v0 = vpop.permute.xlu0 %3140  ;;  %v2521_v46 = vsel %vm2425_vm8, %v2519_v6, %v2520_v56  ;;  %v2735_v27 = vrot.slane %v7359_v14, 6  ;;  %v2736_v45 = vrot.slane %v7360_v42, 6  ;;  %v2957_v48 = vrot.slane %v7355_v47, 7 }
 0x399   : > { %v2573_v30 = vpop.permute.xlu1 %2572  ;;  %v6975_v5 = vadd.f32 %v6903_v59, %v2867_v52  ;;  %v2946_v59 = vrot.slane %v7366_v33, 7  ;;  %v2734_v9 = vsel %vm2650_vm9, %v2732_v55, %v2733_v18  ;;  %v2956_v16 = vsel %vm2875_vm10, %v2954_v37, %v2955_v20 }
 0x39a   : > { %v6977_v36 = vadd.f32 %v2573_v30, %v2418_v7  ;;  %2582 = vrot.lane.b32.xlu0 %v2518_v39, %s4738_s14  ;;  %1910 = vrot.lane.b32.xlu1 %v1847_v41, %s4735_s10  ;;  %v2737_v41 = vsel %vm2650_vm9, %v2735_v27, %v2736_v45  ;;  %v2958_v15 = vrot.slane %v7356_v44, 7  ;;  %v2738_v38 = vrot.slane %v7363_v60, 6 }
 0x39b   : > { %v2947_v31 = vsel %vm2875_vm10, %v2945_v10, %v2946_v59  ;;  %v2963_v55 = vrot.slane %v7363_v60, 7  ;;  %vm7371_vm13 = vcmask 1047559  }
 0x39c   : > { %v1664_v3 = vpop.permute.xlu0 %1663 }
 0x39d   : > { %v6983_v29 = vpop.permute.xlu1 %2799  ;;  %v1739_v24 = vadd.f32 %v1664_v3, %v6031_v13 }
 0x39e   : > { %3146 = vrot.lane.b32.xlu0 %v7366_v33, %s4733_s21  ;;  %2135 = vrot.lane.b32.xlu1 %v2072_v4, %s4736_s28  ;;  %v2739_v4 = vrot.slane %v7364_v61, 6 }
 0x3a0   : > { %v1889_v40 = vpop.permute.xlu0 %1888 }
 0x3a1   : > { %v1964_v34 = vadd.f32 %v1889_v40, %v1739_v24  ;;  %v1666_v21 = vpop.permute.xlu1 %1665  ;;  %v2959_v24 = vsel %vm2875_vm10, %v2957_v48, %v2958_v15  ;;  %v2960_v40 = vrot.slane %v7359_v14, 7 }
 0x3a2   : > { %3018 = vrot.lane.b32.xlu0 %v2947_v31, %s4740_s16  ;;  %2359 = vrot.lane.b32.xlu1 %v2296_v43, %s4737_s13  ;;  %v1740_v13 = vadd.f32 %v1666_v21, %v7353_v2  ;;  %v2961_v43 = vrot.slane %v7360_v42, 7  ;;  %v2741_v21 = vrot.slane %v7367_v58, 6 }
 0x3a4   : > { %v2114_v33 = vpop.permute.xlu0 %2113 }
 0x3a5   : > { %v2189_v25 = vadd.f32 %v2114_v33, %v1964_v34  ;;  %v1891_v51 = vpop.permute.xlu1 %1890  ;;  %v2740_v34 = vsel %vm2650_vm9, %v2738_v38, %v2739_v4  ;;  %v2742_v33 = vrot.slane %v7368_v19, 6 }
 0x3a6   : > { %v1965_v28 = vadd.f32 %v1891_v51, %v1740_v13  ;;  %3022 = vrot.lane.b32.xlu0 %v2953_v26, %s4740_s16  ;;  %2584 = vrot.lane.b32.xlu1 %v2521_v46, %s4738_s14  ;;  %v2962_v13 = vsel %vm2875_vm10, %v2960_v40, %v2961_v43  ;;  %v7046_v46 = vld [vmem:[%s7256_s2] sm:$0xff] }
 0x3a8   : > { %v2338_v2 = vpop.permute.xlu0 %2337 }
 0x3a9   : > { %v2413_v12 = vadd.f32 %v2338_v2, %v2189_v25  ;;  %v2116_v54 = vpop.permute.xlu1 %2115  ;;  %v2743_v25 = vsel %vm2650_vm9, %v2741_v21, %v2742_v33 }
 0x3aa   : > { %v2190_v7 = vadd.f32 %v2116_v54, %v1965_v28  ;;  %2801 = vrot.lane.b32.xlu0 %v2734_v9, %s4739_s15  ;;  %3024 = vrot.lane.b32.xlu1 %v2956_v16, %s4740_s16  ;;  %v2744_v9 = vrot.slane %v7369_v63, 6 }
 0x3ac   : > { %v2563_v52 = vpop.permute.xlu0 %2562 }
 0x3ad   : > { %v2638_v39 = vadd.f32 %v2563_v52, %v2413_v12  ;;  %v2340_v30 = vpop.permute.xlu1 %2339  ;;  %v2745_v12 = vrot.slane %v7370_v22, 6 }
 0x3ae   : > { %v2414_v3 = vadd.f32 %v2340_v30, %v2190_v7  ;;  %3150 = vrot.lane.b32.xlu0 %v7348_v32, %s4733_s21  ;;  %2803 = vrot.lane.b32.xlu1 %v2737_v41, %s4739_s15  ;;  %v2966_v7 = vrot.slane %v7367_v58, 7 }
 0x3b0   : > { %v2788_v11 = vpop.permute.xlu0 %2787 }
 0x3b1   : > { %v2863_v10 = vadd.f32 %v2788_v11, %v2638_v39  ;;  %v2565_v59 = vpop.permute.xlu1 %2564  ;;  %v2969_v11 = vrot.slane %v7369_v63, 7 }
 0x3b2   : > { %v2639_v57 = vadd.f32 %v2565_v59, %v2414_v3  ;;  %3026 = vrot.lane.b32.xlu0 %v2959_v24, %s4740_s16  ;;  %3152 = vrot.lane.b32.xlu1 %v7352_v17, %s4733_s21  ;;  %v2746_v3 = vsel %vm2650_vm9, %v2744_v9, %v2745_v12 }
 0x3b3   : > { %v3088_v32 = vadd.f32 %v6914_v8, %v2863_v10 }
 0x3b4   : > { %v2798_v62 = vpop.permute.xlu0 %2797 }
 0x3b5   : > { %v3216_v31 = vadd.f32 %v6968_v0, %v3088_v32  ;;  %v7034_v6 = vadd.f32 %v2798_v62, %v6977_v36  ;;  %v2790_v56 = vpop.permute.xlu1 %2789  ;;  %v2964_v0 = vrot.slane %v7364_v61, 7 }
 0x3b6   : > { %v2864_v26 = vadd.f32 %v2790_v56, %v2639_v57  ;;  %2805 = vrot.lane.b32.xlu0 %v2740_v34, %s4739_s15  ;;  %3028 = vrot.lane.b32.xlu1 %v2962_v13, %s4740_s16 }
 0x3b7   : > { %vm3248_vm1 = vcmp.ge.f32.partialorder %v3216_v31, 0.0  ;;  %v3280_v17 = vmul.f32 0.2, %v3216_v31  ;;  %v2965_v45 = vsel %vm2875_vm10, %v2963_v55, %v2964_v0 }
 0x3b8   : > { %v1676_v8 = vpop.permute.xlu0 %1675 }
 0x3b9   : > { %v3312_v18 = vsel %vm3248_vm1, %v3216_v31, %v3280_v17  ;;  %v3015_v36 = vpop.permute.xlu1 %3014  ;;  %v1745_v2 = vadd.f32 %v1676_v8, %v7351_v35  ;;  %v2967_v35 = vrot.slane %v7368_v19, 7 }
 0x3ba   : > { %v3419_v51 = vmul.f32 %v3312_v18, %v3312_v18  ;;  %v3523_v37 = vmul.f32 %v7046_v46, %v3312_v18  ;;  %v3089_v20 = vadd.f32 %v3015_v36, %v2864_v26  ;;  %3154 = vrot.lane.b32.xlu0 %v7356_v44, %s4733_s21  ;;  %2807 = vrot.lane.b32.xlu1 %v2743_v25, %s4739_s15  ;;  %v3365_v28 = vsel %vm3325_vm12, %v3312_v18, 0.0 }
 0x3bb   : > { %v3366_v54 = vadd.f32 %v3365_v28, %v6925_v53  ;;  %v2968_v59 = vsel %vm2875_vm10, %v2966_v7, %v2967_v35 }
 0x3bc   : > { %v3675_v16 = vsel %vm3325_vm12, %v3523_v37, 0.0  ;;  %v1901_v27 = vpop.permute.xlu0 %1900  ;;  %v3470_v44 = vsel %vm3325_vm12, %v3419_v51, 0.0 }
 0x3bd   : > { %v3676_v52 = vrot.slane %v3675_v16, 4  ;;  %v1970_v39 = vadd.f32 %v1901_v27, %v1745_v2  ;;  %v1678_v30 = vpop.permute.xlu1 %1677  ;;  %v3471_v41 = vadd.f32 %v3470_v44, %v6934_v23  ;;  %v2970_v23 = vrot.slane %v7370_v22, 7 }
 0x3be   : > { %3030 = vrot.lane.b32.xlu0 %v2965_v45, %s4740_s16  ;;  %3156 = vrot.lane.b32.xlu1 %v7360_v42, %s4733_s21  ;;  %v1746_v48 = vadd.f32 %v1678_v30, %v7355_v47 }
 0x3bf   : > { %v3677_v53 = vadd.f32 %v3676_v52, %v3675_v16  ;;  %v2971_v32 = vsel %vm2875_vm10, %v2969_v11, %v2970_v23 }
 0x3c0   : > { %v2126_v15 = vpop.permute.xlu0 %2125 }
 0x3c1   : > { %v3678_v38 = vrot.slane %v3677_v53, 2  ;;  %v2195_v4 = vadd.f32 %v2126_v15, %v1970_v39  ;;  %v1903_v10 = vpop.permute.xlu1 %1902 }
 0x3c2   : > { %v1971_v24 = vadd.f32 %v1903_v10, %v1746_v48  ;;  %2809 = vrot.lane.b32.xlu0 %v2746_v3, %s4739_s15  ;;  %3032 = vrot.lane.b32.xlu1 %v2968_v59, %s4740_s16 }
 0x3c3   : > { %v3679_v42 = vadd.f32 %v3678_v38, %v3677_v53 }
 0x3c4   : > { %v2350_v40 = vpop.permute.xlu0 %2349 }
 0x3c5   : > { %v3680_v47 = vrot.slane %v3679_v42, 1  ;;  %v2419_v43 = vadd.f32 %v2350_v40, %v2195_v4  ;;  %v2128_v57 = vpop.permute.xlu1 %2127 }
 0x3c6   : > { %v2196_v62 = vadd.f32 %v2128_v57, %v1971_v24  ;;  %3158 = vrot.lane.b32.xlu0 %v7364_v61, %s4733_s21  ;;  %3034 = vrot.lane.b32.xlu1 %v2971_v32, %s4740_s16 }
 0x3c7   : > { %v3681_v34 = vadd.f32 %v3680_v47, %v3679_v42 }
 0x3c8   : > { %v2575_v21 = vpop.permute.xlu0 %2574 }
 0x3c9   : > { %v2644_v31 = vadd.f32 %v2575_v21, %v2419_v43  ;;  %v2352_v56 = vpop.permute.xlu1 %2351  ;;  %v3816_v13 = vsel %vm3798_vm15, %v3681_v34, %v6965_v1 }
 0x3ca   : > { %v2420_v33 = vadd.f32 %v2352_v56, %v2196_v62  ;;  %3160 = vrot.lane.b32.xlu0 %v7368_v19, %s4733_s21  ;;  %3162 = vrot.lane.b32.xlu1 %v7370_v22, %s4733_s21 }
 0x3cb   : > { %v7084_v26 = vadd.f32 %v6983_v29, %v2644_v31 }
 0x3cc   : > { %v3143_v61 = vpop.permute.xlu0 %3142 }
 0x3cd   : > { %v3217_v17 = vadd.f32 %v3143_v61, %v3089_v20  ;;  %v2577_v8 = vpop.permute.xlu1 %2576 }
 0x3ce   : > { %v7086_v55 = vadd.f32 %v2577_v8, %v2420_v33 }
 0x3cf   : > { %vm3249_vm5 = vcmp.ge.f32.partialorder %v3217_v17, 0.0  ;;  %v3281_v0 = vmul.f32 0.2, %v3217_v17 }
 0x3d0   : > { %v1680_v18 = vpop.permute.xlu0 %1679 }
 0x3d1   : > { %v3313_v36 = vsel %vm3249_vm5, %v3217_v17, %v3281_v0  ;;  %v3145_v1 = vpop.permute.xlu1 %3144  ;;  %v1747_v22 = vadd.f32 %v1680_v18, %v7359_v14 }
 0x3d2   : > { %v3367_v25 = vsel %vm3325_vm12, %v3313_v36, 0.0  ;;  %v3420_v51 = vmul.f32 %v3313_v36, %v3313_v36  ;;  %v3524_v19 = vmul.f32 %v7046_v46, %v3313_v36 }
 0x3d3   : > { %v3368_v37 = vadd.f32 %v3367_v25, %v3366_v54 }
 0x3d4   : > { %v3472_v29 = vsel %vm3325_vm12, %v3420_v51, 0.0  ;;  %v3682_v20 = vsel %vm3325_vm12, %v3524_v19, 0.0  ;;  %v1905_v28 = vpop.permute.xlu0 %1904 }
 0x3d5   : > { %v3473_v2 = vadd.f32 %v3472_v29, %v3471_v41  ;;  %v3683_v9 = vrot.slane %v3682_v20, 4  ;;  %v1972_v12 = vadd.f32 %v1905_v28, %v1747_v22  ;;  %v3017_v16 = vpop.permute.xlu1 %3016 }
 0x3d7   : > { %v3684_v27 = vadd.f32 %v3683_v9, %v3682_v20 }
 0x3d8   : > { %v2130_v45 = vpop.permute.xlu0 %2129 }
 0x3d9   : > { %v3685_v7 = vrot.slane %v3684_v27, 2  ;;  %v2197_v44 = vadd.f32 %v2130_v45, %v1972_v12  ;;  %v1682_v52 = vpop.permute.xlu1 %1681 }
 0x3da   : > { %v1748_v30 = vadd.f32 %v1682_v52, %v7363_v60 }
 0x3db   : > { %v3686_v39 = vadd.f32 %v3685_v7, %v3684_v27 }
 0x3dc   : > { %v2354_v54 = vpop.permute.xlu0 %2353 }
 0x3dd   : > { %v3687_v35 = vrot.slane %v3686_v39, 1  ;;  %v2421_v14 = vadd.f32 %v2354_v54, %v2197_v44  ;;  %v1907_v53 = vpop.permute.xlu1 %1906 }
 0x3de   : > { %v1973_v48 = vadd.f32 %v1907_v53, %v1748_v30 }
 0x3df   : > { %v3688_v15 = vadd.f32 %v3687_v35, %v3686_v39 }
 0x3e0   : > { %v2579_v3 = vpop.permute.xlu0 %2578 }
 0x3e1   : > { %v3817_v41 = vsel %vm3800_vm0, %v3688_v15, %v3816_v13  ;;  %v7095_v11 = vadd.f32 %v2579_v3, %v2421_v14  ;;  %v2132_v38 = vpop.permute.xlu1 %2131 }
 0x3e2   : > { %v2198_v4 = vadd.f32 %v2132_v38, %v1973_v48 }
 0x3e4   : > { %v1668_v10 = vpop.permute.xlu0 %1667 }
 0x3e5   : > { %v2356_v59 = vpop.permute.xlu1 %2355  ;;  %v1741_v43 = vadd.f32 %v1668_v10, %v7361_v49 }
 0x3e6   : > { %v2422_v23 = vadd.f32 %v2356_v59, %v2198_v4 }
 0x3e8   : > { %v1893_v24 = vpop.permute.xlu0 %1892 }
 0x3e9   : > { %v2581_v42 = vpop.permute.xlu1 %2580  ;;  %v1966_v32 = vadd.f32 %v1893_v24, %v1741_v43 }
 0x3ea   : > { %v7097_v40 = vadd.f32 %v2581_v42, %v2422_v23 }
 0x3ec   : > { %v2118_v60 = vpop.permute.xlu0 %2117 }
 0x3ed   : > { %v1670_v47 = vpop.permute.xlu1 %1669  ;;  %v2191_v34 = vadd.f32 %v2118_v60, %v1966_v32 }
 0x3ee   : > { %v1742_v52 = vadd.f32 %v1670_v47, %v7365_v50 }
 0x3f0   : > { %v2342_v57 = vpop.permute.xlu0 %2341 }
 0x3f1   : > { %v1895_v62 = vpop.permute.xlu1 %1894  ;;  %v2415_v31 = vadd.f32 %v2342_v57, %v2191_v34 }
 0x3f2   : > { %v1967_v54 = vadd.f32 %v1895_v62, %v1742_v52 }
 0x3f4   : > { %v2567_v21 = vpop.permute.xlu0 %2566 }
 0x3f5   : > { %v2120_v56 = vpop.permute.xlu1 %2119  ;;  %v2640_v13 = vadd.f32 %v2567_v21, %v2415_v31 }
 0x3f6   : > { %v2192_v53 = vadd.f32 %v2120_v56, %v1967_v54 }
 0x3f8   : > { %v2792_v33 = vpop.permute.xlu0 %2791 }
 0x3f9   : > { %v2865_v61 = vadd.f32 %v2792_v33, %v2640_v13  ;;  %v2344_v17 = vpop.permute.xlu1 %2343 }
 0x3fb   : > { %v3090_v8 = vadd.f32 %v3017_v16, %v2865_v61 }
 0x3fc   : > { %v7100_v0 = vpop.permute.xlu0 %1683 }
 0x3fd   : > { %v3218_v18 = vadd.f32 %v3145_v1, %v3090_v8  ;;  %v2569_v36 = vpop.permute.xlu1 %2568 }
 0x3ff   : > { %vm3250_vm6 = vcmp.ge.f32.partialorder %v3218_v18, 0.0  ;;  %v3282_v25 = vmul.f32 0.2, %v3218_v18 }
 0x400   : > { %v7102_v51 = vpop.permute.xlu0 %1908 }
 0x401   : > { %v3314_v49 = vsel %vm3250_vm6, %v3218_v18, %v3282_v25  ;;  %v2794_v19 = vpop.permute.xlu1 %2793  ;;  %vm3984_vm6 = vcmask (!%p4142_p4), 516096  }
 0x402   : > { %v3369_v22 = vsel %vm3325_vm12, %v3314_v49, 0.0  ;;  %v3421_v29 = vmul.f32 %v3314_v49, %v3314_v49  ;;  %v3525_v20 = vmul.f32 %v7046_v46, %v3314_v49 }
 0x403   : > { %v3370_v28 = vadd.f32 %v3369_v22, %v3368_v37 }
 0x404   : > { %v3474_v9 = vsel %vm3325_vm12, %v3421_v29, 0.0  ;;  %v3689_v12 = vsel %vm3325_vm12, %v3525_v20, 0.0  ;;  %v7108_v16 = vpop.permute.xlu0 %2133 }
 0x405   : > { %v3690_v1 = vrot.slane %v3689_v12, 4  ;;  %v3149_v27 = vpop.permute.xlu1 %3148  ;;  %v3475_v45 = vadd.f32 %v3474_v9, %v3473_v2  ;;  %v2416_v2 = vadd.f32 %v2344_v17, %v2192_v53 }
 0x406   : > { %v3220_v37 = vadd.f32 %v3149_v27, %v6975_v5 }
 0x407   : > { %v3691_v7 = vadd.f32 %v3690_v1, %v3689_v12  ;;  %v2641_v10 = vadd.f32 %v2569_v36, %v2416_v2 }
 0x408   : > { %v7110_v44 = vpop.permute.xlu0 %2357  ;;  %v3284_v38 = vmul.f32 0.2, %v3220_v37  ;;  %vm3252_vm7 = vcmp.ge.f32.partialorder %v3220_v37, 0.0 }
 0x409   : > { %v3692_v39 = vrot.slane %v3691_v7, 2  ;;  %v7113_v30 = vpop.permute.xlu1 %1685  ;;  %v2866_v23 = vadd.f32 %v2794_v19, %v2641_v10 }
 0x40a   : > { %v3316_v24 = vsel %vm3252_vm7, %v3220_v37, %v3284_v38 }
 0x40b   : > { %v3693_v35 = vadd.f32 %v3692_v39, %v3691_v7  ;;  %v3527_v47 = vmul.f32 %v7046_v46, %v3316_v24  ;;  %v3423_v21 = vmul.f32 %v3316_v24, %v3316_v24  ;;  %v3373_v18 = vsel %vm3325_vm12, %v3316_v24, 0.0 }
 0x40c   : > { %v7116_v14 = vpop.permute.xlu0 %2582 }
 0x40d   : > { %v3694_v48 = vrot.slane %v3693_v35, 1  ;;  %v7118_v15 = vpop.permute.xlu1 %1910  ;;  %v3478_v20 = vsel %vm3325_vm12, %v3423_v21, 0.0 }
 0x40f   : > { %v3695_v3 = vadd.f32 %v3694_v48, %v3693_v35 }
 0x410   : > { %v3147_v4 = vpop.permute.xlu0 %3146 }
 0x411   : > { %v7121_v50 = vsel %vm3802_vm2, %v3695_v3, %v3817_v41  ;;  %v7123_v59 = vpop.permute.xlu1 %2135  ;;  %v3703_v41 = vsel %vm3325_vm12, %v3527_v47, 0.0 }
 0x412   : > { %v3704_v61 = vrot.slane %v3703_v41, 4 }
 0x414   : > { %v3019_v5 = vpop.permute.xlu0 %3018  ;;  %v3705_v12 = vadd.f32 %v3704_v61, %v3703_v41  ;;  %v1750_v61 = vadd.f32 %v7113_v30, %v7369_v63 }
 0x415   : > { %v3091_v42 = vadd.f32 %v3019_v5, %v2866_v23  ;;  %v7125_v60 = vpop.permute.xlu1 %2359 }
 0x416   : > { %v3706_v37 = vrot.slane %v3705_v12, 2 }
 0x417   : > { %v3219_v43 = vadd.f32 %v3147_v4, %v3091_v42  ;;  %v1749_v4 = vadd.f32 %v7100_v0, %v7367_v58 }
 0x418   : > { %v3023_v57 = vpop.permute.xlu0 %3022 }
 0x419   : > { %vm3251_vm8 = vcmp.ge.f32.partialorder %v3219_v43, 0.0  ;;  %v3283_v32 = vmul.f32 0.2, %v3219_v43  ;;  %v7128_v62 = vpop.permute.xlu1 %2584  ;;  %v3093_v22 = vadd.f32 %v3023_v57, %v7034_v6  ;;  %v1974_v21 = vadd.f32 %v7102_v51, %v1749_v4 }
 0x41b   : > { %v3315_v34 = vsel %vm3251_vm8, %v3219_v43, %v3283_v32  ;;  %v3707_v43 = vadd.f32 %v3706_v37, %v3705_v12 }
 0x41c   : > { %v3371_v31 = vsel %vm3325_vm12, %v3315_v34, 0.0  ;;  %v3422_v56 = vmul.f32 %v3315_v34, %v3315_v34  ;;  %v3526_v13 = vmul.f32 %v7046_v46, %v3315_v34  ;;  %v2802_v33 = vpop.permute.xlu0 %2801 }
 0x41d   : > { %v3372_v17 = vadd.f32 %v3371_v31, %v3370_v28  ;;  %v3025_v8 = vpop.permute.xlu1 %3024  ;;  %v2870_v23 = vadd.f32 %v2802_v33, %v7086_v55  ;;  %v2199_v33 = vadd.f32 %v7108_v16, %v1974_v21 }
 0x41e   : > { %v3476_v36 = vsel %vm3325_vm12, %v3422_v56, 0.0  ;;  %v3696_v25 = vsel %vm3325_vm12, %v3526_v13, 0.0  ;;  %v3094_v54 = vadd.f32 %v3025_v8, %v7084_v26 }
 0x41f   : > { %v3477_v49 = vadd.f32 %v3476_v36, %v3475_v45  ;;  %v3697_v19 = vrot.slane %v3696_v25, 4  ;;  %v3374_v29 = vadd.f32 %v3373_v18, %v3372_v17  ;;  %v3708_v18 = vrot.slane %v3707_v43, 1 }
 0x420   : > { %v3151_v9 = vpop.permute.xlu0 %3150 }
 0x421   : > { %v3698_v1 = vadd.f32 %v3697_v19, %v3696_v25  ;;  %v3221_v27 = vadd.f32 %v3151_v9, %v3093_v22  ;;  %v3479_v7 = vadd.f32 %v3478_v20, %v3477_v49  ;;  %v2804_v28 = vpop.permute.xlu1 %2803  ;;  %v1975_v19 = vadd.f32 %v7118_v15, %v1750_v61 }
 0x422   : > { %v2871_v22 = vadd.f32 %v2804_v28, %v7095_v11  ;;  %v2423_v9 = vadd.f32 %v7110_v44, %v2199_v33 }
 0x423   : > { %v3699_v52 = vrot.slane %v3698_v1, 2  ;;  %vm3253_vm9 = vcmp.ge.f32.partialorder %v3221_v27, 0.0  ;;  %v3285_v39 = vmul.f32 0.2, %v3221_v27  ;;  %v2200_v12 = vadd.f32 %v7123_v59, %v1975_v19 }
 0x424   : > { %v3027_v35 = vpop.permute.xlu0 %3026 }
 0x425   : > { %v3700_v45 = vadd.f32 %v3699_v52, %v3698_v1  ;;  %v3317_v53 = vsel %vm3253_vm9, %v3221_v27, %v3285_v39  ;;  %v3153_v48 = vpop.permute.xlu1 %3152  ;;  %v3095_v58 = vadd.f32 %v3027_v35, %v2870_v23 }
 0x426   : > { %v3375_v6 = vsel %vm3325_vm12, %v3317_v53, 0.0  ;;  %v3424_v3 = vmul.f32 %v3317_v53, %v3317_v53  ;;  %v3528_v2 = vmul.f32 %v7046_v46, %v3317_v53  ;;  %v3222_v38 = vadd.f32 %v3153_v48, %v3094_v54 }
 0x427   : > { %v3701_v10 = vrot.slane %v3700_v45, 1  ;;  %v3376_v24 = vadd.f32 %v3375_v6, %v3374_v29 }
 0x428   : > { %v3480_v26 = vsel %vm3325_vm12, %v3424_v3, 0.0  ;;  %v3710_v5 = vsel %vm3325_vm12, %v3528_v2, 0.0  ;;  %vm3254_vm10 = vcmp.ge.f32.partialorder %v3222_v38, 0.0  ;;  %v3286_v42 = vmul.f32 0.2, %v3222_v38  ;;  %v2806_v47 = vpop.permute.xlu0 %2805 }
 0x429   : > { %v3702_v57 = vadd.f32 %v3701_v10, %v3700_v45  ;;  %v3481_v32 = vadd.f32 %v3480_v26, %v3479_v7  ;;  %v3711_v41 = vrot.slane %v3710_v5, 4  ;;  %v3029_v34 = vpop.permute.xlu1 %3028  ;;  %v3709_v7 = vadd.f32 %v3708_v18, %v3707_v43 }
 0x42a   : > { %v3318_v0 = vsel %vm3254_vm10, %v3222_v38, %v3286_v42  ;;  %v3096_v1 = vadd.f32 %v3029_v34, %v2871_v22  ;;  %v2872_v48 = vadd.f32 %v2806_v47, %v7097_v40  ;;  %v2648_v26 = vadd.f32 %v7116_v14, %v2423_v9 }
 0x42b   : > { %v3819_v55 = vsel %vm7371_vm13, %v3702_v57, %v7121_v50  ;;  %v3712_v31 = vadd.f32 %v3711_v41, %v3710_v5  ;;  %v3377_v56 = vsel %vm3325_vm12, %v3318_v0, 0.0  ;;  %v3425_v13 = vmul.f32 %v3318_v0, %v3318_v0 }
 0x42c   : > { %3834 = vst.msk [vmem:[%s6354_s11 + $0x10] sm:$0xff] %vm3325_vm12, %v3819_v55  ;;  %v3378_v17 = vadd.f32 %v3377_v56, %v3376_v24  ;;  %v3529_v8 = vmul.f32 %v7046_v46, %v3318_v0  ;;  %v3155_v51 = vpop.permute.xlu0 %3154  ;;  %v2424_v5 = vadd.f32 %v7125_v60, %v2200_v12 }
 0x42d   : > { %v3713_v36 = vrot.slane %v3712_v31, 2  ;;  %v3482_v25 = vsel %vm3325_vm12, %v3425_v13, 0.0  ;;  %v3223_v50 = vadd.f32 %v3155_v51, %v3095_v58  ;;  %v2808_v49 = vpop.permute.xlu1 %2807 }
 0x42e   : > { %v3483_v16 = vadd.f32 %v3482_v25, %v3481_v32  ;;  %v3717_v29 = vsel %vm3325_vm12, %v3529_v8, 0.0  ;;  %v2649_v41 = vadd.f32 %v7128_v62, %v2424_v5  ;;  %v2873_v34 = vadd.f32 %v2808_v49, %v2648_v26 }
 0x42f   : > { %v3714_v63 = vadd.f32 %v3713_v36, %v3712_v31  ;;  %v3718_v30 = vrot.slane %v3717_v29, 4  ;;  %vm3255_vm11 = vcmp.ge.f32.partialorder %v3223_v50, 0.0  ;;  %v3287_v20 = vmul.f32 0.2, %v3223_v50 }
 0x430   : > { %v3031_v27 = vpop.permute.xlu0 %3030 }
 0x431   : > { %v3715_v52 = vrot.slane %v3714_v63, 1  ;;  %v3719_v39 = vadd.f32 %v3718_v30, %v3717_v29  ;;  %v3319_v54 = vsel %vm3255_vm11, %v3223_v50, %v3287_v20  ;;  %v3157_v15 = vpop.permute.xlu1 %3156  ;;  %v3097_v42 = vadd.f32 %v3031_v27, %v2872_v48 }
 0x432   : > { %v3379_v11 = vsel %vm3325_vm12, %v3319_v54, 0.0  ;;  %v3426_v28 = vmul.f32 %v3319_v54, %v3319_v54  ;;  %v3530_v35 = vmul.f32 %v7046_v46, %v3319_v54  ;;  %v3224_v37 = vadd.f32 %v3157_v15, %v3096_v1 }
 0x433   : > { %v3716_v45 = vadd.f32 %v3715_v52, %v3714_v63  ;;  %v3720_v53 = vrot.slane %v3719_v39, 2  ;;  %v3380_v44 = vadd.f32 %v3379_v11, %v3378_v17 }
 0x434   : > { %v3484_v59 = vsel %vm3325_vm12, %v3426_v28, 0.0  ;;  %v3724_v6 = vsel %vm3325_vm12, %v3530_v35, 0.0  ;;  %vm3256_vm1 = vcmp.ge.f32.partialorder %v3224_v37, 0.0  ;;  %v3288_v3 = vmul.f32 0.2, %v3224_v37  ;;  %v2810_v2 = vpop.permute.xlu0 %2809 }
 0x435   : > { %v3820_v38 = vsel %vm3792_vm3, %v3716_v45, %v3709_v7  ;;  %v3721_v4 = vadd.f32 %v3720_v53, %v3719_v39  ;;  %v3485_v10 = vadd.f32 %v3484_v59, %v3483_v16  ;;  %v3725_v23 = vrot.slane %v3724_v6, 4  ;;  %v3033_v24 = vpop.permute.xlu1 %3032 }
 0x436   : > { %v3320_v40 = vsel %vm3256_vm1, %v3224_v37, %v3288_v3  ;;  %v2874_v61 = vadd.f32 %v2810_v2, %v2649_v41  ;;  %v3098_v17 = vadd.f32 %v3033_v24, %v2873_v34 }
 0x437   : > { %v3722_v47 = vrot.slane %v3721_v4, 1  ;;  %v3726_v43 = vadd.f32 %v3725_v23, %v3724_v6  ;;  %v3381_v57 = vsel %vm3325_vm12, %v3320_v40, 0.0  ;;  %v3427_v32 = vmul.f32 %v3320_v40, %v3320_v40 }
 0x438   : > { %v3382_v21 = vadd.f32 %v3381_v57, %v3380_v44  ;;  %v3531_v58 = vmul.f32 %v7046_v46, %v3320_v40  ;;  %v3159_v0 = vpop.permute.xlu0 %3158 }
 0x439   : > { %v3723_v55 = vadd.f32 %v3722_v47, %v3721_v4  ;;  %v3727_v31 = vrot.slane %v3726_v43, 2  ;;  %v3486_v14 = vsel %vm3325_vm12, %v3427_v32, 0.0  ;;  %v3225_v56 = vadd.f32 %v3159_v0, %v3097_v42  ;;  %v3035_v60 = vpop.permute.xlu1 %3034 }
 0x43a   : > { %v3487_v13 = vadd.f32 %v3486_v14, %v3485_v10  ;;  %v3731_v33 = vsel %vm3325_vm12, %v3531_v58, 0.0  ;;  %v3099_v36 = vadd.f32 %v3035_v60, %v2874_v61 }
 0x43b   : > { %v3821_v8 = vsel %vm3794_vm4, %v3723_v55, %v3820_v38  ;;  %v3728_v51 = vadd.f32 %v3727_v31, %v3726_v43  ;;  %v3732_v62 = vrot.slane %v3731_v33, 4  ;;  %vm3257_vm3 = vcmp.ge.f32.partialorder %v3225_v56, 0.0 }
 0x43c   : > { %v3289_v18 = vmul.f32 0.2, %v3225_v56  ;;  %v3161_v25 = vpop.permute.xlu0 %3160 }
 0x43d   : > { %v3729_v50 = vrot.slane %v3728_v51, 1  ;;  %v3733_v49 = vadd.f32 %v3732_v62, %v3731_v33  ;;  %v3226_v19 = vadd.f32 %v3161_v25, %v3098_v17  ;;  %v3163_v22 = vpop.permute.xlu1 %3162  ;;  %v3324_v25 = vld [vmem:[#allocation3] sm:$0x1] }
 0x43e   : > { %v3321_v16 = vsel %vm3257_vm3, %v3225_v56, %v3289_v18  ;;  %v3227_v29 = vadd.f32 %v3163_v22, %v3099_v36 }
 0x43f   : > { %v3730_v63 = vadd.f32 %v3729_v50, %v3728_v51  ;;  %v3734_v30 = vrot.slane %v3733_v49, 2  ;;  %v3383_v20 = vsel %vm3325_vm12, %v3321_v16, 0.0  ;;  %v3428_v9 = vmul.f32 %v3321_v16, %v3321_v16 }
 0x440   : > { %v3384_v12 = vadd.f32 %v3383_v20, %v3382_v21  ;;  %v3532_v1 = vmul.f32 %v7046_v46, %v3321_v16  ;;  %vm3258_vm4 = vcmp.ge.f32.partialorder %v3226_v19, 0.0  ;;  %v3290_v27 = vmul.f32 0.2, %v3226_v19 }
 0x441   : > { %v3822_v7 = vsel %vm3796_vm14, %v3730_v63, %v3821_v8  ;;  %v3735_v52 = vadd.f32 %v3734_v30, %v3733_v49  ;;  %v3488_v39 = vsel %vm3325_vm12, %v3428_v9, 0.0  ;;  %vm3259_vm5 = vcmp.ge.f32.partialorder %v3227_v29, 0.0 }
 0x442   : > { %v3489_v54 = vadd.f32 %v3488_v39, %v3487_v13  ;;  %v3738_v15 = vsel %vm3325_vm12, %v3532_v1, 0.0  ;;  %v3322_v11 = vsel %vm3258_vm4, %v3226_v19, %v3290_v27  ;;  %v3291_v28 = vmul.f32 0.2, %v3227_v29 }
 0x443   : > { %v3736_v35 = vrot.slane %v3735_v52, 1  ;;  %v3739_v37 = vrot.slane %v3738_v15, 4  ;;  %v3385_v45 = vsel %vm3325_vm12, %v3322_v11, 0.0  ;;  %v3429_v53 = vmul.f32 %v3322_v11, %v3322_v11 }
 0x444   : > { %v3386_v48 = vadd.f32 %v3385_v45, %v3384_v12  ;;  %v3533_v44 = vmul.f32 %v7046_v46, %v3322_v11  ;;  %v3323_v59 = vsel %vm3259_vm5, %v3227_v29, %v3291_v28  ;;  %vm3396_vm14 = vcmask 24576   ;;  %v3398_v29 = vld [vmem:[#allocation4] sm:$0x1] }
 0x445   : > { %v3737_v6 = vadd.f32 %v3736_v35, %v3735_v52  ;;  %v3740_v3 = vadd.f32 %v3739_v37, %v3738_v15  ;;  %v3490_v2 = vsel %vm3325_vm12, %v3429_v53, 0.0  ;;  %v3387_v38 = vsel %vm3325_vm12, %v3323_v59, 0.0  ;;  %v3853_v53 = vld [vmem:[%s7256_s2] sm:$0xff] (!%p4142_p4) }
 0x446   : > { %v3491_v4 = vadd.f32 %v3490_v2, %v3489_v54  ;;  %v3745_v10 = vsel %vm3325_vm12, %v3533_v44, 0.0  ;;  %v3388_v23 = vadd.f32 %v3387_v38, %v3386_v48  ;;  %v3430_v24 = vmul.f32 %v3323_v59, %v3323_v59 }
 0x447   : > { %v3823_v26 = vsel %vm3798_vm15, %v3737_v6, %v3822_v7  ;;  %v3741_v5 = vrot.slane %v3740_v3, 2  ;;  %v3746_v42 = vrot.slane %v3745_v10, 4  ;;  %v3534_v40 = vmul.f32 %v7046_v46, %v3323_v59  ;;  %vm7372_vm15 = vmmov %vm7371_vm13 }
 0x448   : > { %v3389_v47 = vrot.slane %v3388_v23, 4  ;;  %v3492_v43 = vsel %vm3325_vm12, %v3430_v24, 0.0  ;;  %v4741_v52 = vmov (!%p4142_p4), 0.0|0.0   ;;  %v4743_v54 = vmov (!%p4142_p4), 0.0  }
 0x449   : > { %v3742_v57 = vadd.f32 %v3741_v5, %v3740_v3  ;;  %v3747_v32 = vadd.f32 %v3746_v42, %v3745_v10  ;;  %v3493_v41 = vadd.f32 %v3492_v43, %v3491_v4  ;;  %v3752_v34 = vsel %vm3325_vm12, %v3534_v40, 0.0  ;;  %4425 = vmatprep.subr.bf16.mxu0 (!%p4142_p4), %v4741_v52  ;;  %v3848_v40 = vld [vmem:[#allocation8] sm:$0x1] (!%p4142_p4) }
 0x44a   : > { %v3390_v21 = vadd.f32 %v3389_v47, %v3388_v23  ;;  %v3753_v58 = vrot.slane %v3752_v34, 4  ;;  %v3854_v48 = vsel (!%p4142_p4), %vm3325_vm12, %v3853_v53, 0.0 }
 0x44b   : > { %v3743_v0 = vrot.slane %v3742_v57, 1  ;;  %v3748_v55 = vrot.slane %v3747_v32, 2  ;;  %v3494_v31 = vrot.slane %v3493_v41, 4  ;;  %v3855_v59 = vrot.slane (!%p4142_p4), %v3854_v48, 4 }
 0x44c   : > { %v3391_v14 = vrot.slane %v3390_v21, 2  ;;  %v3754_v56 = vadd.f32 %v3753_v58, %v3752_v34 }
 0x44d   : > { %v3744_v60 = vadd.f32 %v3743_v0, %v3742_v57  ;;  %v3749_v13 = vadd.f32 %v3748_v55, %v3747_v32  ;;  %v3495_v33 = vadd.f32 %v3494_v31, %v3493_v41  ;;  %v3856_v2 = vadd.f32 (!%p4142_p4), %v3855_v59, %v3854_v48  ;;  %v3850_v41 = vld [vmem:[#allocation10] sm:$0x1] (!%p4142_p4) }
 0x44e   : > { %v3392_v61 = vadd.f32 %v3391_v14, %v3390_v21  ;;  %v3755_v46 = vrot.slane %v3754_v56, 2 }
 0x44f   : > { %v3824_v17 = vsel %vm3800_vm0, %v3744_v60, %v3823_v26  ;;  %v3750_v8 = vrot.slane %v3749_v13, 1  ;;  %v3496_v51 = vrot.slane %v3495_v33, 2  ;;  %vm7200_vm0 = vmpackc.low (!%p4142_p4), %vm3325_vm12, %vm3325_vm12  ;;  %v3857_v23 = vrot.slane (!%p4142_p4), %v3856_v2, 2 }
 0x450   : > { %v3393_v62 = vrot.slane %v3392_v61, 1  ;;  %v3756_v18 = vadd.f32 %v3755_v46, %v3754_v56 }
 0x451   : > { %v3751_v36 = vadd.f32 %v3750_v8, %v3749_v13  ;;  %v3497_v50 = vadd.f32 %v3496_v51, %v3495_v33  ;;  %v3858_v26 = vadd.f32 (!%p4142_p4), %v3857_v23, %v3856_v2 }
 0x452   : > { %v3394_v49 = vadd.f32 %v3393_v62, %v3392_v61  ;;  %v3757_v19 = vrot.slane %v3756_v18, 1 }
 0x453   : > { %v3825_v22 = vsel %vm3802_vm2, %v3751_v36, %v3824_v17  ;;  %v3498_v16 = vrot.slane %v3497_v50, 1  ;;  %3839 = sbr.rel (%p4142_p4) target bundleno = 1393 (0x571), region = 60  ;;  %vm4742_vm2 = vmmov (!%p4142_p4), 0   ;;  %v3859_v47 = vrot.slane (!%p4142_p4), %v3858_v26, 1 }
 0x454   : > { %v3395_v63 = vadd.f32 %v3394_v49, %v3324_v25  ;;  %v3758_v30 = vadd.f32 %v3757_v19, %v3756_v18  ;;  %4360 = vmatprep.mubr.msk.f32.mxu0 (!%p4142_p4), %vm4742_vm2, %v4743_v54 }
 0x455   : > { %v3499_v20 = vadd.f32 %v3498_v16, %v3497_v50  ;;  %v3860_v21 = vadd.f32 (!%p4142_p4), %v3859_v47, %v3858_v26 }
 0x456   : > { %3397 = vst.msk [vmem:[#allocation3] sm:$0x1] %vm3396_vm14, %v3395_v63  ;;  %v3826_v9 = vsel %vm7372_vm15, %v3758_v30, %v3825_v22 }
 0x457   : > { %v3500_v12 = vadd.f32 %v3499_v20, %v3398_v29  ;;  %3835 = vst.msk [vmem:[%s6354_s11 + $0x18] sm:$0xff] %vm3325_vm12, %v3826_v9 }
 0x459   : > { %3501 = vst.msk [vmem:[#allocation4] sm:$0x1] %vm3396_vm14, %v3500_v12 }
 0x45d   : > { %v3840_v15 = vld [vmem:[#allocation3] sm:$0x1] }
 0x45e   : > { %v3872_v1 = vld [vmem:[#allocation2] sm:$0xff]  ;;  %v3873_v27 = vld [vmem:[#allocation2 + $0x8] sm:$0xff]  ;;  %v3874_v28 = vld [vmem:[#allocation2 + $0x10] sm:$0xff]  ;;  %v3841_v37 = vmul.f32 0.001953125, %v3840_v15 }
 0x45f   : > { %v4426_v39 = vpack.c.bf16 %v3873_v27, %v3872_v1  ;;  %v3875_v35 = vld [vmem:[#allocation2 + $0x18] sm:$0xff]  ;;  %v3876_v4 = vld [vmem:[#allocation2 + $0x20] sm:$0xff]  ;;  %v3877_v10 = vld [vmem:[#allocation2 + $0x28] sm:$0xff] }
 0x460   : > { %v3842_v11 = vld [vmem:[#allocation4] sm:$0x1]  ;;  %v3844_v44 = vmul.f32 %v3841_v37, %v3841_v37  ;;  %v4430_v6 = vpack.c.bf16 %v3875_v35, %v3874_v28  ;;  %v4434_v24 = vpack.c.bf16 %v3877_v10, %v3876_v4  ;;  %v3878_v5 = vld [vmem:[#allocation2 + $0x30] sm:$0xff]  ;;  %v3879_v42 = vld [vmem:[#allocation2 + $0x38] sm:$0xff] }
 0x461   : > { %4428 = vmatpush3.bf16.xpose.msk.msra.mxu0 %vm7200_vm0, %v4426_v39  ;;  %v3843_v45 = vmul.f32 0.001953125, %v3842_v11  ;;  %v4438_v57 = vpack.c.bf16 %v3879_v42, %v3878_v5 }
 0x462   : > { %4429 = vmatprep.subr.bf16.mxu0 %v4741_v52 }
 0x463   : > { %v3845_v3 = vsub.f32 %v3843_v45, %v3844_v44 }
 0x465   : > { %v3846_v38 = vadd.f32 1e-05, %v3845_v3 }
 0x467   : > { %4563 = vrsqrt.f32 %v3846_v38 }
 0x469   : > { %4432 = vmatpush3.bf16.xpose.msk.msra.mxu0 %vm7200_vm0, %v4430_v6 }
 0x46a   : > { %4433 = vmatprep.subr.bf16.mxu0 %v4741_v52 }
 0x471   : > { %4436 = vmatpush3.bf16.xpose.msk.msra.mxu0 %vm7200_vm0, %v4434_v24  ;;  %v4564_v43 = vpop.eup %4563 }
 0x472   : > { %4437 = vmatprep.subr.bf16.mxu0 %v4741_v52  ;;  %v3849_v32 = vmul.f32 %v4564_v43, %v3848_v40 }
 0x474   : > { %v3851_v34 = vmul.f32 %v3849_v32, %v3841_v37 }
 0x476   : > { %v3852_v58 = vsub.f32 %v3850_v41, %v3851_v34 }
 0x478   : > { %v3861_v0 = vmul.f32 %v3860_v21, %v3852_v58 }
 0x479   : > { %4440 = vmatpush3.bf16.xpose.msk.msra.mxu0 %vm7200_vm0, %v4438_v57 }
 0x47a   : > { %v3862_v55 = vsel %vm3396_vm14, %v3861_v0, 0.0 }
 0x47b   : > { %3863 = vadd.xlane.f32.xlu0 %v3862_v55 }
 0x480   : > { %4361 = vmatmul.mubr.msk.f32.vlgmr.msra.gmra.mrb[0].mxu0 %vm3325_vm12, %v3849_v32 }
 0x508   : > { %v3864_v31 = vpop.xlane.xlu0 %3863 }
 0x509   : > { %v3865_v14 = vrot.slane %v3864_v31, 4 }
 0x50b   : > { %v3866_v56 = vadd.f32 %v3865_v14, %v3864_v31 }
 0x50d   : > { %v3867_v60 = vrot.slane %v3866_v56, 2 }
 0x50f   : > { %v3868_v13 = vadd.f32 %v3867_v60, %v3866_v56 }
 0x511   : > { %v3869_v33 = vrot.slane %v3868_v13, 1 }
 0x513   : > { %v3870_v61 = vadd.f32 %v3869_v33, %v3868_v13 }
 0x515   : > { %4476 = vpush %v3870_v61 }
 0x546   : > { %s4477_s7 = spop %4476 }
 0x547   : > { %v3880_v46 = vstv %s4477_s7 }
 0x553   : > { %v3974_v17 = vpop.f32.mrb[0].mxu0 }
 0x554   : > { %v3975_v8 = vadd.f32 %v3974_v17, %v3880_v46  ;;  %v4362_v51 = vpop.f32.mrb[1].mxu0 }
 0x556   : > { %v4152_v62 = vmul.f32 -1.442695, %v3975_v8 }
 0x558   : > { %4565 = vpow2.f32 %v4152_v62 }
 0x562   : > { %v4566_v18 = vpop.eup %4565 }
 0x563   : > { %v3981_v36 = vadd.f32 1.0, %v4566_v18 }
 0x565   : > { %4567 = vrcp.f32 %v3981_v36 }
 0x56f   : > { %v4568_v25 = vpop.eup %4567 }
 0x570   : > { %3985 = vst.msk [vmem:[#allocation11] sm:$0x1] %vm3984_vm6, %v4568_v25 }
 0x571 PF: > { %p4508_p6 = scmp.eq.s32.totalorder %s4794_s22, 1  ;;  %s4744_s9 = smov [#allocation11]  }
 0x572   : > { %s3993_s21 = sshll.u32 %s4744_s9, 4  ;;  %s3994_s21 = int_to_ptr.vmem [resolvable:$true] %s3993_s21 }
 0x573   : > { %s4655_s29 = scalar_lea.vmem %s3994_s21, 16  ;;  %s4661_s10 = scalar_lea.vmem %s3994_s21, 32 }
 0x574   : > { %p4656_p7 = scmp.ne.s32.totalorder %s3994_s21, %s4655_s29  ;;  %p4662_p13 = scmp.lt.s32.totalorder %s3994_s21, %s3994_s21 }
 0x575   : > { %p4663_p5 = scmp.lt.s32.totalorder %s4661_s10, %s4655_s29 }
 0x576   : > { %p4657_p11 = pnand %p4656_p7, %p4508_p6 }
 0x577   : > { %p4664_p9 = por %p4663_p5, %p4662_p13 }
 0x578   : > { %p4658_p12 = pneg %p4657_p11 }
 0x57a   : > { %p4665_p10 = pnand %p4664_p9, %p4658_p12 }
 0x57c   : > { %4668 = shalt.err (!%p4665_p10)
}
 0x57d   : > { %s4669_s14 = scalar_lea.hbm %s7259_s5, 16 }
 0x57e   : > { %p4670_p1 = scmp.ne.s32.totalorder %s7259_s5, %s4669_s14  ;;  %p4675_p2 = scmp.lt.u32.totalorder %s4669_s14, %s7259_s5 }
 0x580   : > { %p4671_p8 = pnand %p4670_p1, %p4508_p6 }
 0x582   : > { %p4672_p0 = pneg %p4671_p8 }
 0x584   : > { %p4677_p3 = pnand %p4675_p2, %p4672_p0 }
 0x586   : > { %4680 = shalt.err (!%p4677_p3)
}
 0x587   : > { %4489 = dma.vmem_to_hbm [thread:$0]  (%p4508_p6), %s3994_s21, 16, %s7259_s5, [#allocation7]  }
 0x588   : > { %4706 = dma.done.wait (%p4508_p6), [#allocation7], 16  }
 0x589   : > { %4708 = vsyncadd (%p4508_p6), [#allocation7], 4294967280 }
 0x58a PF: > { %p17_p4 = scmp.ge.s32.totalorder %s4797_s23, 4   ;;  %s7375_s18 = smov %s4715_s19 }
 0x58b   : > { %s7376_s19 = smov %s4719_s20  ;;  %s7377_s20 = smov %s4807_s26 }
 0x58c   : > { %s7378_s21 = smov %s4797_s23  ;;  %19 = sbr.rel (!%p17_p4) target bundleno = 5 (0x5), region = 94 }
 0x593   :  { %4006 = vsyncpa [#allocation6], 1 }
 0x594   :  { %4008 = vsyncpa [#allocation6 + $0x1], 1 }
 0x595   :  { %4009 = vsyncpa [#allocation9], 1 }
 0x596   :  { %4010 = vsyncpa [#allocation7], 1 }
 0x597   :  { %4012 = vsyncpa [#allocation7 + $0x1], 1 }

</bundles_post_ra>
